<compile_context>
chip_gen: v5e
topology: v5e:2x2
jax: 0.10.0
libtpu: 0.0.40
codegen_flags: <defaults>
</compile_context>

<pallas_src>
import functools

import jax
import jax.numpy as jnp
from jax.experimental import pallas as pl
from jax.experimental.pallas import tpu as pltpu

# ---- small synthetic config (structure of wav2vec2-large, tiny dims) ----
CFG = {
    "conv_layers": [(1, 32, 10, 5), (32, 32, 3, 2), (32, 32, 2, 2)],  # (cin, cout, kernel, stride)
    "conv_dim": 32,
    "hidden": 64,
    "num_heads": 4,
    "ffn": 256,
    "num_encoder_layers": 5,      # encoder.layers[:5]
    "pos_conv_kernel": 8,
    "pos_conv_groups": 4,
    "ln_eps": 1e-5,
}

_VMEM = functools.partial(pl.BlockSpec, memory_space=pltpu.MemorySpace.VMEM)


def _gelu(x):
    # TODO(synk): HF wav2vec2 uses exact erf-GELU; tanh approximation used here.
    return jax.nn.gelu(x, approximate=True)


def _ln(x, g, b, eps=CFG["ln_eps"]):
    mu = jnp.mean(x, axis=-1, keepdims=True)
    var = jnp.mean((x - mu) ** 2, axis=-1, keepdims=True)
    return (x - mu) * jax.lax.rsqrt(var + eps) * g + b


# --------------------------- Pallas kernels ---------------------------------

def _conv_ln_gelu_kernel(p_ref, w_ref, b_ref, g_ref, bb_ref, o_ref):
    """Fused (im2col-ed Conv1d) matmul + bias + LayerNorm(channel) + GELU."""
    y = jnp.dot(p_ref[...], w_ref[...], preferred_element_type=jnp.float32) + b_ref[...]
    o_ref[...] = _gelu(_ln(y, g_ref[...], bb_ref[...]))


def pallas_conv_ln_gelu(patches, w, b, gamma, beta):
    M, _ = patches.shape
    N = w.shape[1]
    return pl.pallas_call(
        _conv_ln_gelu_kernel,
        out_shape=jax.ShapeDtypeStruct((M, N), jnp.float32),
        in_specs=[_VMEM()] * 5,
        out_specs=_VMEM(),
    )(patches, w, b.reshape(1, N), gamma.reshape(1, N), beta.reshape(1, N))


def _feature_head_kernel(p_ref, w3_ref, cb_ref, cg_ref, cbb_ref,
                         fpg_ref, fpb_ref, fpw_ref, fpbias_ref,
                         posw_ref, posb_ref, o_ref, *, B, S, H, kk):
    """conv3 + LN + GELU + mean-over-time + feature_projection + pos-conv embed + add."""
    # --- last Conv1d layer (im2col'ed) + LayerNorm + GELU, then mean over time per batch
    feats = []
    for b in range(B):
        y = jnp.dot(p_ref[b], w3_ref[...], preferred_element_type=jnp.float32) + cb_ref[...]
        y = _gelu(_ln(y, cg_ref[...], cbb_ref[...]))           # [t3, C]
        feats.append(jnp.mean(y, axis=0, keepdims=True))        # [1, C]   (mean over time)
    feat = jnp.concatenate(feats, axis=0)                       # [B, C]

    # --- feature_projection: LayerNorm -> Linear (dropout = identity)
    hs = jnp.dot(_ln(feat, fpg_ref[...], fpb_ref[...]), fpw_ref[...],
                 preferred_element_type=jnp.float32) + fpbias_ref[...]     # [S, H]

    # --- positional conv embedding: grouped Conv1d folded to dense taps, pad k//2,
    #     SamePad trim to S, GELU, residual add.
    pad = kk // 2
    t_pos = S + 2 * pad - kk + 1
    z = jnp.zeros((pad, H), jnp.float32)
    padded = jnp.concatenate([z, hs, z], axis=0)                # [S + 2*pad, H]
    acc = jnp.zeros((t_pos, H), jnp.float32) + posb_ref[...]
    for j in range(kk):                                         # tap-wise matmul accumulation
        acc = acc + jnp.dot(padded[j:j + t_pos, :], posw_ref[j * H:(j + 1) * H, :],
                            preferred_element_type=jnp.float32)
    pos = _gelu(acc)[:S, :]
    o_ref[...] = hs + pos


def pallas_feature_head(patches3, conv3, fp_ln_g, fp_ln_b, fp_w, fp_b, pos_w, pos_b):
    B, _, _ = patches3.shape
    C = conv3["w"].shape[1]
    H = fp_w.shape[1]
    kk = CFG["pos_conv_kernel"]
    kernel = functools.partial(_feature_head_kernel, B=B, S=B, H=H, kk=kk)
    return pl.pallas_call(
        kernel,
        out_shape=jax.ShapeDtypeStruct((B, H), jnp.float32),
        in_specs=[_VMEM()] * 11,
        out_specs=_VMEM(),
    )(patches3, conv3["w"], conv3["b"].reshape(1, C), conv3["ln_g"].reshape(1, C),
      conv3["ln_b"].reshape(1, C), fp_ln_g.reshape(1, C), fp_ln_b.reshape(1, C),
      fp_w, fp_b.reshape(1, H), pos_w, pos_b.reshape(1, H))


def _encoder_kernel(hs0_ref, mask_ref, norms_ref, wqkv_ref, bqkv_ref,
                    wo_ref, bo_ref, wff1_ref, bff1_ref, wff2_ref, bff2_ref,
                    encln_ref, o_ref, hs_ref, *, S, H):
    """One fused (stable-LN) encoder layer per grid step; hs resident in VMEM scratch."""
    l = pl.program_id(0)

    @pl.when(l == 0)
    def _():
        hs_ref[...] = hs0_ref[...]

    hs = hs_ref[...]
    norms = norms_ref[0]                                        # [4, H]: ln1_g, ln1_b, ln2_g, ln2_b

    # ---- attention block (pre-LN) ----
    y = _ln(hs, norms[0:1, :], norms[1:2, :])
    qkv = jnp.dot(y, wqkv_ref[0], preferred_element_type=jnp.float32) + bqkv_ref[0]   # [S, 3H]
    q = qkv[:, 0:H]                          # attention scale dh**-0.5 folded into Wq/bq at init
    k = qkv[:, H:2 * H]
    v = qkv[:, 2 * H:3 * H]

    # per-head scores lane-replicated within each head: (q * k_j) @ block-diag head mask
    mask = mask_ref[...]                                        # [H, H]
    s_rows = [jnp.dot(q * k[j:j + 1, :], mask, preferred_element_type=jnp.float32)
              for j in range(S)]                                # each [S, H]
    m = s_rows[0]
    for j in range(1, S):
        m = jnp.maximum(m, s_rows[j])
    es = [jnp.exp(s - m) for s in s_rows]
    denom = es[0]
    for j in range(1, S):
        denom = denom + es[j]
    ctx = es[0] * v[0:1, :]
    for j in range(1, S):
        ctx = ctx + es[j] * v[j:j + 1, :]
    ctx = ctx * pl.reciprocal(denom, approx=True)               # softmax divide on the EUP

    attn = jnp.dot(ctx, wo_ref[0], preferred_element_type=jnp.float32) + bo_ref[0]
    hs = hs + attn

    # ---- feed-forward block (pre-LN) ----
    y2 = _ln(hs, norms[2:3, :], norms[3:4, :])
    f = _gelu(jnp.dot(y2, wff1_ref[0], preferred_element_type=jnp.float32) + bff1_ref[0])
    f = jnp.dot(f, wff2_ref[0], preferred_element_type=jnp.float32) + bff2_ref[0]
    hs = hs + f

    hs_ref[...] = hs
    o_ref[...] = hs                                             # keep output buffer initialized

    @pl.when(l == pl.num_programs(0) - 1)
    def _():
        o_ref[...] = _ln(hs, encln_ref[0:1, :], encln_ref[1:2, :])   # final encoder LayerNorm


def pallas_encoder(hs0, head_mask, enc):
    S, H = hs0.shape
    L = enc["wqkv"].shape[0]
    F = enc["wff1"].shape[2]
    kernel = functools.partial(_encoder_kernel, S=S, H=H)
    grid_spec = pltpu.PrefetchScalarGridSpec(
        num_scalar_prefetch=0,
        grid=(L,),
        in_specs=[
            pl.BlockSpec((S, H), lambda l: (0, 0)),             # hs0 (resident)
            pl.BlockSpec((H, H), lambda l: (0, 0)),             # block-diag head mask (resident)
            pl.BlockSpec((1, 4, H), lambda l: (l, 0, 0)),       # stacked LN params
            pl.BlockSpec((1, H, 3 * H), lambda l: (l, 0, 0)),   # fused QKV weight
            pl.BlockSpec((1, 1, 3 * H), lambda l: (l, 0, 0)),   # fused QKV bias
            pl.BlockSpec((1, H, H), lambda l: (l, 0, 0)),       # out-proj weight
            pl.BlockSpec((1, 1, H), lambda l: (l, 0, 0)),       # out-proj bias
            pl.BlockSpec((1, H, F), lambda l: (l, 0, 0)),       # FFN w1
            pl.BlockSpec((1, 1, F), lambda l: (l, 0, 0)),       # FFN b1
            pl.BlockSpec((1, F, H), lambda l: (l, 0, 0)),       # FFN w2
            pl.BlockSpec((1, 1, H), lambda l: (l, 0, 0)),       # FFN b2
            pl.BlockSpec((2, H), lambda l: (0, 0)),             # final encoder LN (gamma; beta)
        ],
        out_specs=pl.BlockSpec((S, H), lambda l: (0, 0)),
        scratch_shapes=[pltpu.VMEM((S, H), jnp.float32)],
    )
    return pl.pallas_call(
        kernel,
        out_shape=jax.ShapeDtypeStruct((S, H), jnp.float32),
        grid_spec=grid_spec,
        compiler_params=pltpu.CompilerParams(dimension_semantics=("arbitrary",)),
    )(hs0, head_mask, enc["norms"], enc["wqkv"], enc["bqkv"], enc["wo"], enc["bo"],
      enc["wff1"], enc["bff1"], enc["wff2"], enc["bff2"], enc["final_ln"])


# --------------------------- JAX glue ----------------------------------------

def _im2col(x, k, s):
    """x: [B, T, C] -> patches [B, T_out, k*C] (window flattened as (tap, channel))."""
    # TODO(synk): im2col gather kept in XLA; in-kernel strided gather not used at this size.
    B, T, C = x.shape
    t_out = (T - k) // s + 1
    idx = jnp.arange(t_out)[:, None] * s + jnp.arange(k)[None, :]
    patches = x[:, idx, :]                       # [B, t_out, k, C]
    return patches.reshape(B, t_out, k * C), t_out


def init_params(key):
    def nrm(k, shape, scale=0.02):
        return scale * jax.random.normal(k, shape, jnp.float32)

    counter = [0]

    def nk():
        counter[0] += 1
        return jax.random.fold_in(key, counter[0])

    p = {"conv": []}

    # feature_extractor: Conv1d + LayerNorm + GELU per layer (layer-norm variant, conv_bias=True)
    for cin, cout, kk, _s in CFG["conv_layers"]:
        w_pt = nrm(nk(), (cout, cin, kk))                              # PyTorch Conv1d layout
        p["conv"].append({
            "w": w_pt.transpose(2, 1, 0).reshape(kk * cin, cout),      # (tap, cin) x cout
            "b": nrm(nk(), (cout,)),
            "ln_g": jnp.ones((cout,), jnp.float32),
            "ln_b": jnp.zeros((cout,), jnp.float32),
        })

    C, H = CFG["conv_dim"], CFG["hidden"]
    # feature_projection: LayerNorm(conv_dim) -> Linear(conv_dim, hidden)
    p["fp_ln_g"] = jnp.ones((C,), jnp.float32)
    p["fp_ln_b"] = jnp.zeros((C,), jnp.float32)
    p["fp_w"] = nrm(nk(), (C, H))
    p["fp_b"] = nrm(nk(), (H,))

    # positional conv embedding: grouped Conv1d -> equivalent dense block-diagonal weight
    kk, g = CFG["pos_conv_kernel"], CFG["pos_conv_groups"]
    per = H // g
    wg = nrm(nk(), (H, per, kk))                                       # PyTorch grouped layout
    dense = jnp.zeros((H, H, kk), jnp.float32)
    for gi in range(g):
        dense = dense.at[gi * per:(gi + 1) * per, gi * per:(gi + 1) * per, :].set(
            wg[gi * per:(gi + 1) * per])
    # TODO(synk): weight_norm reparameterization not reproduced (equivalent dense weight used).
    p["pos_w"] = dense.transpose(2, 1, 0).reshape(kk * H, H)
    p["pos_b"] = nrm(nk(), (H,))

    # encoder: stacked per-layer weights for the single grid-over-layers kernel
    F = CFG["ffn"]
    nh = CFG["num_heads"]
    dh = H // nh
    scale = dh ** -0.5

    norms, wqkv, bqkv, wo, bo, wff1, bff1, wff2, bff2 = ([] for _ in range(9))
    for _ in range(CFG["num_encoder_layers"]):
        ln1_g = jnp.ones((H,), jnp.float32); ln1_b = jnp.zeros((H,), jnp.float32)
        ln2_g = jnp.ones((H,), jnp.float32); ln2_b = jnp.zeros((H,), jnp.float32)
        q_w, q_b = nrm(nk(), (H, H)), nrm(nk(), (H,))
        k_w, k_b = nrm(nk(), (H, H)), nrm(nk(), (H,))
        v_w, v_b = nrm(nk(), (H, H)), nrm(nk(), (H,))
        o_w, o_b = nrm(nk(), (H, H)), nrm(nk(), (H,))
        f_w1, f_b1 = nrm(nk(), (H, F)), nrm(nk(), (F,))
        f_w2, f_b2 = nrm(nk(), (F, H)), nrm(nk(), (H,))
        norms.append(jnp.stack([ln1_g, ln1_b, ln2_g, ln2_b]))
        # QKV fused into one [H, 3H] weight; attention scale folded into the Q slice.
        wqkv.append(jnp.concatenate([q_w * scale, k_w, v_w], axis=1))
        bqkv.append(jnp.concatenate([q_b * scale, k_b, v_b])[None, :])
        wo.append(o_w); bo.append(o_b[None, :])
        wff1.append(f_w1); bff1.append(f_b1[None, :])
        wff2.append(f_w2); bff2.append(f_b2[None, :])

    p["enc"] = {
        "norms": jnp.stack(norms),                                     # [L, 4, H]
        "wqkv": jnp.stack(wqkv), "bqkv": jnp.stack(bqkv),              # [L, H, 3H], [L, 1, 3H]
        "wo": jnp.stack(wo), "bo": jnp.stack(bo),                      # [L, H, H], [L, 1, H]
        "wff1": jnp.stack(wff1), "bff1": jnp.stack(bff1),              # [L, H, F], [L, 1, F]
        "wff2": jnp.stack(wff2), "bff2": jnp.stack(bff2),              # [L, F, H], [L, 1, H]
        "final_ln": jnp.stack([jnp.ones((H,), jnp.float32),
                               jnp.zeros((H,), jnp.float32)]),         # [2, H]
    }

    # block-diagonal head mask used for per-head score reduction inside the encoder kernel
    head_ids = jnp.arange(H) // dh
    p["head_mask"] = (head_ids[:, None] == head_ids[None, :]).astype(jnp.float32)   # [H, H]
    return p


def wav2vec2_forward(params, x):
    B, _ = x.shape
    convs = CFG["conv_layers"]
    h = x[:, :, None].astype(jnp.float32)                     # [B, T, 1]

    # ---- feature_extractor layers 0..1: im2col (JAX) + fused Conv/LN/GELU kernel ----
    for lp, (cin, cout, kk, s) in zip(params["conv"][:2], convs[:2]):
        patches, t_out = _im2col(h, kk, s)                    # [B, t_out, kk*cin]
        y = pallas_conv_ln_gelu(patches.reshape(B * t_out, kk * cin),
                                lp["w"], lp["b"], lp["ln_g"], lp["ln_b"])
        h = y.reshape(B, t_out, cout)

    # ---- conv layer 2 + mean(dim=-1) + feature_projection + pos-conv embed (one kernel) ----
    _, _, k3, s3 = convs[2]
    patches3, _ = _im2col(h, k3, s3)                          # [B, t3, k3*32]
    hs0 = pallas_feature_head(patches3, params["conv"][2],
                              params["fp_ln_g"], params["fp_ln_b"],
                              params["fp_w"], params["fp_b"],
                              params["pos_w"], params["pos_b"])    # [S=B, H], pos-conv added
    # "a, b = feature; feature = a" -> projected hidden states kept;
    # feature.unsqueeze(0): encoder sees batch 1, sequence length S = B.

    # ---- encoder: 5 fused layers + final LN in ONE pallas_call (stable-layer-norm variant) ----
    hs = pallas_encoder(hs0, params["head_mask"], params["enc"])       # [S, H]

    # feature.squeeze(0).unsqueeze(dim=1)
    return hs[:, None, :]                                     # [B, 1, H]


if __name__ == "__main__":
    key = jax.random.PRNGKey(0)
    params = init_params(jax.random.fold_in(key, 1))
    x = jax.random.normal(jax.random.fold_in(key, 2), (2, 400), jnp.float32)  # [B, T] waveform

    out = jax.jit(wav2vec2_forward)(params, x)
    out = jax.block_until_ready(out)

    assert out.shape == (2, 1, CFG["hidden"]), out.shape
    assert bool(jnp.all(jnp.isfinite(out)))
    print("KERNEL_OK")
</pallas_src>

<mosaic_0001>
module attributes {stable_mosaic.version = 11 : i64} {
  func.func @_conv_ln_gelu_kernel(%arg0: memref<78x96xf32, #tpu.memory_space<vmem>>, %arg1: memref<96x32xf32, #tpu.memory_space<vmem>>, %arg2: memref<1x32xf32, #tpu.memory_space<vmem>>, %arg3: memref<1x32xf32, #tpu.memory_space<vmem>>, %arg4: memref<1x32xf32, #tpu.memory_space<vmem>>, %arg5: memref<78x32xf32, #tpu.memory_space<vmem>>) attributes {dimension_semantics = [], scalar_prefetch = 0 : i64, scratch_operands = 0 : i64, tpu.core_type = #tpu.core_type<tc>} {
    %c0 = arith.constant 0 : index
    %c0_0 = arith.constant 0 : index
    %0 = vector.load %arg0[%c0, %c0_0] : memref<78x96xf32, #tpu.memory_space<vmem>>, vector<78x96xf32>
    %c0_1 = arith.constant 0 : index
    %c0_2 = arith.constant 0 : index
    %1 = vector.load %arg1[%c0_1, %c0_2] : memref<96x32xf32, #tpu.memory_space<vmem>>, vector<96x32xf32>
    %cst = arith.constant dense<0.000000e+00> : vector<78x32xf32>
    %2 = tpu.matmul %0, %1, %cst {dimension_numbers = #tpu.dot_dimension_numbers<[1], [0], [0], [1], [0, 0, 1, 1], [], []>} : vector<78x96xf32>, vector<96x32xf32>, vector<78x32xf32> -> vector<78x32xf32>
    %c0_3 = arith.constant 0 : index
    %c0_4 = arith.constant 0 : index
    %3 = vector.load %arg2[%c0_3, %c0_4] : memref<1x32xf32, #tpu.memory_space<vmem>>, vector<1x32xf32>
    %4 = vector.broadcast %3 : vector<1x32xf32> to vector<78x32xf32>
    %5 = arith.addf %2, %4 : vector<78x32xf32>
    %c0_5 = arith.constant 0 : index
    %c0_6 = arith.constant 0 : index
    %6 = vector.load %arg3[%c0_5, %c0_6] : memref<1x32xf32, #tpu.memory_space<vmem>>, vector<1x32xf32>
    %c0_7 = arith.constant 0 : index
    %c0_8 = arith.constant 0 : index
    %7 = vector.load %arg4[%c0_7, %c0_8] : memref<1x32xf32, #tpu.memory_space<vmem>>, vector<1x32xf32>
    %cst_9 = arith.constant dense<0.000000e+00> : vector<78xf32>
    %8 = vector.multi_reduction <add>, %5, %cst_9 [1] : vector<78x32xf32> to vector<78xf32>
    %9 = vector.shape_cast %8 : vector<78xf32> to vector<78x1xf32>
    %cst_10 = arith.constant 3.200000e+01 : f32
    %10 = vector.broadcast %cst_10 : f32 to vector<78x1xf32>
    %11 = arith.divf %9, %10 : vector<78x1xf32>
    %12 = vector.broadcast %11 : vector<78x1xf32> to vector<78x32xf32>
    %13 = arith.subf %5, %12 : vector<78x32xf32>
    %14 = arith.mulf %13, %13 : vector<78x32xf32>
    %cst_11 = arith.constant dense<0.000000e+00> : vector<78xf32>
    %15 = vector.multi_reduction <add>, %14, %cst_11 [1] : vector<78x32xf32> to vector<78xf32>
    %16 = vector.shape_cast %15 : vector<78xf32> to vector<78x1xf32>
    %cst_12 = arith.constant 3.200000e+01 : f32
    %17 = vector.broadcast %cst_12 : f32 to vector<78x1xf32>
    %18 = arith.divf %16, %17 : vector<78x1xf32>
    %19 = vector.broadcast %11 : vector<78x1xf32> to vector<78x32xf32>
    %20 = arith.subf %5, %19 : vector<78x32xf32>
    %cst_13 = arith.constant 9.99999974E-6 : f32
    %21 = vector.broadcast %cst_13 : f32 to vector<78x1xf32>
    %22 = arith.addf %18, %21 : vector<78x1xf32>
    %23 = math.rsqrt %22 : vector<78x1xf32>
    %24 = vector.broadcast %23 : vector<78x1xf32> to vector<78x32xf32>
    %25 = arith.mulf %20, %24 : vector<78x32xf32>
    %26 = vector.broadcast %6 : vector<1x32xf32> to vector<78x32xf32>
    %27 = arith.mulf %25, %26 : vector<78x32xf32>
    %28 = vector.broadcast %7 : vector<1x32xf32> to vector<78x32xf32>
    %29 = arith.addf %27, %28 : vector<78x32xf32>
    %30 = arith.mulf %29, %29 : vector<78x32xf32>
    %31 = arith.mulf %29, %30 : vector<78x32xf32>
    %cst_14 = arith.constant 4.471500e-02 : f32
    %32 = vector.broadcast %cst_14 : f32 to vector<78x32xf32>
    %33 = arith.mulf %32, %31 : vector<78x32xf32>
    %34 = arith.addf %29, %33 : vector<78x32xf32>
    %cst_15 = arith.constant 0.797884583 : f32
    %35 = vector.broadcast %cst_15 : f32 to vector<78x32xf32>
    %36 = arith.mulf %35, %34 : vector<78x32xf32>
    %37 = math.tanh %36 : vector<78x32xf32>
    %cst_16 = arith.constant 1.000000e+00 : f32
    %38 = vector.broadcast %cst_16 : f32 to vector<78x32xf32>
    %39 = arith.addf %38, %37 : vector<78x32xf32>
    %cst_17 = arith.constant 5.000000e-01 : f32
    %40 = vector.broadcast %cst_17 : f32 to vector<78x32xf32>
    %41 = arith.mulf %40, %39 : vector<78x32xf32>
    %42 = arith.mulf %29, %41 : vector<78x32xf32>
    %c0_18 = arith.constant 0 : index
    %c0_19 = arith.constant 0 : index
    %43 = vector.load %arg5[%c0_18, %c0_19] : memref<78x32xf32, #tpu.memory_space<vmem>>, vector<78x32xf32>
    tpu.vector_store %arg5[%c0_18, %c0_19], %42 {strides = array<i32>} : memref<78x32xf32, #tpu.memory_space<vmem>>, vector<78x32xf32>,
    return
  }
}

module attributes {stable_mosaic.version = 11 : i64} {
  func.func @_conv_ln_gelu_kernel(%arg0: memref<158x10xf32, #tpu.memory_space<vmem>>, %arg1: memref<10x32xf32, #tpu.memory_space<vmem>>, %arg2: memref<1x32xf32, #tpu.memory_space<vmem>>, %arg3: memref<1x32xf32, #tpu.memory_space<vmem>>, %arg4: memref<1x32xf32, #tpu.memory_space<vmem>>, %arg5: memref<158x32xf32, #tpu.memory_space<vmem>>) attributes {dimension_semantics = [], scalar_prefetch = 0 : i64, scratch_operands = 0 : i64, tpu.core_type = #tpu.core_type<tc>} {
    %c0 = arith.constant 0 : index
    %c0_0 = arith.constant 0 : index
    %0 = vector.load %arg0[%c0, %c0_0] : memref<158x10xf32, #tpu.memory_space<vmem>>, vector<158x10xf32>
    %c0_1 = arith.constant 0 : index
    %c0_2 = arith.constant 0 : index
    %1 = vector.load %arg1[%c0_1, %c0_2] : memref<10x32xf32, #tpu.memory_space<vmem>>, vector<10x32xf32>
    %cst = arith.constant dense<0.000000e+00> : vector<158x32xf32>
    %2 = tpu.matmul %0, %1, %cst {dimension_numbers = #tpu.dot_dimension_numbers<[1], [0], [0], [1], [0, 0, 1, 1], [], []>} : vector<158x10xf32>, vector<10x32xf32>, vector<158x32xf32> -> vector<158x32xf32>
    %c0_3 = arith.constant 0 : index
    %c0_4 = arith.constant 0 : index
    %3 = vector.load %arg2[%c0_3, %c0_4] : memref<1x32xf32, #tpu.memory_space<vmem>>, vector<1x32xf32>
    %4 = vector.broadcast %3 : vector<1x32xf32> to vector<158x32xf32>
    %5 = arith.addf %2, %4 : vector<158x32xf32>
    %c0_5 = arith.constant 0 : index
    %c0_6 = arith.constant 0 : index
    %6 = vector.load %arg3[%c0_5, %c0_6] : memref<1x32xf32, #tpu.memory_space<vmem>>, vector<1x32xf32>
    %c0_7 = arith.constant 0 : index
    %c0_8 = arith.constant 0 : index
    %7 = vector.load %arg4[%c0_7, %c0_8] : memref<1x32xf32, #tpu.memory_space<vmem>>, vector<1x32xf32>
    %cst_9 = arith.constant dense<0.000000e+00> : vector<158xf32>
    %8 = vector.multi_reduction <add>, %5, %cst_9 [1] : vector<158x32xf32> to vector<158xf32>
    %9 = vector.shape_cast %8 : vector<158xf32> to vector<158x1xf32>
    %cst_10 = arith.constant 3.200000e+01 : f32
    %10 = vector.broadcast %cst_10 : f32 to vector<158x1xf32>
    %11 = arith.divf %9, %10 : vector<158x1xf32>
    %12 = vector.broadcast %11 : vector<158x1xf32> to vector<158x32xf32>
    %13 = arith.subf %5, %12 : vector<158x32xf32>
    %14 = arith.mulf %13, %13 : vector<158x32xf32>
    %cst_11 = arith.constant dense<0.000000e+00> : vector<158xf32>
    %15 = vector.multi_reduction <add>, %14, %cst_11 [1] : vector<158x32xf32> to vector<158xf32>
    %16 = vector.shape_cast %15 : vector<158xf32> to vector<158x1xf32>
    %cst_12 = arith.constant 3.200000e+01 : f32
    %17 = vector.broadcast %cst_12 : f32 to vector<158x1xf32>
    %18 = arith.divf %16, %17 : vector<158x1xf32>
    %19 = vector.broadcast %11 : vector<158x1xf32> to vector<158x32xf32>
    %20 = arith.subf %5, %19 : vector<158x32xf32>
    %cst_13 = arith.constant 9.99999974E-6 : f32
    %21 = vector.broadcast %cst_13 : f32 to vector<158x1xf32>
    %22 = arith.addf %18, %21 : vector<158x1xf32>
    %23 = math.rsqrt %22 : vector<158x1xf32>
    %24 = vector.broadcast %23 : vector<158x1xf32> to vector<158x32xf32>
    %25 = arith.mulf %20, %24 : vector<158x32xf32>
    %26 = vector.broadcast %6 : vector<1x32xf32> to vector<158x32xf32>
    %27 = arith.mulf %25, %26 : vector<158x32xf32>
    %28 = vector.broadcast %7 : vector<1x32xf32> to vector<158x32xf32>
    %29 = arith.addf %27, %28 : vector<158x32xf32>
    %30 = arith.mulf %29, %29 : vector<158x32xf32>
    %31 = arith.mulf %29, %30 : vector<158x32xf32>
    %cst_14 = arith.constant 4.471500e-02 : f32
    %32 = vector.broadcast %cst_14 : f32 to vector<158x32xf32>
    %33 = arith.mulf %32, %31 : vector<158x32xf32>
    %34 = arith.addf %29, %33 : vector<158x32xf32>
    %cst_15 = arith.constant 0.797884583 : f32
    %35 = vector.broadcast %cst_15 : f32 to vector<158x32xf32>
    %36 = arith.mulf %35, %34 : vector<158x32xf32>
    %37 = math.tanh %36 : vector<158x32xf32>
    %cst_16 = arith.constant 1.000000e+00 : f32
    %38 = vector.broadcast %cst_16 : f32 to vector<158x32xf32>
    %39 = arith.addf %38, %37 : vector<158x32xf32>
    %cst_17 = arith.constant 5.000000e-01 : f32
    %40 = vector.broadcast %cst_17 : f32 to vector<158x32xf32>
    %41 = arith.mulf %40, %39 : vector<158x32xf32>
    %42 = arith.mulf %29, %41 : vector<158x32xf32>
    %c0_18 = arith.constant 0 : index
    %c0_19 = arith.constant 0 : index
    %43 = vector.load %arg5[%c0_18, %c0_19] : memref<158x32xf32, #tpu.memory_space<vmem>>, vector<158x32xf32>
    tpu.vector_store %arg5[%c0_18, %c0_19], %42 {strides = array<i32>} : memref<158x32xf32, #tpu.memory_space<vmem>>, vector<158x32xf32>,
    return
  }
}

module attributes {stable_mosaic.version = 11 : i64} {
  func.func @_feature_head_kernel(%arg0: memref<2x19x64xf32, #tpu.memory_space<vmem>>, %arg1: memref<64x32xf32, #tpu.memory_space<vmem>>, %arg2: memref<1x32xf32, #tpu.memory_space<vmem>>, %arg3: memref<1x32xf32, #tpu.memory_space<vmem>>, %arg4: memref<1x32xf32, #tpu.memory_space<vmem>>, %arg5: memref<1x32xf32, #tpu.memory_space<vmem>>, %arg6: memref<1x32xf32, #tpu.memory_space<vmem>>, %arg7: memref<32x64xf32, #tpu.memory_space<vmem>>, %arg8: memref<1x64xf32, #tpu.memory_space<vmem>>, %arg9: memref<512x64xf32, #tpu.memory_space<vmem>>, %arg10: memref<1x64xf32, #tpu.memory_space<vmem>>, %arg11: memref<2x64xf32, #tpu.memory_space<vmem>>) attributes {dimension_semantics = [], scalar_prefetch = 0 : i64, scratch_operands = 0 : i64, tpu.core_type = #tpu.core_type<tc>} {
    %c0 = arith.constant 0 : index
    %c0_0 = arith.constant 0 : index
    %c0_1 = arith.constant 0 : index
    %0 = vector.load %arg0[%c0, %c0_0, %c0_1] : memref<2x19x64xf32, #tpu.memory_space<vmem>>, vector<1x19x64xf32>
    %1 = vector.shape_cast %0 : vector<1x19x64xf32> to vector<19x64xf32>
    %c0_2 = arith.constant 0 : index
    %c0_3 = arith.constant 0 : index
    %2 = vector.load %arg1[%c0_2, %c0_3] : memref<64x32xf32, #tpu.memory_space<vmem>>, vector<64x32xf32>
    %cst = arith.constant dense<0.000000e+00> : vector<19x32xf32>
    %3 = tpu.matmul %1, %2, %cst {dimension_numbers = #tpu.dot_dimension_numbers<[1], [0], [0], [1], [0, 0, 1, 1], [], []>} : vector<19x64xf32>, vector<64x32xf32>, vector<19x32xf32> -> vector<19x32xf32>
    %c0_4 = arith.constant 0 : index
    %c0_5 = arith.constant 0 : index
    %4 = vector.load %arg2[%c0_4, %c0_5] : memref<1x32xf32, #tpu.memory_space<vmem>>, vector<1x32xf32>
    %5 = vector.broadcast %4 : vector<1x32xf32> to vector<19x32xf32>
    %6 = arith.addf %3, %5 : vector<19x32xf32>
    %c0_6 = arith.constant 0 : index
    %c0_7 = arith.constant 0 : index
    %7 = vector.load %arg3[%c0_6, %c0_7] : memref<1x32xf32, #tpu.memory_space<vmem>>, vector<1x32xf32>
    %c0_8 = arith.constant 0 : index
    %c0_9 = arith.constant 0 : index
    %8 = vector.load %arg4[%c0_8, %c0_9] : memref<1x32xf32, #tpu.memory_space<vmem>>, vector<1x32xf32>
    %cst_10 = arith.constant dense<0.000000e+00> : vector<19xf32>
    %9 = vector.multi_reduction <add>, %6, %cst_10 [1] : vector<19x32xf32> to vector<19xf32>
    %10 = vector.shape_cast %9 : vector<19xf32> to vector<19x1xf32>
    %cst_11 = arith.constant 3.200000e+01 : f32
    %11 = vector.broadcast %cst_11 : f32 to vector<19x1xf32>
    %12 = arith.divf %10, %11 : vector<19x1xf32>
    %13 = vector.broadcast %12 : vector<19x1xf32> to vector<19x32xf32>
    %14 = arith.subf %6, %13 : vector<19x32xf32>
    %15 = arith.mulf %14, %14 : vector<19x32xf32>
    %cst_12 = arith.constant dense<0.000000e+00> : vector<19xf32>
    %16 = vector.multi_reduction <add>, %15, %cst_12 [1] : vector<19x32xf32> to vector<19xf32>
    %17 = vector.shape_cast %16 : vector<19xf32> to vector<19x1xf32>
    %cst_13 = arith.constant 3.200000e+01 : f32
    %18 = vector.broadcast %cst_13 : f32 to vector<19x1xf32>
    %19 = arith.divf %17, %18 : vector<19x1xf32>
    %20 = vector.broadcast %12 : vector<19x1xf32> to vector<19x32xf32>
    %21 = arith.subf %6, %20 : vector<19x32xf32>
    %cst_14 = arith.constant 9.99999974E-6 : f32
    %22 = vector.broadcast %cst_14 : f32 to vector<19x1xf32>
    %23 = arith.addf %19, %22 : vector<19x1xf32>
    %24 = math.rsqrt %23 : vector<19x1xf32>
    %25 = vector.broadcast %24 : vector<19x1xf32> to vector<19x32xf32>
    %26 = arith.mulf %21, %25 : vector<19x32xf32>
    %27 = vector.broadcast %7 : vector<1x32xf32> to vector<19x32xf32>
    %28 = arith.mulf %26, %27 : vector<19x32xf32>
    %29 = vector.broadcast %8 : vector<1x32xf32> to vector<19x32xf32>
    %30 = arith.addf %28, %29 : vector<19x32xf32>
    %31 = arith.mulf %30, %30 : vector<19x32xf32>
    %32 = arith.mulf %30, %31 : vector<19x32xf32>
    %cst_15 = arith.constant 4.471500e-02 : f32
    %33 = vector.broadcast %cst_15 : f32 to vector<19x32xf32>
    %34 = arith.mulf %33, %32 : vector<19x32xf32>
    %35 = arith.addf %30, %34 : vector<19x32xf32>
    %cst_16 = arith.constant 0.797884583 : f32
    %36 = vector.broadcast %cst_16 : f32 to vector<19x32xf32>
    %37 = arith.mulf %36, %35 : vector<19x32xf32>
    %38 = math.tanh %37 : vector<19x32xf32>
    %cst_17 = arith.constant 1.000000e+00 : f32
    %39 = vector.broadcast %cst_17 : f32 to vector<19x32xf32>
    %40 = arith.addf %39, %38 : vector<19x32xf32>
    %cst_18 = arith.constant 5.000000e-01 : f32
    %41 = vector.broadcast %cst_18 : f32 to vector<19x32xf32>
    %42 = arith.mulf %41, %40 : vector<19x32xf32>
    %43 = arith.mulf %30, %42 : vector<19x32xf32>
    %cst_19 = arith.constant dense<0.000000e+00> : vector<32xf32>
    %44 = vector.multi_reduction <add>, %43, %cst_19 [0] : vector<19x32xf32> to vector<32xf32>
    %45 = vector.shape_cast %44 : vector<32xf32> to vector<1x32xf32>
    %cst_20 = arith.constant 1.900000e+01 : f32
    %46 = vector.broadcast %cst_20 : f32 to vector<1x32xf32>
    %47 = arith.divf %45, %46 : vector<1x32xf32>
    %c1 = arith.constant 1 : index
    %c0_21 = arith.constant 0 : index
    %c0_22 = arith.constant 0 : index
    %48 = vector.load %arg0[%c1, %c0_21, %c0_22] : memref<2x19x64xf32, #tpu.memory_space<vmem>>, vector<1x19x64xf32>
    %49 = vector.shape_cast %48 : vector<1x19x64xf32> to vector<19x64xf32>
    %c0_23 = arith.constant 0 : index
    %c0_24 = arith.constant 0 : index
    %50 = vector.load %arg1[%c0_23, %c0_24] : memref<64x32xf32, #tpu.memory_space<vmem>>, vector<64x32xf32>
    %cst_25 = arith.constant dense<0.000000e+00> : vector<19x32xf32>
    %51 = tpu.matmul %49, %50, %cst_25 {dimension_numbers = #tpu.dot_dimension_numbers<[1], [0], [0], [1], [0, 0, 1, 1], [], []>} : vector<19x64xf32>, vector<64x32xf32>, vector<19x32xf32> -> vector<19x32xf32>
    %c0_26 = arith.constant 0 : index
    %c0_27 = arith.constant 0 : index
    %52 = vector.load %arg2[%c0_26, %c0_27] : memref<1x32xf32, #tpu.memory_space<vmem>>, vector<1x32xf32>
    %53 = vector.broadcast %52 : vector<1x32xf32> to vector<19x32xf32>
    %54 = arith.addf %51, %53 : vector<19x32xf32>
    %c0_28 = arith.constant 0 : index
    %c0_29 = arith.constant 0 : index
    %55 = vector.load %arg3[%c0_28, %c0_29] : memref<1x32xf32, #tpu.memory_space<vmem>>, vector<1x32xf32>
    %c0_30 = arith.constant 0 : index
    %c0_31 = arith.constant 0 : index
    %56 = vector.load %arg4[%c0_30, %c0_31] : memref<1x32xf32, #tpu.memory_space<vmem>>, vector<1x32xf32>
    %cst_32 = arith.constant dense<0.000000e+00> : vector<19xf32>
    %57 = vector.multi_reduction <add>, %54, %cst_32 [1] : vector<19x32xf32> to vector<19xf32>
    %58 = vector.shape_cast %57 : vector<19xf32> to vector<19x1xf32>
    %cst_33 = arith.constant 3.200000e+01 : f32
    %59 = vector.broadcast %cst_33 : f32 to vector<19x1xf32>
    %60 = arith.divf %58, %59 : vector<19x1xf32>
    %61 = vector.broadcast %60 : vector<19x1xf32> to vector<19x32xf32>
    %62 = arith.subf %54, %61 : vector<19x32xf32>
    %63 = arith.mulf %62, %62 : vector<19x32xf32>
    %cst_34 = arith.constant dense<0.000000e+00> : vector<19xf32>
    %64 = vector.multi_reduction <add>, %63, %cst_34 [1] : vector<19x32xf32> to vector<19xf32>
    %65 = vector.shape_cast %64 : vector<19xf32> to vector<19x1xf32>
    %cst_35 = arith.constant 3.200000e+01 : f32
    %66 = vector.broadcast %cst_35 : f32 to vector<19x1xf32>
    %67 = arith.divf %65, %66 : vector<19x1xf32>
    %68 = vector.broadcast %60 : vector<19x1xf32> to vector<19x32xf32>
    %69 = arith.subf %54, %68 : vector<19x32xf32>
    %cst_36 = arith.constant 9.99999974E-6 : f32
    %70 = vector.broadcast %cst_36 : f32 to vector<19x1xf32>
    %71 = arith.addf %67, %70 : vector<19x1xf32>
    %72 = math.rsqrt %71 : vector<19x1xf32>
    %73 = vector.broadcast %72 : vector<19x1xf32> to vector<19x32xf32>
    %74 = arith.mulf %69, %73 : vector<19x32xf32>
    %75 = vector.broadcast %55 : vector<1x32xf32> to vector<19x32xf32>
    %76 = arith.mulf %74, %75 : vector<19x32xf32>
    %77 = vector.broadcast %56 : vector<1x32xf32> to vector<19x32xf32>
    %78 = arith.addf %76, %77 : vector<19x32xf32>
    %79 = arith.mulf %78, %78 : vector<19x32xf32>
    %80 = arith.mulf %78, %79 : vector<19x32xf32>
    %cst_37 = arith.constant 4.471500e-02 : f32
    %81 = vector.broadcast %cst_37 : f32 to vector<19x32xf32>
    %82 = arith.mulf %81, %80 : vector<19x32xf32>
    %83 = arith.addf %78, %82 : vector<19x32xf32>
    %cst_38 = arith.constant 0.797884583 : f32
    %84 = vector.broadcast %cst_38 : f32 to vector<19x32xf32>
    %85 = arith.mulf %84, %83 : vector<19x32xf32>
    %86 = math.tanh %85 : vector<19x32xf32>
    %cst_39 = arith.constant 1.000000e+00 : f32
    %87 = vector.broadcast %cst_39 : f32 to vector<19x32xf32>
    %88 = arith.addf %87, %86 : vector<19x32xf32>
    %cst_40 = arith.constant 5.000000e-01 : f32
    %89 = vector.broadcast %cst_40 : f32 to vector<19x32xf32>
    %90 = arith.mulf %89, %88 : vector<19x32xf32>
    %91 = arith.mulf %78, %90 : vector<19x32xf32>
    %cst_41 = arith.constant dense<0.000000e+00> : vector<32xf32>
    %92 = vector.multi_reduction <add>, %91, %cst_41 [0] : vector<19x32xf32> to vector<32xf32>
    %93 = vector.shape_cast %92 : vector<32xf32> to vector<1x32xf32>
    %cst_42 = arith.constant 1.900000e+01 : f32
    %94 = vector.broadcast %cst_42 : f32 to vector<1x32xf32>
    %95 = arith.divf %93, %94 : vector<1x32xf32>
    %96 = tpu.concatenate %47, %95 in 0 : vector<1x32xf32>, vector<1x32xf32> -> vector<2x32xf32>
    %c0_43 = arith.constant 0 : index
    %c0_44 = arith.constant 0 : index
    %97 = vector.load %arg5[%c0_43, %c0_44] : memref<1x32xf32, #tpu.memory_space<vmem>>, vector<1x32xf32>
    %c0_45 = arith.constant 0 : index
    %c0_46 = arith.constant 0 : index
    %98 = vector.load %arg6[%c0_45, %c0_46] : memref<1x32xf32, #tpu.memory_space<vmem>>, vector<1x32xf32>
    %cst_47 = arith.constant dense<0.000000e+00> : vector<2xf32>
    %99 = vector.multi_reduction <add>, %96, %cst_47 [1] : vector<2x32xf32> to vector<2xf32>
    %100 = vector.shape_cast %99 : vector<2xf32> to vector<2x1xf32>
    %cst_48 = arith.constant 3.200000e+01 : f32
    %101 = vector.broadcast %cst_48 : f32 to vector<2x1xf32>
    %102 = arith.divf %100, %101 : vector<2x1xf32>
    %103 = vector.broadcast %102 : vector<2x1xf32> to vector<2x32xf32>
    %104 = arith.subf %96, %103 : vector<2x32xf32>
    %105 = arith.mulf %104, %104 : vector<2x32xf32>
    %cst_49 = arith.constant dense<0.000000e+00> : vector<2xf32>
    %106 = vector.multi_reduction <add>, %105, %cst_49 [1] : vector<2x32xf32> to vector<2xf32>
    %107 = vector.shape_cast %106 : vector<2xf32> to vector<2x1xf32>
    %cst_50 = arith.constant 3.200000e+01 : f32
    %108 = vector.broadcast %cst_50 : f32 to vector<2x1xf32>
    %109 = arith.divf %107, %108 : vector<2x1xf32>
    %110 = vector.broadcast %102 : vector<2x1xf32> to vector<2x32xf32>
    %111 = arith.subf %96, %110 : vector<2x32xf32>
    %cst_51 = arith.constant 9.99999974E-6 : f32
    %112 = vector.broadcast %cst_51 : f32 to vector<2x1xf32>
    %113 = arith.addf %109, %112 : vector<2x1xf32>
    %114 = math.rsqrt %113 : vector<2x1xf32>
    %115 = vector.broadcast %114 : vector<2x1xf32> to vector<2x32xf32>
    %116 = arith.mulf %111, %115 : vector<2x32xf32>
    %117 = vector.broadcast %97 : vector<1x32xf32> to vector<2x32xf32>
    %118 = arith.mulf %116, %117 : vector<2x32xf32>
    %119 = vector.broadcast %98 : vector<1x32xf32> to vector<2x32xf32>
    %120 = arith.addf %118, %119 : vector<2x32xf32>
    %c0_52 = arith.constant 0 : index
    %c0_53 = arith.constant 0 : index
    %121 = vector.load %arg7[%c0_52, %c0_53] : memref<32x64xf32, #tpu.memory_space<vmem>>, vector<32x64xf32>
    %cst_54 = arith.constant dense<0.000000e+00> : vector<2x64xf32>
    %122 = tpu.matmul %120, %121, %cst_54 {dimension_numbers = #tpu.dot_dimension_numbers<[1], [0], [0], [1], [0, 0, 1, 1], [], []>} : vector<2x32xf32>, vector<32x64xf32>, vector<2x64xf32> -> vector<2x64xf32>
    %c0_55 = arith.constant 0 : index
    %c0_56 = arith.constant 0 : index
    %123 = vector.load %arg8[%c0_55, %c0_56] : memref<1x64xf32, #tpu.memory_space<vmem>>, vector<1x64xf32>
    %124 = vector.broadcast %123 : vector<1x64xf32> to vector<2x64xf32>
    %125 = arith.addf %122, %124 : vector<2x64xf32>
    %cst_57 = arith.constant 0.000000e+00 : f32
    %126 = vector.broadcast %cst_57 : f32 to vector<4x64xf32>
    %127 = tpu.concatenate %126, %125, %126 in 0 : vector<4x64xf32>, vector<2x64xf32>, vector<4x64xf32> -> vector<10x64xf32>
    %cst_58 = arith.constant 0.000000e+00 : f32
    %128 = vector.broadcast %cst_58 : f32 to vector<3x64xf32>
    %c0_59 = arith.constant 0 : index
    %c0_60 = arith.constant 0 : index
    %129 = vector.load %arg10[%c0_59, %c0_60] : memref<1x64xf32, #tpu.memory_space<vmem>>, vector<1x64xf32>
    %130 = vector.broadcast %129 : vector<1x64xf32> to vector<3x64xf32>
    %131 = arith.addf %128, %130 : vector<3x64xf32>
    %132 = vector.extract_strided_slice %127 {offsets = [0, 0], sizes = [3, 64], strides = [1, 1]} : vector<10x64xf32> to vector<3x64xf32>
    %c0_61 = arith.constant 0 : index
    %c0_62 = arith.constant 0 : index
    %133 = vector.load %arg9[%c0_61, %c0_62] : memref<512x64xf32, #tpu.memory_space<vmem>>, vector<64x64xf32>
    %cst_63 = arith.constant dense<0.000000e+00> : vector<3x64xf32>
    %134 = tpu.matmul %132, %133, %cst_63 {dimension_numbers = #tpu.dot_dimension_numbers<[1], [0], [0], [1], [0, 0, 1, 1], [], []>} : vector<3x64xf32>, vector<64x64xf32>, vector<3x64xf32> -> vector<3x64xf32>
    %135 = arith.addf %131, %134 : vector<3x64xf32>
    %136 = vector.extract_strided_slice %127 {offsets = [1, 0], sizes = [3, 64], strides = [1, 1]} : vector<10x64xf32> to vector<3x64xf32>
    %c64 = arith.constant 64 : index
    %c0_64 = arith.constant 0 : index
    %137 = vector.load %arg9[%c64, %c0_64] : memref<512x64xf32, #tpu.memory_space<vmem>>, vector<64x64xf32>
    %cst_65 = arith.constant dense<0.000000e+00> : vector<3x64xf32>
    %138 = tpu.matmul %136, %137, %cst_65 {dimension_numbers = #tpu.dot_dimension_numbers<[1], [0], [0], [1], [0, 0, 1, 1], [], []>} : vector<3x64xf32>, vector<64x64xf32>, vector<3x64xf32> -> vector<3x64xf32>
    %139 = arith.addf %135, %138 : vector<3x64xf32>
    %140 = vector.extract_strided_slice %127 {offsets = [2, 0], sizes = [3, 64], strides = [1, 1]} : vector<10x64xf32> to vector<3x64xf32>
    %c128 = arith.constant 128 : index
    %c0_66 = arith.constant 0 : index
    %141 = vector.load %arg9[%c128, %c0_66] : memref<512x64xf32, #tpu.memory_space<vmem>>, vector<64x64xf32>
    %cst_67 = arith.constant dense<0.000000e+00> : vector<3x64xf32>
    %142 = tpu.matmul %140, %141, %cst_67 {dimension_numbers = #tpu.dot_dimension_numbers<[1], [0], [0], [1], [0, 0, 1, 1], [], []>} : vector<3x64xf32>, vector<64x64xf32>, vector<3x64xf32> -> vector<3x64xf32>
    %143 = arith.addf %139, %142 : vector<3x64xf32>
    %144 = vector.extract_strided_slice %127 {offsets = [3, 0], sizes = [3, 64], strides = [1, 1]} : vector<10x64xf32> to vector<3x64xf32>
    %c192 = arith.constant 192 : index
    %c0_68 = arith.constant 0 : index
    %145 = vector.load %arg9[%c192, %c0_68] : memref<512x64xf32, #tpu.memory_space<vmem>>, vector<64x64xf32>
    %cst_69 = arith.constant dense<0.000000e+00> : vector<3x64xf32>
    %146 = tpu.matmul %144, %145, %cst_69 {dimension_numbers = #tpu.dot_dimension_numbers<[1], [0], [0], [1], [0, 0, 1, 1], [], []>} : vector<3x64xf32>, vector<64x64xf32>, vector<3x64xf32> -> vector<3x64xf32>
    %147 = arith.addf %143, %146 : vector<3x64xf32>
    %148 = vector.extract_strided_slice %127 {offsets = [4, 0], sizes = [3, 64], strides = [1, 1]} : vector<10x64xf32> to vector<3x64xf32>
    %c256 = arith.constant 256 : index
    %c0_70 = arith.constant 0 : index
    %149 = vector.load %arg9[%c256, %c0_70] : memref<512x64xf32, #tpu.memory_space<vmem>>, vector<64x64xf32>
    %cst_71 = arith.constant dense<0.000000e+00> : vector<3x64xf32>
    %150 = tpu.matmul %148, %149, %cst_71 {dimension_numbers = #tpu.dot_dimension_numbers<[1], [0], [0], [1], [0, 0, 1, 1], [], []>} : vector<3x64xf32>, vector<64x64xf32>, vector<3x64xf32> -> vector<3x64xf32>
    %151 = arith.addf %147, %150 : vector<3x64xf32>
    %152 = vector.extract_strided_slice %127 {offsets = [5, 0], sizes = [3, 64], strides = [1, 1]} : vector<10x64xf32> to vector<3x64xf32>
    %c320 = arith.constant 320 : index
    %c0_72 = arith.constant 0 : index
    %153 = vector.load %arg9[%c320, %c0_72] : memref<512x64xf32, #tpu.memory_space<vmem>>, vector<64x64xf32>
    %cst_73 = arith.constant dense<0.000000e+00> : vector<3x64xf32>
    %154 = tpu.matmul %152, %153, %cst_73 {dimension_numbers = #tpu.dot_dimension_numbers<[1], [0], [0], [1], [0, 0, 1, 1], [], []>} : vector<3x64xf32>, vector<64x64xf32>, vector<3x64xf32> -> vector<3x64xf32>
    %155 = arith.addf %151, %154 : vector<3x64xf32>
    %156 = vector.extract_strided_slice %127 {offsets = [6, 0], sizes = [3, 64], strides = [1, 1]} : vector<10x64xf32> to vector<3x64xf32>
    %c384 = arith.constant 384 : index
    %c0_74 = arith.constant 0 : index
    %157 = vector.load %arg9[%c384, %c0_74] : memref<512x64xf32, #tpu.memory_space<vmem>>, vector<64x64xf32>
    %cst_75 = arith.constant dense<0.000000e+00> : vector<3x64xf32>
    %158 = tpu.matmul %156, %157, %cst_75 {dimension_numbers = #tpu.dot_dimension_numbers<[1], [0], [0], [1], [0, 0, 1, 1], [], []>} : vector<3x64xf32>, vector<64x64xf32>, vector<3x64xf32> -> vector<3x64xf32>
    %159 = arith.addf %155, %158 : vector<3x64xf32>
    %160 = vector.extract_strided_slice %127 {offsets = [7, 0], sizes = [3, 64], strides = [1, 1]} : vector<10x64xf32> to vector<3x64xf32>
    %c448 = arith.constant 448 : index
    %c0_76 = arith.constant 0 : index
    %161 = vector.load %arg9[%c448, %c0_76] : memref<512x64xf32, #tpu.memory_space<vmem>>, vector<64x64xf32>
    %cst_77 = arith.constant dense<0.000000e+00> : vector<3x64xf32>
    %162 = tpu.matmul %160, %161, %cst_77 {dimension_numbers = #tpu.dot_dimension_numbers<[1], [0], [0], [1], [0, 0, 1, 1], [], []>} : vector<3x64xf32>, vector<64x64xf32>, vector<3x64xf32> -> vector<3x64xf32>
    %163 = arith.addf %159, %162 : vector<3x64xf32>
    %164 = arith.mulf %163, %163 : vector<3x64xf32>
    %165 = arith.mulf %163, %164 : vector<3x64xf32>
    %cst_78 = arith.constant 4.471500e-02 : f32
    %166 = vector.broadcast %cst_78 : f32 to vector<3x64xf32>
    %167 = arith.mulf %166, %165 : vector<3x64xf32>
    %168 = arith.addf %163, %167 : vector<3x64xf32>
    %cst_79 = arith.constant 0.797884583 : f32
    %169 = vector.broadcast %cst_79 : f32 to vector<3x64xf32>
    %170 = arith.mulf %169, %168 : vector<3x64xf32>
    %171 = math.tanh %170 : vector<3x64xf32>
    %cst_80 = arith.constant 1.000000e+00 : f32
    %172 = vector.broadcast %cst_80 : f32 to vector<3x64xf32>
    %173 = arith.addf %172, %171 : vector<3x64xf32>
    %cst_81 = arith.constant 5.000000e-01 : f32
    %174 = vector.broadcast %cst_81 : f32 to vector<3x64xf32>
    %175 = arith.mulf %174, %173 : vector<3x64xf32>
    %176 = arith.mulf %163, %175 : vector<3x64xf32>
    %177 = vector.extract_strided_slice %176 {offsets = [0, 0], sizes = [2, 64], strides = [1, 1]} : vector<3x64xf32> to vector<2x64xf32>
    %178 = arith.addf %125, %177 : vector<2x64xf32>
    %c0_82 = arith.constant 0 : index
    %c0_83 = arith.constant 0 : index
    %179 = vector.load %arg11[%c0_82, %c0_83] : memref<2x64xf32, #tpu.memory_space<vmem>>, vector<2x64xf32>
    tpu.vector_store %arg11[%c0_82, %c0_83], %178 {strides = array<i32>} : memref<2x64xf32, #tpu.memory_space<vmem>>, vector<2x64xf32>,
    return
  }
}

module attributes {stable_mosaic.version = 11 : i64} {
  func.func @_encoder_kernel(%arg0: i32, %arg1: memref<2x64xf32, #tpu.memory_space<vmem>>, %arg2: memref<64x64xf32, #tpu.memory_space<vmem>>, %arg3: memref<1x4x64xf32, #tpu.memory_space<vmem>>, %arg4: memref<1x64x192xf32, #tpu.memory_space<vmem>>, %arg5: memref<1x1x192xf32, #tpu.memory_space<vmem>>, %arg6: memref<1x64x64xf32, #tpu.memory_space<vmem>>, %arg7: memref<1x1x64xf32, #tpu.memory_space<vmem>>, %arg8: memref<1x64x256xf32, #tpu.memory_space<vmem>>, %arg9: memref<1x1x256xf32, #tpu.memory_space<vmem>>, %arg10: memref<1x256x64xf32, #tpu.memory_space<vmem>>, %arg11: memref<1x1x64xf32, #tpu.memory_space<vmem>>, %arg12: memref<2x64xf32, #tpu.memory_space<vmem>>, %arg13: memref<2x64xf32, #tpu.memory_space<vmem>>, %arg14: memref<2x64xf32, #tpu.memory_space<vmem>>) attributes {dimension_semantics = [#tpu.dimension_semantics<arbitrary>], iteration_bounds = array<i64: 5>, scalar_prefetch = 0 : i64, scratch_operands = 1 : i64, tpu.core_type = #tpu.core_type<tc>, window_params = [{pipeline_mode = #tpu.pipeline_mode<synchronous>, transform_indices = @transform_0, window_bounds = array<i64: 2, 64>}, {pipeline_mode = #tpu.pipeline_mode<synchronous>, transform_indices = @transform_1, window_bounds = array<i64: 64, 64>}, {transform_indices = @transform_2, window_bounds = array<i64: 1, 4, 64>}, {transform_indices = @transform_3, window_bounds = array<i64: 1, 64, 192>}, {transform_indices = @transform_4, window_bounds = array<i64: 1, 1, 192>}, {transform_indices = @transform_5, window_bounds = array<i64: 1, 64, 64>}, {transform_indices = @transform_6, window_bounds = array<i64: 1, 1, 64>}, {transform_indices = @transform_7, window_bounds = array<i64: 1, 64, 256>}, {transform_indices = @transform_8, window_bounds = array<i64: 1, 1, 256>}, {transform_indices = @transform_9, window_bounds = array<i64: 1, 256, 64>}, {transform_indices = @transform_10, window_bounds = array<i64: 1, 1, 64>}, {pipeline_mode = #tpu.pipeline_mode<synchronous>, transform_indices = @transform_11, window_bounds = array<i64: 2, 64>}, {pipeline_mode = #tpu.pipeline_mode<synchronous>, transform_indices = @transform_12, window_bounds = array<i64: 2, 64>}]} {
    %c0_i32 = arith.constant 0 : i32
    %0 = arith.cmpi eq, %arg0, %c0_i32 : i32
    %1 = arith.extui %0 : i1 to i32
    %c0_i32_0 = arith.constant 0 : i32
    %2 = arith.cmpi ne, %1, %c0_i32_0 : i32
    scf.if %2 {
      %c0_55 = arith.constant 0 : index
      %c0_56 = arith.constant 0 : index
      %129 = vector.load %arg1[%c0_55, %c0_56] : memref<2x64xf32, #tpu.memory_space<vmem>>, vector<2x64xf32>
      %c0_57 = arith.constant 0 : index
      %c0_58 = arith.constant 0 : index
      %130 = vector.load %arg14[%c0_57, %c0_58] : memref<2x64xf32, #tpu.memory_space<vmem>>, vector<2x64xf32>
      tpu.vector_store %arg14[%c0_57, %c0_58], %129 {strides = array<i32>} : memref<2x64xf32, #tpu.memory_space<vmem>>, vector<2x64xf32>,
    } else {
    }
    %c0 = arith.constant 0 : index
    %c0_1 = arith.constant 0 : index
    %3 = vector.load %arg14[%c0, %c0_1] : memref<2x64xf32, #tpu.memory_space<vmem>>, vector<2x64xf32>
    %c0_2 = arith.constant 0 : index
    %c0_3 = arith.constant 0 : index
    %c0_4 = arith.constant 0 : index
    %4 = vector.load %arg3[%c0_2, %c0_3, %c0_4] : memref<1x4x64xf32, #tpu.memory_space<vmem>>, vector<1x4x64xf32>
    %5 = vector.shape_cast %4 : vector<1x4x64xf32> to vector<4x64xf32>
    %6 = vector.extract_strided_slice %5 {offsets = [0, 0], sizes = [1, 64], strides = [1, 1]} : vector<4x64xf32> to vector<1x64xf32>
    %7 = vector.extract_strided_slice %5 {offsets = [1, 0], sizes = [1, 64], strides = [1, 1]} : vector<4x64xf32> to vector<1x64xf32>
    %cst = arith.constant dense<0.000000e+00> : vector<2xf32>
    %8 = vector.multi_reduction <add>, %3, %cst [1] : vector<2x64xf32> to vector<2xf32>
    %9 = vector.shape_cast %8 : vector<2xf32> to vector<2x1xf32>
    %cst_5 = arith.constant 6.400000e+01 : f32
    %10 = vector.broadcast %cst_5 : f32 to vector<2x1xf32>
    %11 = arith.divf %9, %10 : vector<2x1xf32>
    %12 = vector.broadcast %11 : vector<2x1xf32> to vector<2x64xf32>
    %13 = arith.subf %3, %12 : vector<2x64xf32>
    %14 = arith.mulf %13, %13 : vector<2x64xf32>
    %cst_6 = arith.constant dense<0.000000e+00> : vector<2xf32>
    %15 = vector.multi_reduction <add>, %14, %cst_6 [1] : vector<2x64xf32> to vector<2xf32>
    %16 = vector.shape_cast %15 : vector<2xf32> to vector<2x1xf32>
    %cst_7 = arith.constant 6.400000e+01 : f32
    %17 = vector.broadcast %cst_7 : f32 to vector<2x1xf32>
    %18 = arith.divf %16, %17 : vector<2x1xf32>
    %19 = vector.broadcast %11 : vector<2x1xf32> to vector<2x64xf32>
    %20 = arith.subf %3, %19 : vector<2x64xf32>
    %cst_8 = arith.constant 9.99999974E-6 : f32
    %21 = vector.broadcast %cst_8 : f32 to vector<2x1xf32>
    %22 = arith.addf %18, %21 : vector<2x1xf32>
    %23 = math.rsqrt %22 : vector<2x1xf32>
    %24 = vector.broadcast %23 : vector<2x1xf32> to vector<2x64xf32>
    %25 = arith.mulf %20, %24 : vector<2x64xf32>
    %26 = vector.broadcast %6 : vector<1x64xf32> to vector<2x64xf32>
    %27 = arith.mulf %25, %26 : vector<2x64xf32>
    %28 = vector.broadcast %7 : vector<1x64xf32> to vector<2x64xf32>
    %29 = arith.addf %27, %28 : vector<2x64xf32>
    %c0_9 = arith.constant 0 : index
    %c0_10 = arith.constant 0 : index
    %c0_11 = arith.constant 0 : index
    %30 = vector.load %arg4[%c0_9, %c0_10, %c0_11] : memref<1x64x192xf32, #tpu.memory_space<vmem>>, vector<1x64x192xf32>
    %31 = vector.shape_cast %30 : vector<1x64x192xf32> to vector<64x192xf32>
    %cst_12 = arith.constant dense<0.000000e+00> : vector<2x192xf32>
    %32 = tpu.matmul %29, %31, %cst_12 {dimension_numbers = #tpu.dot_dimension_numbers<[1], [0], [0], [1], [0, 0, 1, 1], [], []>} : vector<2x64xf32>, vector<64x192xf32>, vector<2x192xf32> -> vector<2x192xf32>
    %c0_13 = arith.constant 0 : index
    %c0_14 = arith.constant 0 : index
    %c0_15 = arith.constant 0 : index
    %33 = vector.load %arg5[%c0_13, %c0_14, %c0_15] : memref<1x1x192xf32, #tpu.memory_space<vmem>>, vector<1x1x192xf32>
    %34 = vector.shape_cast %33 : vector<1x1x192xf32> to vector<1x192xf32>
    %35 = vector.broadcast %34 : vector<1x192xf32> to vector<2x192xf32>
    %36 = arith.addf %32, %35 : vector<2x192xf32>
    %37 = vector.extract_strided_slice %36 {offsets = [0, 0], sizes = [2, 64], strides = [1, 1]} : vector<2x192xf32> to vector<2x64xf32>
    %38 = vector.extract_strided_slice %36 {offsets = [0, 64], sizes = [2, 64], strides = [1, 1]} : vector<2x192xf32> to vector<2x64xf32>
    %39 = vector.extract_strided_slice %36 {offsets = [0, 128], sizes = [2, 64], strides = [1, 1]} : vector<2x192xf32> to vector<2x64xf32>
    %c0_16 = arith.constant 0 : index
    %c0_17 = arith.constant 0 : index
    %40 = vector.load %arg2[%c0_16, %c0_17] : memref<64x64xf32, #tpu.memory_space<vmem>>, vector<64x64xf32>
    %41 = vector.extract_strided_slice %38 {offsets = [0, 0], sizes = [1, 64], strides = [1, 1]} : vector<2x64xf32> to vector<1x64xf32>
    %42 = vector.broadcast %41 : vector<1x64xf32> to vector<2x64xf32>
    %43 = arith.mulf %37, %42 : vector<2x64xf32>
    %cst_18 = arith.constant dense<0.000000e+00> : vector<2x64xf32>
    %44 = tpu.matmul %43, %40, %cst_18 {dimension_numbers = #tpu.dot_dimension_numbers<[1], [0], [0], [1], [0, 0, 1, 1], [], []>} : vector<2x64xf32>, vector<64x64xf32>, vector<2x64xf32> -> vector<2x64xf32>
    %45 = vector.extract_strided_slice %38 {offsets = [1, 0], sizes = [1, 64], strides = [1, 1]} : vector<2x64xf32> to vector<1x64xf32>
    %46 = vector.broadcast %45 : vector<1x64xf32> to vector<2x64xf32>
    %47 = arith.mulf %37, %46 : vector<2x64xf32>
    %cst_19 = arith.constant dense<0.000000e+00> : vector<2x64xf32>
    %48 = tpu.matmul %47, %40, %cst_19 {dimension_numbers = #tpu.dot_dimension_numbers<[1], [0], [0], [1], [0, 0, 1, 1], [], []>} : vector<2x64xf32>, vector<64x64xf32>, vector<2x64xf32> -> vector<2x64xf32>
    %49 = arith.maximumf %44, %48 : vector<2x64xf32>
    %50 = arith.subf %44, %49 : vector<2x64xf32>
    %51 = math.exp %50 : vector<2x64xf32>
    %52 = arith.subf %48, %49 : vector<2x64xf32>
    %53 = math.exp %52 : vector<2x64xf32>
    %54 = arith.addf %51, %53 : vector<2x64xf32>
    %55 = vector.extract_strided_slice %39 {offsets = [0, 0], sizes = [1, 64], strides = [1, 1]} : vector<2x64xf32> to vector<1x64xf32>
    %56 = vector.broadcast %55 : vector<1x64xf32> to vector<2x64xf32>
    %57 = arith.mulf %51, %56 : vector<2x64xf32>
    %58 = vector.extract_strided_slice %39 {offsets = [1, 0], sizes = [1, 64], strides = [1, 1]} : vector<2x64xf32> to vector<1x64xf32>
    %59 = vector.broadcast %58 : vector<1x64xf32> to vector<2x64xf32>
    %60 = arith.mulf %53, %59 : vector<2x64xf32>
    %61 = arith.addf %57, %60 : vector<2x64xf32>
    %62 = tpu.reciprocal %54 {approx = true} : vector<2x64xf32> -> vector<2x64xf32>
    %63 = arith.mulf %61, %62 : vector<2x64xf32>
    %c0_20 = arith.constant 0 : index
    %c0_21 = arith.constant 0 : index
    %c0_22 = arith.constant 0 : index
    %64 = vector.load %arg6[%c0_20, %c0_21, %c0_22] : memref<1x64x64xf32, #tpu.memory_space<vmem>>, vector<1x64x64xf32>
    %65 = vector.shape_cast %64 : vector<1x64x64xf32> to vector<64x64xf32>
    %cst_23 = arith.constant dense<0.000000e+00> : vector<2x64xf32>
    %66 = tpu.matmul %63, %65, %cst_23 {dimension_numbers = #tpu.dot_dimension_numbers<[1], [0], [0], [1], [0, 0, 1, 1], [], []>} : vector<2x64xf32>, vector<64x64xf32>, vector<2x64xf32> -> vector<2x64xf32>
    %c0_24 = arith.constant 0 : index
    %c0_25 = arith.constant 0 : index
    %c0_26 = arith.constant 0 : index
    %67 = vector.load %arg7[%c0_24, %c0_25, %c0_26] : memref<1x1x64xf32, #tpu.memory_space<vmem>>, vector<1x1x64xf32>
    %68 = vector.shape_cast %67 : vector<1x1x64xf32> to vector<1x64xf32>
    %69 = vector.broadcast %68 : vector<1x64xf32> to vector<2x64xf32>
    %70 = arith.addf %66, %69 : vector<2x64xf32>
    %71 = arith.addf %3, %70 : vector<2x64xf32>
    %72 = vector.extract_strided_slice %5 {offsets = [2, 0], sizes = [1, 64], strides = [1, 1]} : vector<4x64xf32> to vector<1x64xf32>
    %73 = vector.extract_strided_slice %5 {offsets = [3, 0], sizes = [1, 64], strides = [1, 1]} : vector<4x64xf32> to vector<1x64xf32>
    %cst_27 = arith.constant dense<0.000000e+00> : vector<2xf32>
    %74 = vector.multi_reduction <add>, %71, %cst_27 [1] : vector<2x64xf32> to vector<2xf32>
    %75 = vector.shape_cast %74 : vector<2xf32> to vector<2x1xf32>
    %cst_28 = arith.constant 6.400000e+01 : f32
    %76 = vector.broadcast %cst_28 : f32 to vector<2x1xf32>
    %77 = arith.divf %75, %76 : vector<2x1xf32>
    %78 = vector.broadcast %77 : vector<2x1xf32> to vector<2x64xf32>
    %79 = arith.subf %71, %78 : vector<2x64xf32>
    %80 = arith.mulf %79, %79 : vector<2x64xf32>
    %cst_29 = arith.constant dense<0.000000e+00> : vector<2xf32>
    %81 = vector.multi_reduction <add>, %80, %cst_29 [1] : vector<2x64xf32> to vector<2xf32>
    %82 = vector.shape_cast %81 : vector<2xf32> to vector<2x1xf32>
    %cst_30 = arith.constant 6.400000e+01 : f32
    %83 = vector.broadcast %cst_30 : f32 to vector<2x1xf32>
    %84 = arith.divf %82, %83 : vector<2x1xf32>
    %85 = vector.broadcast %77 : vector<2x1xf32> to vector<2x64xf32>
    %86 = arith.subf %71, %85 : vector<2x64xf32>
    %cst_31 = arith.constant 9.99999974E-6 : f32
    %87 = vector.broadcast %cst_31 : f32 to vector<2x1xf32>
    %88 = arith.addf %84, %87 : vector<2x1xf32>
    %89 = math.rsqrt %88 : vector<2x1xf32>
    %90 = vector.broadcast %89 : vector<2x1xf32> to vector<2x64xf32>
    %91 = arith.mulf %86, %90 : vector<2x64xf32>
    %92 = vector.broadcast %72 : vector<1x64xf32> to vector<2x64xf32>
    %93 = arith.mulf %91, %92 : vector<2x64xf32>
    %94 = vector.broadcast %73 : vector<1x64xf32> to vector<2x64xf32>
    %95 = arith.addf %93, %94 : vector<2x64xf32>
    %c0_32 = arith.constant 0 : index
    %c0_33 = arith.constant 0 : index
    %c0_34 = arith.constant 0 : index
    %96 = vector.load %arg8[%c0_32, %c0_33, %c0_34] : memref<1x64x256xf32, #tpu.memory_space<vmem>>, vector<1x64x256xf32>
    %97 = vector.shape_cast %96 : vector<1x64x256xf32> to vector<64x256xf32>
    %cst_35 = arith.constant dense<0.000000e+00> : vector<2x256xf32>
    %98 = tpu.matmul %95, %97, %cst_35 {dimension_numbers = #tpu.dot_dimension_numbers<[1], [0], [0], [1], [0, 0, 1, 1], [], []>} : vector<2x64xf32>, vector<64x256xf32>, vector<2x256xf32> -> vector<2x256xf32>
    %c0_36 = arith.constant 0 : index
    %c0_37 = arith.constant 0 : index
    %c0_38 = arith.constant 0 : index
    %99 = vector.load %arg9[%c0_36, %c0_37, %c0_38] : memref<1x1x256xf32, #tpu.memory_space<vmem>>, vector<1x1x256xf32>
    %100 = vector.shape_cast %99 : vector<1x1x256xf32> to vector<1x256xf32>
    %101 = vector.broadcast %100 : vector<1x256xf32> to vector<2x256xf32>
    %102 = arith.addf %98, %101 : vector<2x256xf32>
    %103 = arith.mulf %102, %102 : vector<2x256xf32>
    %104 = arith.mulf %102, %103 : vector<2x256xf32>
    %cst_39 = arith.constant 4.471500e-02 : f32
    %105 = vector.broadcast %cst_39 : f32 to vector<2x256xf32>
    %106 = arith.mulf %105, %104 : vector<2x256xf32>
    %107 = arith.addf %102, %106 : vector<2x256xf32>
    %cst_40 = arith.constant 0.797884583 : f32
    %108 = vector.broadcast %cst_40 : f32 to vector<2x256xf32>
    %109 = arith.mulf %108, %107 : vector<2x256xf32>
    %110 = math.tanh %109 : vector<2x256xf32>
    %cst_41 = arith.constant 1.000000e+00 : f32
    %111 = vector.broadcast %cst_41 : f32 to vector<2x256xf32>
    %112 = arith.addf %111, %110 : vector<2x256xf32>
    %cst_42 = arith.constant 5.000000e-01 : f32
    %113 = vector.broadcast %cst_42 : f32 to vector<2x256xf32>
    %114 = arith.mulf %113, %112 : vector<2x256xf32>
    %115 = arith.mulf %102, %114 : vector<2x256xf32>
    %c0_43 = arith.constant 0 : index
    %c0_44 = arith.constant 0 : index
    %c0_45 = arith.constant 0 : index
    %116 = vector.load %arg10[%c0_43, %c0_44, %c0_45] : memref<1x256x64xf32, #tpu.memory_space<vmem>>, vector<1x256x64xf32>
    %117 = vector.shape_cast %116 : vector<1x256x64xf32> to vector<256x64xf32>
    %cst_46 = arith.constant dense<0.000000e+00> : vector<2x64xf32>
    %118 = tpu.matmul %115, %117, %cst_46 {dimension_numbers = #tpu.dot_dimension_numbers<[1], [0], [0], [1], [0, 0, 1, 1], [], []>} : vector<2x256xf32>, vector<256x64xf32>, vector<2x64xf32> -> vector<2x64xf32>
    %c0_47 = arith.constant 0 : index
    %c0_48 = arith.constant 0 : index
    %c0_49 = arith.constant 0 : index
    %119 = vector.load %arg11[%c0_47, %c0_48, %c0_49] : memref<1x1x64xf32, #tpu.memory_space<vmem>>, vector<1x1x64xf32>
    %120 = vector.shape_cast %119 : vector<1x1x64xf32> to vector<1x64xf32>
    %121 = vector.broadcast %120 : vector<1x64xf32> to vector<2x64xf32>
    %122 = arith.addf %118, %121 : vector<2x64xf32>
    %123 = arith.addf %71, %122 : vector<2x64xf32>
    %c0_50 = arith.constant 0 : index
    %c0_51 = arith.constant 0 : index
    %124 = vector.load %arg14[%c0_50, %c0_51] : memref<2x64xf32, #tpu.memory_space<vmem>>, vector<2x64xf32>
    tpu.vector_store %arg14[%c0_50, %c0_51], %123 {strides = array<i32>} : memref<2x64xf32, #tpu.memory_space<vmem>>, vector<2x64xf32>,
    %c0_52 = arith.constant 0 : index
    %c0_53 = arith.constant 0 : index
    %125 = vector.load %arg13[%c0_52, %c0_53] : memref<2x64xf32, #tpu.memory_space<vmem>>, vector<2x64xf32>
    tpu.vector_store %arg13[%c0_52, %c0_53], %123 {strides = array<i32>} : memref<2x64xf32, #tpu.memory_space<vmem>>, vector<2x64xf32>,
    %c4_i32 = arith.constant 4 : i32
    %126 = arith.cmpi eq, %arg0, %c4_i32 : i32
    %127 = arith.extui %126 : i1 to i32
    %c0_i32_54 = arith.constant 0 : i32
    %128 = arith.cmpi ne, %127, %c0_i32_54 : i32
    scf.if %128 {
      %c0_55 = arith.constant 0 : index
      %c0_56 = arith.constant 0 : index
      %129 = vector.load %arg12[%c0_55, %c0_56] : memref<2x64xf32, #tpu.memory_space<vmem>>, vector<1x64xf32>
      %c1 = arith.constant 1 : index
      %c0_57 = arith.constant 0 : index
      %130 = vector.load %arg12[%c1, %c0_57] : memref<2x64xf32, #tpu.memory_space<vmem>>, vector<1x64xf32>
      %cst_58 = arith.constant dense<0.000000e+00> : vector<2xf32>
      %131 = vector.multi_reduction <add>, %123, %cst_58 [1] : vector<2x64xf32> to vector<2xf32>
      %132 = vector.shape_cast %131 : vector<2xf32> to vector<2x1xf32>
      %cst_59 = arith.constant 6.400000e+01 : f32
      %133 = vector.broadcast %cst_59 : f32 to vector<2x1xf32>
      %134 = arith.divf %132, %133 : vector<2x1xf32>
      %135 = vector.broadcast %134 : vector<2x1xf32> to vector<2x64xf32>
      %136 = arith.subf %123, %135 : vector<2x64xf32>
      %137 = arith.mulf %136, %136 : vector<2x64xf32>
      %cst_60 = arith.constant dense<0.000000e+00> : vector<2xf32>
      %138 = vector.multi_reduction <add>, %137, %cst_60 [1] : vector<2x64xf32> to vector<2xf32>
      %139 = vector.shape_cast %138 : vector<2xf32> to vector<2x1xf32>
      %cst_61 = arith.constant 6.400000e+01 : f32
      %140 = vector.broadcast %cst_61 : f32 to vector<2x1xf32>
      %141 = arith.divf %139, %140 : vector<2x1xf32>
      %142 = vector.broadcast %134 : vector<2x1xf32> to vector<2x64xf32>
      %143 = arith.subf %123, %142 : vector<2x64xf32>
      %cst_62 = arith.constant 9.99999974E-6 : f32
      %144 = vector.broadcast %cst_62 : f32 to vector<2x1xf32>
      %145 = arith.addf %141, %144 : vector<2x1xf32>
      %146 = math.rsqrt %145 : vector<2x1xf32>
      %147 = vector.broadcast %146 : vector<2x1xf32> to vector<2x64xf32>
      %148 = arith.mulf %143, %147 : vector<2x64xf32>
      %149 = vector.broadcast %129 : vector<1x64xf32> to vector<2x64xf32>
      %150 = arith.mulf %148, %149 : vector<2x64xf32>
      %151 = vector.broadcast %130 : vector<1x64xf32> to vector<2x64xf32>
      %152 = arith.addf %150, %151 : vector<2x64xf32>
      %c0_63 = arith.constant 0 : index
      %c0_64 = arith.constant 0 : index
      %153 = vector.load %arg13[%c0_63, %c0_64] : memref<2x64xf32, #tpu.memory_space<vmem>>, vector<2x64xf32>
      tpu.vector_store %arg13[%c0_63, %c0_64], %152 {strides = array<i32>} : memref<2x64xf32, #tpu.memory_space<vmem>>, vector<2x64xf32>,
    } else {
    }
    return
  }
  func.func @transform_0(%arg0: i32) -> (i32, i32) {
    %c0_i32 = arith.constant 0 : i32
    %c0_i32_0 = arith.constant 0 : i32
    %c0_i32_1 = arith.constant 0 : i32
    return %c0_i32, %c0_i32_0 : i32, i32
  }
  func.func @transform_1(%arg0: i32) -> (i32, i32) {
    %c0_i32 = arith.constant 0 : i32
    %c0_i32_0 = arith.constant 0 : i32
    %c0_i32_1 = arith.constant 0 : i32
    return %c0_i32, %c0_i32_0 : i32, i32
  }
  func.func @transform_2(%arg0: i32) -> (i32, i32, i32) {
    %c0_i32 = arith.constant 0 : i32
    %c0_i32_0 = arith.constant 0 : i32
    %c0_i32_1 = arith.constant 0 : i32
    return %arg0, %c0_i32, %c0_i32_0 : i32, i32, i32
  }
  func.func @transform_3(%arg0: i32) -> (i32, i32, i32) {
    %c0_i32 = arith.constant 0 : i32
    %c0_i32_0 = arith.constant 0 : i32
    %c0_i32_1 = arith.constant 0 : i32
    return %arg0, %c0_i32, %c0_i32_0 : i32, i32, i32
  }
  func.func @transform_4(%arg0: i32) -> (i32, i32, i32) {
    %c0_i32 = arith.constant 0 : i32
    %c0_i32_0 = arith.constant 0 : i32
    %c0_i32_1 = arith.constant 0 : i32
    return %arg0, %c0_i32, %c0_i32_0 : i32, i32, i32
  }
  func.func @transform_5(%arg0: i32) -> (i32, i32, i32) {
    %c0_i32 = arith.constant 0 : i32
    %c0_i32_0 = arith.constant 0 : i32
    %c0_i32_1 = arith.constant 0 : i32
    return %arg0, %c0_i32, %c0_i32_0 : i32, i32, i32
  }
  func.func @transform_6(%arg0: i32) -> (i32, i32, i32) {
    %c0_i32 = arith.constant 0 : i32
    %c0_i32_0 = arith.constant 0 : i32
    %c0_i32_1 = arith.constant 0 : i32
    return %arg0, %c0_i32, %c0_i32_0 : i32, i32, i32
  }
  func.func @transform_7(%arg0: i32) -> (i32, i32, i32) {
    %c0_i32 = arith.constant 0 : i32
    %c0_i32_0 = arith.constant 0 : i32
    %c0_i32_1 = arith.constant 0 : i32
    return %arg0, %c0_i32, %c0_i32_0 : i32, i32, i32
  }
  func.func @transform_8(%arg0: i32) -> (i32, i32, i32) {
    %c0_i32 = arith.constant 0 : i32
    %c0_i32_0 = arith.constant 0 : i32
    %c0_i32_1 = arith.constant 0 : i32
    return %arg0, %c0_i32, %c0_i32_0 : i32, i32, i32
  }
  func.func @transform_9(%arg0: i32) -> (i32, i32, i32) {
    %c0_i32 = arith.constant 0 : i32
    %c0_i32_0 = arith.constant 0 : i32
    %c0_i32_1 = arith.constant 0 : i32
    return %arg0, %c0_i32, %c0_i32_0 : i32, i32, i32
  }
  func.func @transform_10(%arg0: i32) -> (i32, i32, i32) {
    %c0_i32 = arith.constant 0 : i32
    %c0_i32_0 = arith.constant 0 : i32
    %c0_i32_1 = arith.constant 0 : i32
    return %arg0, %c0_i32, %c0_i32_0 : i32, i32, i32
  }
  func.func @transform_11(%arg0: i32) -> (i32, i32) {
    %c0_i32 = arith.constant 0 : i32
    %c0_i32_0 = arith.constant 0 : i32
    %c0_i32_1 = arith.constant 0 : i32
    return %c0_i32, %c0_i32_0 : i32, i32
  }
  func.func @transform_12(%arg0: i32) -> (i32, i32) {
    %c0_i32 = arith.constant 0 : i32
    %c0_i32_0 = arith.constant 0 : i32
    %c0_i32_1 = arith.constant 0 : i32
    return %c0_i32, %c0_i32_0 : i32, i32
  }
}

</mosaic_0001>

<bundles_post_ra>
// kernel: wav2vec2_forward.4
= control target key start
LH: loop header
LB: loop body
LE: loop exit
PB: predicated region body
PF: predicated region fallthrough
CT: control target
= control target key end

     0   :  { %vm107_vm0 = vcmask 1041408   ;;  %vm46_vm1 = vcmask 80896   ;;  %vm190_vm2 = vcmask 261120   ;;  %vm248_vm3 = vcmask 259072   ;;  %s1864_s1 = inlined_call_operand.vmem [shape: f32[10,32], index: 1, kind: input, shape index: {}]   ;;  %s1865_s0 = inlined_call_operand.vmem [shape: f32[158,10], index: 0, kind: input, shape index: {}]   ;;  %s1866_s2 = inlined_call_operand.vmem [shape: f32[1,32], index: 2, kind: input, shape index: {}]   ;;  %s1867_s3 = inlined_call_operand.vmem [shape: f32[1,32], index: 3, kind: input, shape index: {}]   ;;  %s1868_s4 = inlined_call_operand.vmem [shape: f32[1,32], index: 4, kind: input, shape index: {}]   ;;  %s1869_s5 = inlined_call_operand.vmem [shape: f32[158,32], index: 5, kind: output, shape index: {}]  }
   0x1   :  { %v41_v0 = vld [vmem:[%s1864_s1 + $0x8] sm:$0x3]  ;;  %v40_v1 = vld [vmem:[%s1864_s1] sm:$0xff]  ;;  %v30_v4 = vld [vmem:[%s1865_s0 + $0x50] sm:$0xff] }
   0x2   :  { %889 = vmatpush.msk.msra.mxu0 %vm107_vm0, %v41_v0  ;;  %910 = vmatpush.msk.msra.mxu1 %vm107_vm0, %v41_v0  ;;  %v20_v2 = vld [vmem:[%s1865_s0] sm:$0xff]  ;;  %v25_v3 = vld [vmem:[%s1865_s0 + $0x28] sm:$0xff]  ;;  %v35_v5 = vld [vmem:[%s1865_s0 + $0x78] sm:$0xff] }
   0x3   :  { %911 = vmatpush.msk.msra.mxu2 %vm107_vm0, %v41_v0  ;;  %912 = vmatpush.msk.msra.mxu3 %vm107_vm0, %v41_v0  ;;  %v21_v6 = vld [vmem:[%s1865_s0 + $0x8] sm:$0xff]  ;;  %v26_v7 = vld [vmem:[%s1865_s0 + $0x30] sm:$0xff]  ;;  %v31_v8 = vld [vmem:[%s1865_s0 + $0x58] sm:$0xff] }
   0x4   :  { %126 = vmatpush.msra.mxu0 %v40_v1  ;;  %913 = vmatpush.msra.mxu1 %v40_v1  ;;  %v36_v9 = vld [vmem:[%s1865_s0 + $0x80] sm:$0xff]  ;;  %v22_v10 = vld [vmem:[%s1865_s0 + $0x10] sm:$0xff]  ;;  %v27_v11 = vld [vmem:[%s1865_s0 + $0x38] sm:$0xff] }
   0x5   :  { %914 = vmatpush.msra.mxu2 %v40_v1  ;;  %915 = vmatpush.msra.mxu3 %v40_v1  ;;  %v37_v12 = vld [vmem:[%s1865_s0 + $0x88] sm:$0xff]  ;;  %v32_v13 = vld [vmem:[%s1865_s0 + $0x60] sm:$0xff]  ;;  %v23_v14 = vld [vmem:[%s1865_s0 + $0x18] sm:$0xff] }
   0x6   :  { %890 = vmatmul.msk.f32.vlgmr.msra.gmra.mxu0 %vm46_vm1, %v20_v2  ;;  %895 = vmatmul.msk.f32.vlgmr.msra.gmra.mxu1 %vm46_vm1, %v25_v3  ;;  %v28_v15 = vld [vmem:[%s1865_s0 + $0x40] sm:$0xff]  ;;  %v33_v16 = vld [vmem:[%s1865_s0 + $0x68] sm:$0xff]  ;;  %v38_v17 = vld [vmem:[%s1865_s0 + $0x90] sm:$0xff] }
   0x7   :  { %900 = vmatmul.msk.f32.vlgmr.msra.gmra.mxu2 %vm46_vm1, %v30_v4  ;;  %905 = vmatmul.msk.f32.vlgmr.msra.gmra.mxu3 %vm46_vm1, %v35_v5  ;;  %v24_v18 = vld [vmem:[%s1865_s0 + $0x20] sm:$0xff]  ;;  %v29_v19 = vld [vmem:[%s1865_s0 + $0x48] sm:$0xff]  ;;  %v34_v20 = vld [vmem:[%s1865_s0 + $0x70] sm:$0xff] }
   0x8   :  { %v39_v21 = vld [vmem:[%s1865_s0 + $0x98] sm:$0x3f]  ;;  %v1122_v22 = vld [vmem:[%s1866_s2] ss:$0 sm:$0xff] }
   0xe   :  { %891 = vmatmul.msk.f32.gmra.mxu0 %vm46_vm1, %v21_v6  ;;  %896 = vmatmul.msk.f32.gmra.mxu1 %vm46_vm1, %v26_v7 }
   0xf   :  { %901 = vmatmul.msk.f32.gmra.mxu2 %vm46_vm1, %v31_v8  ;;  %906 = vmatmul.msk.f32.gmra.mxu3 %vm46_vm1, %v36_v9 }
  0x16   :  { %892 = vmatmul.msk.f32.gmra.mxu0 %vm46_vm1, %v22_v10  ;;  %897 = vmatmul.msk.f32.gmra.mxu1 %vm46_vm1, %v27_v11 }
  0x17   :  { %907 = vmatmul.msk.f32.gmra.mxu3 %vm46_vm1, %v37_v12  ;;  %902 = vmatmul.msk.f32.gmra.mxu2 %vm46_vm1, %v32_v13 }
  0x1e   :  { %893 = vmatmul.msk.f32.gmra.mxu0 %vm46_vm1, %v23_v14  ;;  %898 = vmatmul.msk.f32.gmra.mxu1 %vm46_vm1, %v28_v15 }
  0x1f   :  { %903 = vmatmul.msk.f32.gmra.mxu2 %vm46_vm1, %v33_v16  ;;  %908 = vmatmul.msk.f32.gmra.mxu3 %vm46_vm1, %v38_v17 }
  0x26   :  { %894 = vmatmul.msk.f32.gmra.mxu0 %vm46_vm1, %v24_v18  ;;  %899 = vmatmul.msk.f32.gmra.mxu1 %vm46_vm1, %v29_v19  ;;  %v1002_v19 = vmov 32.0  }
  0x27   :  { %904 = vmatmul.msk.f32.gmra.mxu2 %vm46_vm1, %v34_v20  ;;  %909 = vmatmul.msk.f32.gmra.mxu3 %vm46_vm1, %v39_v21  ;;  %920 = vrcp.f32 %v1002_v19 }
  0x2d   :  { %v921_v20 = vpop.eup %920 }
  0x2e   :  { %v253_v21 = vmul.f32 32.0, %v921_v20  ;;  %vm257_vm4 = vweird.f32 %v921_v20 }
  0x83   :  { %v128_v23 = vpop.f32.mrf.mxu0  ;;  %v143_v24 = vpop.f32.mrf.mxu1 }
  0x84   :  { %v1125_v25 = vadd.f32 %v1122_v22, %v128_v23  ;;  %v1128_v26 = vadd.f32 %v1122_v22, %v143_v24  ;;  %v254_v23 = vsub.f32 1.0, %v253_v21 }
  0x86   :  { %v206_v27 = vsel %vm190_vm2, %v1128_v26, 0.0  ;;  %v191_v28 = vsel %vm190_vm2, %v1125_v25, 0.0  ;;  %v255_v24 = vmul.f32 %v921_v20, %v254_v23 }
  0x87   :  { %207 = vadd.xlane.f32.xlu2 %v206_v27  ;;  %192 = vadd.xlane.f32.xlu0 %v191_v28 }
  0x88   :  { %v256_v27 = vadd.f32 %v921_v20, %v255_v24 }
  0x8a   :  { %v158_v29 = vpop.f32.mrf.mxu2  ;;  %v173_v30 = vpop.f32.mrf.mxu3  ;;  %v1224_v28 = vsel %vm257_vm4, %v921_v20, %v256_v27 }
  0x8b   :  { %v1135_v31 = vadd.f32 %v1122_v22, %v158_v29  ;;  %v1138_v32 = vadd.f32 %v1122_v22, %v173_v30  ;;  %v131_v33 = vpop.f32.mrf.mxu0  ;;  %v146_v34 = vpop.f32.mrf.mxu1 }
  0x8c   :  { %v1145_v37 = vadd.f32 %v1122_v22, %v131_v33  ;;  %v1163_v48 = vadd.f32 %v1122_v22, %v146_v34 }
  0x8d   :  { %v221_v35 = vsel %vm190_vm2, %v1135_v31, 0.0  ;;  %v236_v36 = vsel %vm190_vm2, %v1138_v32, 0.0 }
  0x8e   :  { %222 = vadd.xlane.f32.xlu1 %v221_v35  ;;  %v194_v46 = vsel %vm190_vm2, %v1145_v37, 0.0  ;;  %v209_v56 = vsel %vm190_vm2, %v1163_v48, 0.0 }
  0x8f   :  { %237 = vadd.xlane.f32.xlu0 %v236_v36 }
  0x92   :  { %v161_v38 = vpop.f32.mrf.mxu2  ;;  %v176_v39 = vpop.f32.mrf.mxu3 }
  0x93   :  { %v1148_v40 = vadd.f32 %v1122_v22, %v161_v38  ;;  %v1151_v41 = vadd.f32 %v1122_v22, %v176_v39  ;;  %v134_v42 = vpop.f32.mrf.mxu0  ;;  %v149_v43 = vpop.f32.mrf.mxu1 }
  0x94   :  { %v1160_v47 = vadd.f32 %v1122_v22, %v134_v42  ;;  %v1175_v57 = vadd.f32 %v1122_v22, %v149_v43 }
  0x95   :  { %v239_v44 = vsel %vm190_vm2, %v1151_v41, 0.0  ;;  %v224_v45 = vsel %vm190_vm2, %v1148_v40, 0.0 }
  0x96   :  { %240 = vadd.xlane.f32.xlu1 %v239_v44  ;;  %225 = vadd.xlane.f32.xlu2 %v224_v45  ;;  %v197_v52 = vsel %vm190_vm2, %v1160_v47, 0.0  ;;  %v212_v62 = vsel %vm190_vm2, %v1175_v57, 0.0 }
  0x97   :  { %195 = vadd.xlane.f32.xlu0 %v194_v46 }
  0x9a   :  { %v179_v49 = vpop.f32.mrf.mxu3  ;;  %v164_v50 = vpop.f32.mrf.mxu2 }
  0x9b   :  { %v1166_v51 = vadd.f32 %v1122_v22, %v179_v49  ;;  %v137_v53 = vpop.f32.mrf.mxu0  ;;  %v152_v54 = vpop.f32.mrf.mxu1  ;;  %v1181_v59 = vadd.f32 %v1122_v22, %v164_v50 }
  0x9c   :  { %v1178_v58 = vadd.f32 %v1122_v22, %v152_v54  ;;  %v1190_v2 = vadd.f32 %v1122_v22, %v137_v53 }
  0x9d   :  { %v242_v55 = vsel %vm190_vm2, %v1166_v51, 0.0  ;;  %v227_v63 = vsel %vm190_vm2, %v1181_v59, 0.0 }
  0x9e   :  { %243 = vadd.xlane.f32.xlu2 %v242_v55  ;;  %198 = vadd.xlane.f32.xlu1 %v197_v52  ;;  %v215_v61 = vsel %vm190_vm2, %v1178_v58, 0.0  ;;  %v200_v6 = vsel %vm190_vm2, %v1190_v2, 0.0 }
  0x9f   :  { %210 = vadd.xlane.f32.xlu0 %v209_v56 }
  0xa2   :  { %v167_v60 = vpop.f32.mrf.mxu2  ;;  %v182_v1 = vpop.f32.mrf.mxu3 }
  0xa3   :  { %v140_v0 = vpop.f32.mrf.mxu0  ;;  %v1196_v4 = vadd.f32 %v1122_v22, %v182_v1  ;;  %v155_v9 = vpop.f32.mrf.mxu1  ;;  %v1205_v10 = vadd.f32 %v1122_v22, %v167_v60 }
  0xa4   :  { %v1193_v3 = vadd.f32 %v1122_v22, %v140_v0  ;;  %v1211_v12 = vadd.f32 %v1122_v22, %v155_v9 }
  0xa5   :  { %v245_v7 = vsel %vm190_vm2, %v1196_v4, 0.0  ;;  %v230_v14 = vsel %vm190_vm2, %v1205_v10, 0.0 }
  0xa6   :  { %216 = vadd.xlane.f32.xlu2 %v215_v61  ;;  %213 = vadd.xlane.f32.xlu1 %v212_v62  ;;  %v203_v5 = vsel %vm190_vm2, %v1193_v3, 0.0  ;;  %v218_v15 = vsel %vm190_vm2, %v1211_v12, 0.0 }
  0xa7   :  { %228 = vadd.xlane.f32.xlu0 %v227_v63 }
  0xaa   :  { %v170_v8 = vpop.f32.mrf.mxu2  ;;  %v185_v16 = vpop.f32.mrf.mxu3 }
  0xab   :  { %v1208_v11 = vadd.f32 %v1122_v22, %v170_v8  ;;  %v1220_v17 = vadd.f32 %v1122_v22, %v185_v16 }
  0xad   :  { %v233_v13 = vsel %vm190_vm2, %v1208_v11, 0.0  ;;  %v249_v18 = vsel %vm248_vm3, %v1220_v17, 0.0 }
  0xae   :  { %204 = vadd.xlane.f32.xlu2 %v203_v5  ;;  %201 = vadd.xlane.f32.xlu1 %v200_v6 }
  0xaf   :  { %246 = vadd.xlane.f32.xlu0 %v245_v7 }
  0xb6   :  { %234 = vadd.xlane.f32.xlu2 %v233_v13  ;;  %231 = vadd.xlane.f32.xlu1 %v230_v14 }
  0xb7   :  { %219 = vadd.xlane.f32.xlu0 %v218_v15 }
  0xbe   :  { %250 = vadd.xlane.f32.xlu1 %v249_v18 }
  0xfa   :  { %v208_v29 = vpop.xlane.xlu2 %207  ;;  %v193_v30 = vpop.xlane.xlu0 %192 }
  0xfb   :  { %v264_v22 = vmul.f32 %v1224_v28, %v208_v29  ;;  %v259_v33 = vmul.f32 %v1224_v28, %v193_v30 }
  0xfd   :  { %v1229_v34 = vsub.f32 %v1128_v26, %v264_v22  ;;  %v1232_v35 = vsub.f32 %v1125_v25, %v259_v33 }
  0xff   :  { %v304_v36 = vmul.f32 %v1229_v34, %v1229_v34  ;;  %v299_v38 = vmul.f32 %v1232_v35, %v1232_v35 }
 0x101   :  { %v223_v39 = vpop.xlane.xlu1 %222  ;;  %v334_v42 = vsel %vm190_vm2, %v304_v36, 0.0  ;;  %v319_v43 = vsel %vm190_vm2, %v299_v38, 0.0 }
 0x102   :  { %v269_v44 = vmul.f32 %v1224_v28, %v223_v39  ;;  %335 = vadd.xlane.f32.xlu1 %v334_v42  ;;  %320 = vadd.xlane.f32.xlu2 %v319_v43  ;;  %v238_v26 = vpop.xlane.xlu0 %237 }
 0x103   :  { %v274_v45 = vmul.f32 %v1224_v28, %v238_v26 }
 0x104   :  { %v1243_v25 = vsub.f32 %v1135_v31, %v269_v44 }
 0x105   :  { %v1246_v46 = vsub.f32 %v1138_v32, %v274_v45 }
 0x106   :  { %v309_v49 = vmul.f32 %v1243_v25, %v1243_v25 }
 0x107   :  { %v314_v50 = vmul.f32 %v1246_v46, %v1246_v46 }
 0x108   :  { %v349_v52 = vsel %vm190_vm2, %v309_v49, 0.0 }
 0x109   :  { %v241_v53 = vpop.xlane.xlu1 %240  ;;  %v226_v54 = vpop.xlane.xlu2 %225  ;;  %350 = vadd.xlane.f32.xlu0 %v349_v52  ;;  %v364_v55 = vsel %vm190_vm2, %v314_v50, 0.0 }
 0x10a   :  { %v270_v56 = vmul.f32 %v1224_v28, %v226_v54  ;;  %365 = vadd.xlane.f32.xlu2 %v364_v55  ;;  %v196_v31 = vpop.xlane.xlu0 %195  ;;  %v275_v61 = vmul.f32 %v1224_v28, %v241_v53 }
 0x10b   :  { %v260_v32 = vmul.f32 %v1224_v28, %v196_v31 }
 0x10c   :  { %v1257_v60 = vsub.f32 %v1148_v40, %v270_v56  ;;  %v1269_v5 = vsub.f32 %v1151_v41, %v275_v61 }
 0x10d   :  { %v1261_v62 = vsub.f32 %v1145_v37, %v260_v32 }
 0x10e   :  { %v310_v63 = vmul.f32 %v1257_v60, %v1257_v60  ;;  %v315_v41 = vmul.f32 %v1269_v5, %v1269_v5 }
 0x10f   :  { %v300_v0 = vmul.f32 %v1261_v62, %v1261_v62 }
 0x110   :  { %v352_v1 = vsel %vm190_vm2, %v310_v63, 0.0 }
 0x111   :  { %v244_v6 = vpop.xlane.xlu2 %243  ;;  %353 = vadd.xlane.f32.xlu1 %v352_v1  ;;  %v199_v40 = vpop.xlane.xlu1 %198  ;;  %v322_v7 = vsel %vm190_vm2, %v300_v0, 0.0 }
 0x112   :  { %v261_v8 = vmul.f32 %v1224_v28, %v199_v40  ;;  %323 = vadd.xlane.f32.xlu0 %v322_v7  ;;  %v211_v37 = vpop.xlane.xlu0 %210  ;;  %v276_v31 = vmul.f32 %v1224_v28, %v244_v6 }
 0x113   :  { %v265_v9 = vmul.f32 %v1224_v28, %v211_v37 }
 0x114   :  { %v1275_v13 = vsub.f32 %v1160_v47, %v261_v8  ;;  %v367_v47 = vsel %vm190_vm2, %v315_v41, 0.0 }
 0x115   :  { %v1278_v14 = vsub.f32 %v1163_v48, %v265_v9 }
 0x116   :  { %v301_v15 = vmul.f32 %v1275_v13, %v1275_v13 }
 0x117   :  { %v305_v16 = vmul.f32 %v1278_v14, %v1278_v14 }
 0x118   :  { %v325_v18 = vsel %vm190_vm2, %v301_v15, 0.0 }
 0x119   :  { %v217_v19 = vpop.xlane.xlu2 %216  ;;  %326 = vadd.xlane.f32.xlu1 %v325_v18  ;;  %v214_v20 = vpop.xlane.xlu1 %213  ;;  %v337_v21 = vsel %vm190_vm2, %v305_v16, 0.0 }
 0x11a   :  { %v267_v48 = vmul.f32 %v1224_v28, %v217_v19  ;;  %v266_v23 = vmul.f32 %v1224_v28, %v214_v20  ;;  %368 = vadd.xlane.f32.xlu0 %v367_v47  ;;  %338 = vadd.xlane.f32.xlu2 %v337_v21  ;;  %v229_v24 = vpop.xlane.xlu0 %228 }
 0x11b   :  { %v271_v27 = vmul.f32 %v1224_v28, %v229_v24 }
 0x11c   :  { %v1293_v29 = vsub.f32 %v1178_v58, %v267_v48  ;;  %v1296_v30 = vsub.f32 %v1175_v57, %v266_v23 }
 0x11d   :  { %v1299_v22 = vsub.f32 %v1181_v59, %v271_v27 }
 0x11e   :  { %v307_v33 = vmul.f32 %v1293_v29, %v1293_v29  ;;  %v306_v36 = vmul.f32 %v1296_v30, %v1296_v30 }
 0x11f   :  { %v311_v38 = vmul.f32 %v1299_v22, %v1299_v22 }
 0x120   :  { %v343_v39 = vsel %vm190_vm2, %v307_v33, 0.0  ;;  %v340_v57 = vsel %vm190_vm2, %v306_v36, 0.0 }
 0x121   :  { %v205_v42 = vpop.xlane.xlu2 %204  ;;  %344 = vadd.xlane.f32.xlu1 %v343_v39  ;;  %v202_v58 = vpop.xlane.xlu1 %201  ;;  %v355_v43 = vsel %vm190_vm2, %v311_v38, 0.0 }
 0x122   :  { %v262_v59 = vmul.f32 %v1224_v28, %v202_v58  ;;  %341 = vadd.xlane.f32.xlu0 %v340_v57  ;;  %356 = vadd.xlane.f32.xlu2 %v355_v43  ;;  %v247_v44 = vpop.xlane.xlu0 %246 }
 0x123   :  { %v277_v63 = vmul.f32 %v1224_v28, %v247_v44 }
 0x124   :  { %v1312_v26 = vsub.f32 %v1190_v2, %v262_v59  ;;  %v263_v2 = vmul.f32 %v1224_v28, %v205_v42 }
 0x125   :  { %v1347_v8 = vsub.f32 %v1196_v4, %v277_v63 }
 0x126   :  { %v302_v45 = vmul.f32 %v1312_v26, %v1312_v26 }
 0x127   :  { %v317_v15 = vmul.f32 %v1347_v8, %v1347_v8 }
 0x128   :  { %v328_v52 = vsel %vm190_vm2, %v302_v45, 0.0 }
 0x129   :  { %v235_v49 = vpop.xlane.xlu2 %234  ;;  %v232_v50 = vpop.xlane.xlu1 %231  ;;  %v373_v19 = vsel %vm190_vm2, %v317_v15, 0.0 }
 0x12a   :  { %v273_v53 = vmul.f32 %v1224_v28, %v235_v49  ;;  %v272_v54 = vmul.f32 %v1224_v28, %v232_v50  ;;  %329 = vadd.xlane.f32.xlu2 %v328_v52  ;;  %v220_v55 = vpop.xlane.xlu0 %219 }
 0x12b   :  { %v268_v56 = vmul.f32 %v1224_v28, %v220_v55 }
 0x12c   :  { %v1323_v32 = vsub.f32 %v1208_v11, %v273_v53  ;;  %v1326_v61 = vsub.f32 %v1205_v10, %v272_v54  ;;  %v1339_v11 = vsub.f32 %v1166_v51, %v276_v31  ;;  %v1342_v10 = vsub.f32 %v1193_v3, %v263_v2 }
 0x12d   :  { %v1330_v0 = vsub.f32 %v1211_v12, %v268_v56 }
 0x12e   :  { %v313_v1 = vmul.f32 %v1323_v32, %v1323_v32  ;;  %v312_v40 = vmul.f32 %v1326_v61, %v1326_v61  ;;  %v316_v51 = vmul.f32 %v1339_v11, %v1339_v11  ;;  %v303_v3 = vmul.f32 %v1342_v10, %v1342_v10 }
 0x12f   :  { %v308_v6 = vmul.f32 %v1330_v0, %v1330_v0 }
 0x130   :  { %v361_v7 = vsel %vm190_vm2, %v313_v1, 0.0  ;;  %v358_v12 = vsel %vm190_vm2, %v312_v40, 0.0  ;;  %v370_v16 = vsel %vm190_vm2, %v316_v51, 0.0  ;;  %v331_v18 = vsel %vm190_vm2, %v303_v3, 0.0 }
 0x131   :  { %362 = vadd.xlane.f32.xlu1 %v361_v7  ;;  %v251_v37 = vpop.xlane.xlu1 %250  ;;  %359 = vadd.xlane.f32.xlu0 %v358_v12  ;;  %v346_v9 = vsel %vm190_vm2, %v308_v6, 0.0 }
 0x132   :  { %347 = vadd.xlane.f32.xlu2 %v346_v9  ;;  %v278_v41 = vmul.f32 %v1224_v28, %v251_v37  ;;  %v1388_v9 = vld [vmem:[%s1867_s3] ss:$0 sm:$0xff] }
 0x134   :  { %v1358_v4 = vsub.f32 %v1220_v17, %v278_v41 }
 0x136   :  { %v318_v20 = vmul.f32 %v1358_v4, %v1358_v4 }
 0x138   :  { %v376_v47 = vsel %vm248_vm3, %v318_v20, 0.0 }
 0x139   :  { %371 = vadd.xlane.f32.xlu1 %v370_v16  ;;  %332 = vadd.xlane.f32.xlu0 %v331_v18  ;;  %v1394_v16 = vld [vmem:[%s1868_s4] ss:$0 sm:$0xff] }
 0x13a   :  { %374 = vadd.xlane.f32.xlu2 %v373_v19 }
 0x141   :  { %377 = vadd.xlane.f32.xlu0 %v376_v47 }
 0x175   :  { %v336_v21 = vpop.xlane.xlu1 %335  ;;  %v321_v48 = vpop.xlane.xlu2 %320 }
 0x176   :  { %v384_v17 = vmul.f32 %v336_v21, %v1224_v28  ;;  %v379_v23 = vmul.f32 %v321_v48, %v1224_v28 }
 0x178   :  { %v404_v24 = vadd.f32 1e-05, %v384_v17  ;;  %v399_v27 = vadd.f32 1e-05, %v379_v23 }
 0x17a   :  { %922 = vrsqrt.f32 %v404_v24  ;;  %vm475_vm7 = vweird.f32 %v404_v24  ;;  %vm425_vm9 = vweird.f32 %v399_v27 }
 0x17b   :  { %924 = vrsqrt.f32 %v399_v27 }
 0x17c   :  { %v351_v33 = vpop.xlane.xlu0 %350 }
 0x17d   :  { %v389_v36 = vmul.f32 %v351_v33, %v1224_v28  ;;  %v366_v38 = vpop.xlane.xlu2 %365 }
 0x17e   :  { %v394_v39 = vmul.f32 %v366_v38, %v1224_v28 }
 0x17f   :  { %v1370_v42 = vadd.f32 1e-05, %v389_v36 }
 0x180   :  { %v923_v58 = vpop.eup %922  ;;  %v1372_v57 = vadd.f32 1e-05, %v394_v39 }
 0x181   :  { %v925_v43 = vpop.eup %924  ;;  %v470_v59 = vmul.f32 %v923_v58, %v404_v24  ;;  %926 = vrsqrt.f32 %v1370_v42  ;;  %vm476_vm5 = vweird.f32 %v923_v58  ;;  %vm525_vm11 = vweird.f32 %v1370_v42 }
 0x182   :  { %v420_v44 = vmul.f32 %v925_v43, %v399_v27  ;;  %928 = vrsqrt.f32 %v1372_v57  ;;  %vm426_vm6 = vweird.f32 %v925_v43  ;;  %vm477_vm8 = vmor %vm475_vm7, %vm476_vm5  ;;  %vm575_vm13 = vweird.f32 %v1372_v57 }
 0x183   :  { %v471_v45 = vmul.f32 %v923_v58, %v470_v59  ;;  %vm427_vm10 = vmor %vm425_vm9, %vm426_vm6 }
 0x184   :  { %v421_v49 = vmul.f32 %v925_v43, %v420_v44  ;;  %v354_v50 = vpop.xlane.xlu1 %353 }
 0x185   :  { %v472_v52 = vmul.f32 0.5, %v471_v45  ;;  %v390_v53 = vmul.f32 %v354_v50, %v1224_v28  ;;  %v324_v54 = vpop.xlane.xlu0 %323 }
 0x186   :  { %v422_v55 = vmul.f32 0.5, %v421_v49  ;;  %v380_v56 = vmul.f32 %v324_v54, %v1224_v28 }
 0x187   :  { %v927_v31 = vpop.eup %926  ;;  %v473_v2 = vsub.f32 1.5, %v472_v52  ;;  %v1378_v63 = vadd.f32 1e-05, %v390_v53 }
 0x188   :  { %v929_v1 = vpop.eup %928  ;;  %v423_v40 = vsub.f32 1.5, %v422_v55  ;;  %v520_v6 = vmul.f32 %v927_v31, %v1370_v42  ;;  %v1381_v7 = vadd.f32 1e-05, %v380_v56  ;;  %vm526_vm12 = vweird.f32 %v927_v31 }
 0x189   :  { %v474_v12 = vmul.f32 %v923_v58, %v473_v2  ;;  %v570_v37 = vmul.f32 %v929_v1, %v1372_v57  ;;  %930 = vrsqrt.f32 %v1378_v63  ;;  %vm576_vm14 = vweird.f32 %v929_v1  ;;  %vm527_vm0 = vmor %vm525_vm11, %vm526_vm12 }
 0x18a   :  { %v424_v41 = vmul.f32 %v925_v43, %v423_v40  ;;  %v521_v51 = vmul.f32 %v927_v31, %v520_v6  ;;  %932 = vrsqrt.f32 %v1381_v7  ;;  %vm535_vm15 = vweird.f32 %v1378_v63  ;;  %vm577_vm1 = vmor %vm575_vm13, %vm576_vm14 }
 0x18b   :  { %v478_v3 = vsel %vm477_vm8, %v923_v58, %v474_v12  ;;  %v571_v15 = vmul.f32 %v929_v1, %v570_v37  ;;  %vm435_vm6 = vweird.f32 %v1381_v7 }
 0x18c   :  { %v624_v18 = vmul.f32 %v478_v3, %v1229_v34  ;;  %v428_v19 = vsel %vm427_vm10, %v925_v43, %v424_v41  ;;  %v522_v20 = vmul.f32 0.5, %v521_v51  ;;  %v327_v47 = vpop.xlane.xlu1 %326 }
 0x18d   :  { %v619_v21 = vmul.f32 %v428_v19, %v1232_v35  ;;  %v572_v48 = vmul.f32 0.5, %v571_v15  ;;  %v381_v17 = vmul.f32 %v327_v47, %v1224_v28  ;;  %v339_v23 = vpop.xlane.xlu2 %338  ;;  %v369_v33 = vpop.xlane.xlu0 %368 }
 0x18e   :  { %v647_v24 = vmul.f32 %v1388_v9, %v624_v18  ;;  %v523_v27 = vsub.f32 1.5, %v522_v20  ;;  %v385_v44 = vmul.f32 %v339_v23, %v1224_v28  ;;  %v395_v52 = vmul.f32 %v369_v33, %v1224_v28 }
 0x18f   :  { %v931_v36 = vpop.eup %930  ;;  %v642_v34 = vmul.f32 %v1388_v9, %v619_v21  ;;  %v573_v38 = vsub.f32 1.5, %v572_v48  ;;  %v1403_v39 = vadd.f32 1e-05, %v381_v17 }
 0x190   :  { %v933_v35 = vpop.eup %932  ;;  %v1406_v58 = vadd.f32 %v1394_v16, %v647_v24  ;;  %v524_v43 = vmul.f32 %v927_v31, %v523_v27  ;;  %v530_v59 = vmul.f32 %v931_v36, %v1378_v63  ;;  %vm536_vm4 = vweird.f32 %v931_v36 }
 0x191   :  { %v1412_v45 = vadd.f32 %v1394_v16, %v642_v34  ;;  %v574_v49 = vmul.f32 %v929_v1, %v573_v38  ;;  %v430_v50 = vmul.f32 %v933_v35, %v1381_v7  ;;  %934 = vrsqrt.f32 %v1403_v39  ;;  %vm537_vm7 = vmor %vm535_vm15, %vm536_vm4 }
 0x192   :  { %v690_v53 = vmul.f32 %v1406_v58, %v1406_v58  ;;  %v528_v54 = vsel %vm527_vm0, %v927_v31, %v524_v43  ;;  %v531_v55 = vmul.f32 %v931_v36, %v530_v59  ;;  %v1432_v51 = vadd.f32 1e-05, %v385_v44 }
 0x193   :  { %v685_v42 = vmul.f32 %v1412_v45, %v1412_v45  ;;  %v629_v56 = vmul.f32 %v528_v54, %v1243_v25  ;;  %v578_v2 = vsel %vm577_vm1, %v929_v1, %v574_v49  ;;  %v431_v40 = vmul.f32 %v933_v35, %v430_v50 }
 0x194   :  { %v710_v6 = vmul.f32 %v690_v53, %v1406_v58  ;;  %v634_v12 = vmul.f32 %v578_v2, %v1246_v46  ;;  %v532_v37 = vmul.f32 0.5, %v531_v55  ;;  %vm436_vm5 = vweird.f32 %v933_v35 }
 0x195   :  { %v705_v31 = vmul.f32 %v685_v42, %v1412_v45  ;;  %v652_v57 = vmul.f32 %v1388_v9, %v629_v56  ;;  %v432_v41 = vmul.f32 0.5, %v431_v40  ;;  %936 = vrsqrt.f32 %v1432_v51  ;;  %vm437_vm8 = vmor %vm435_vm6, %vm436_vm5  ;;  %v345_v42 = vpop.xlane.xlu1 %344 }
 0x196   :  { %v730_v3 = vmul.f32 0.044715, %v710_v6  ;;  %v657_v15 = vmul.f32 %v1388_v9, %v634_v12  ;;  %v533_v18 = vsub.f32 1.5, %v532_v37  ;;  %v1457_v7 = vadd.f32 1e-05, %v395_v52 }
 0x197   :  { %v725_v25 = vmul.f32 0.044715, %v705_v31  ;;  %v1436_v1 = vadd.f32 %v1394_v16, %v652_v57  ;;  %v433_v19 = vsub.f32 1.5, %v432_v41  ;;  %v1439_v46 = vpop.eup %934  ;;  %vm445_vm9 = vweird.f32 %v1403_v39 }
 0x198   :  { %v750_v20 = vadd.f32 %v730_v3, %v1406_v58  ;;  %v1443_v47 = vadd.f32 %v1394_v16, %v657_v15  ;;  %v534_v21 = vmul.f32 %v931_v36, %v533_v18  ;;  %v440_v24 = vmul.f32 %v1439_v46, %v1403_v39 }
 0x199   :  { %v745_v48 = vadd.f32 %v725_v25, %v1412_v45  ;;  %v695_v17 = vmul.f32 %v1436_v1, %v1436_v1  ;;  %v434_v23 = vmul.f32 %v933_v35, %v433_v19  ;;  %vm446_vm10 = vweird.f32 %v1439_v46 }
 0x19a   :  { %v770_v27 = vmul.f32 0.7978846, %v750_v20  ;;  %v700_v33 = vmul.f32 %v1443_v47, %v1443_v47  ;;  %v538_v34 = vsel %vm537_vm7, %v931_v36, %v534_v21  ;;  %v441_v50 = vmul.f32 %v1439_v46, %v440_v24  ;;  %vm447_vm13 = vmor %vm445_vm9, %vm446_vm10 }
 0x19b   :  { %v765_v38 = vmul.f32 0.7978846, %v745_v48  ;;  %v715_v43 = vmul.f32 %v695_v17, %v1436_v1  ;;  %v630_v59 = vmul.f32 %v538_v34, %v1257_v60  ;;  %v438_v63 = vsel %vm437_vm8, %v933_v35, %v434_v23  ;;  %v1464_v53 = vpop.eup %936  ;;  %v357_v17 = vpop.xlane.xlu2 %356 }
 0x19c   :  { %938 = vtanh.f32 %v770_v27  ;;  %v720_v44 = vmul.f32 %v700_v33, %v1443_v47  ;;  %v620_v49 = vmul.f32 %v438_v63, %v1261_v62  ;;  %v442_v60 = vmul.f32 0.5, %v441_v50 }
 0x19d   :  { %940 = vtanh.f32 %v765_v38  ;;  %v735_v36 = vmul.f32 0.044715, %v715_v43  ;;  %v653_v52 = vmul.f32 %v1388_v9, %v630_v59  ;;  %v480_v35 = vmul.f32 %v1464_v53, %v1432_v51 }
 0x19e   :  { %v740_v54 = vmul.f32 0.044715, %v720_v44  ;;  %v643_v55 = vmul.f32 %v1388_v9, %v620_v49  ;;  %vm485_vm11 = vweird.f32 %v1432_v51  ;;  %942 = vrsqrt.f32 %v1457_v7 }
 0x19f   :  { %v755_v62 = vadd.f32 %v735_v36, %v1436_v1  ;;  %v1473_v56 = vadd.f32 %v1394_v16, %v653_v52  ;;  %v443_v6 = vsub.f32 1.5, %v442_v60  ;;  %v481_v12 = vmul.f32 %v1464_v53, %v480_v35 }
 0x1a0   :  { %v760_v2 = vadd.f32 %v740_v54, %v1443_v47  ;;  %v1480_v40 = vadd.f32 %v1394_v16, %v643_v55  ;;  %vm486_vm12 = vweird.f32 %v1464_v53  ;;  %v387_v57 = vmul.f32 %v345_v42, %v1224_v28 }
 0x1a1   :  { %v775_v37 = vmul.f32 0.7978846, %v755_v62  ;;  %v696_v31 = vmul.f32 %v1473_v56, %v1473_v56  ;;  %v444_v18 = vmul.f32 %v1439_v46, %v443_v6  ;;  %v482_v25 = vmul.f32 0.5, %v481_v12  ;;  %vm487_vm14 = vmor %vm485_vm11, %vm486_vm12 }
 0x1a2   :  { %v939_v41 = vpop.eup %938  ;;  %v780_v3 = vmul.f32 0.7978846, %v760_v2  ;;  %v686_v15 = vmul.f32 %v1480_v40, %v1480_v40  ;;  %v1495_v48 = vadd.f32 1e-05, %v387_v57  ;;  %v391_v49 = vmul.f32 %v357_v17, %v1224_v28 }
 0x1a3   :  { %v941_v19 = vpop.eup %940  ;;  %v810_v20 = vadd.f32 1.0, %v939_v41  ;;  %944 = vtanh.f32 %v775_v37  ;;  %v716_v21 = vmul.f32 %v696_v31, %v1473_v56  ;;  %v448_v27 = vsel %vm447_vm13, %v1439_v46, %v444_v18  ;;  %v330_v17 = vpop.xlane.xlu2 %329 }
 0x1a4   :  { %v805_v23 = vadd.f32 1.0, %v941_v19  ;;  %946 = vtanh.f32 %v780_v3  ;;  %v706_v24 = vmul.f32 %v686_v15, %v1480_v40  ;;  %v1499_v33 = vpop.eup %942  ;;  %v621_v43 = vmul.f32 %v448_v27, %v1275_v13  ;;  %v363_v27 = vpop.xlane.xlu1 %362 }
 0x1a5   :  { %v830_v34 = vmul.f32 0.5, %v810_v20  ;;  %v736_v38 = vmul.f32 0.044715, %v716_v21  ;;  %v483_v59 = vsub.f32 1.5, %v482_v25  ;;  %v580_v39 = vmul.f32 %v1499_v33, %v1457_v7 }
 0x1a6   :  { %v825_v63 = vmul.f32 0.5, %v805_v23  ;;  %v726_v44 = vmul.f32 0.044715, %v706_v24  ;;  %v644_v46 = vmul.f32 %v1388_v9, %v621_v43  ;;  %948 = vrsqrt.f32 %v1495_v48 }
 0x1a7   :  { %v850_v50 = vmul.f32 %v830_v34, %v1406_v58  ;;  %v756_v36 = vadd.f32 %v736_v38, %v1473_v56  ;;  %v484_v52 = vmul.f32 %v1464_v53, %v483_v59  ;;  %v581_v55 = vmul.f32 %v1499_v33, %v580_v39 }
 0x1a8   :  { %v845_v54 = vmul.f32 %v825_v63, %v1412_v45  ;;  %v746_v13 = vadd.f32 %v726_v44, %v1480_v40  ;;  %v1522_v45 = vadd.f32 %v1394_v16, %v644_v46  ;;  %vm586_vm15 = vweird.f32 %v1499_v33 }
 0x1a9   :  { %v945_v58 = vpop.eup %944  ;;  %870 = vst.msk [vmem:[%s1869_s5 + $0x28] sm:$0xff] %vm190_vm2, %v850_v50  ;;  %v776_v60 = vmul.f32 0.7978846, %v756_v36  ;;  %v488_v35 = vsel %vm487_vm14, %v1464_v53, %v484_v52  ;;  %v582_v6 = vmul.f32 0.5, %v581_v55  ;;  %v1533_v31 = vadd.f32 1e-05, %v391_v49  ;;  %v342_v53 = vpop.xlane.xlu0 %341 }
 0x1aa   :  { %v947_v51 = vpop.eup %946  ;;  %865 = vst.msk [vmem:[%s1869_s5] sm:$0xff] %vm190_vm2, %v845_v54  ;;  %v815_v42 = vadd.f32 1.0, %v945_v58  ;;  %v766_v62 = vmul.f32 0.7978846, %v746_v13  ;;  %v625_v2 = vmul.f32 %v488_v35, %v1278_v14  ;;  %v687_v37 = vmul.f32 %v1522_v45, %v1522_v45 }
 0x1ab   :  { %v820_v12 = vadd.f32 1.0, %v947_v51  ;;  %950 = vtanh.f32 %v776_v60  ;;  %v583_v3 = vsub.f32 1.5, %v582_v6  ;;  %vm585_vm0 = vweird.f32 %v1457_v7 }
 0x1ac   :  { %v835_v57 = vmul.f32 0.5, %v815_v42  ;;  %952 = vtanh.f32 %v766_v62  ;;  %v648_v41 = vmul.f32 %v1388_v9, %v625_v2  ;;  %v707_v18 = vmul.f32 %v687_v37, %v1522_v45  ;;  %v1539_v14 = vpop.eup %948  ;;  %vm587_vm1 = vmor %vm585_vm0, %vm586_vm15 }
 0x1ad   :  { %v840_v15 = vmul.f32 0.5, %v820_v12  ;;  %954 = vrsqrt.f32 %v1533_v31  ;;  %v584_v20 = vmul.f32 %v1499_v33, %v583_v3  ;;  %v386_v21 = vmul.f32 %v342_v53, %v1224_v28 }
 0x1ae   :  { %v855_v25 = vmul.f32 %v835_v57, %v1436_v1  ;;  %v1543_v19 = vadd.f32 %v1394_v16, %v648_v41  ;;  %v727_v24 = vmul.f32 0.044715, %v707_v18  ;;  %v500_v7 = vmul.f32 %v1539_v14, %v1495_v48 }
 0x1af   :  { %v860_v23 = vmul.f32 %v840_v15, %v1443_v47  ;;  %v588_v34 = vsel %vm587_vm1, %v1499_v33, %v584_v20  ;;  %vm505_vm4 = vweird.f32 %v1495_v48  ;;  %v1560_v47 = vadd.f32 1e-05, %v386_v21  ;;  %v348_v48 = vpop.xlane.xlu2 %347 }
 0x1b0   :  { %875 = vst.msk [vmem:[%s1869_s5 + $0x50] sm:$0xff] %vm190_vm2, %v855_v25  ;;  %v691_v1 = vmul.f32 %v1543_v19, %v1543_v19  ;;  %v747_v43 = vadd.f32 %v727_v24, %v1522_v45  ;;  %v635_v59 = vmul.f32 %v588_v34, %v1269_v5  ;;  %v501_v63 = vmul.f32 %v1539_v14, %v500_v7 }
 0x1b1   :  { %v951_v38 = vpop.eup %950  ;;  %880 = vst.msk [vmem:[%s1869_s5 + $0x78] sm:$0xff] %vm190_vm2, %v860_v23  ;;  %v382_v44 = vmul.f32 %v330_v17, %v1224_v28  ;;  %956 = vrsqrt.f32 %v1560_v47  ;;  %v393_v50 = vmul.f32 %v363_v27, %v1224_v28  ;;  %vm506_vm5 = vweird.f32 %v1539_v14  ;;  %v360_v3 = vpop.xlane.xlu0 %359 }
 0x1b2   :  { %v953_v39 = vpop.eup %952  ;;  %v816_v33 = vadd.f32 1.0, %v951_v38  ;;  %v711_v49 = vmul.f32 %v691_v1, %v1543_v19  ;;  %v767_v52 = vmul.f32 0.7978846, %v747_v43  ;;  %v658_v54 = vmul.f32 %v1388_v9, %v635_v59  ;;  %vm507_vm6 = vmor %vm505_vm4, %vm506_vm5 }
 0x1b3   :  { %v955_v36 = vpop.eup %954  ;;  %v806_v46 = vadd.f32 1.0, %v953_v39  ;;  %v502_v13 = vmul.f32 0.5, %v501_v63  ;;  %v1581_v6 = vadd.f32 1e-05, %v382_v44  ;;  %v1587_v57 = vadd.f32 1e-05, %v393_v50 }
 0x1b4   :  { %v836_v55 = vmul.f32 0.5, %v816_v33  ;;  %v731_v5 = vmul.f32 0.044715, %v711_v49  ;;  %v540_v58 = vmul.f32 %v955_v36, %v1533_v31  ;;  %958 = vtanh.f32 %v767_v52 }
 0x1b5   :  { %v826_v60 = vmul.f32 0.5, %v806_v46  ;;  %v1577_v35 = vadd.f32 %v1394_v16, %v658_v54  ;;  %v503_v51 = vsub.f32 1.5, %v502_v13  ;;  %960 = vrsqrt.f32 %v1581_v6  ;;  %v372_v46 = vpop.xlane.xlu1 %371 }
 0x1b6   :  { %v856_v42 = vmul.f32 %v836_v55, %v1473_v56  ;;  %v751_v62 = vadd.f32 %v731_v5, %v1543_v19  ;;  %v541_v2 = vmul.f32 %v955_v36, %v540_v58  ;;  %vm545_vm7 = vweird.f32 %v1533_v31 }
 0x1b7   :  { %v846_v12 = vmul.f32 %v826_v60, %v1480_v40  ;;  %v701_v37 = vmul.f32 %v1577_v35, %v1577_v35  ;;  %v504_v53 = vmul.f32 %v1539_v14, %v503_v51  ;;  %v1589_v41 = vpop.eup %956  ;;  %vm546_vm8 = vweird.f32 %v955_v36 }
 0x1b8   :  { %876 = vst.msk [vmem:[%s1869_s5 + $0x58] sm:$0xff] %vm190_vm2, %v856_v42  ;;  %v771_v56 = vmul.f32 0.7978846, %v751_v62  ;;  %v542_v40 = vmul.f32 0.5, %v541_v2  ;;  %v490_v25 = vmul.f32 %v1589_v41, %v1560_v47  ;;  %v392_v7 = vmul.f32 %v360_v3, %v1224_v28  ;;  %vm547_vm9 = vmor %vm545_vm7, %vm546_vm8 }
 0x1b9   :  { %866 = vst.msk [vmem:[%s1869_s5 + $0x8] sm:$0xff] %vm190_vm2, %v846_v12  ;;  %v721_v15 = vmul.f32 %v701_v37, %v1577_v35  ;;  %v508_v18 = vsel %vm507_vm6, %v1539_v14, %v504_v53  ;;  %v388_v34 = vmul.f32 %v348_v48, %v1224_v28  ;;  %vm495_vm10 = vweird.f32 %v1560_v47 }
 0x1ba   :  { %962 = vtanh.f32 %v771_v56  ;;  %v627_v20 = vmul.f32 %v508_v18, %v1293_v29  ;;  %v543_v21 = vsub.f32 1.5, %v542_v40  ;;  %v959_v17 = vpop.eup %958  ;;  %v491_v24 = vmul.f32 %v1589_v41, %v490_v25 }
 0x1bb   :  { %v741_v23 = vmul.f32 0.044715, %v721_v15  ;;  %964 = vrsqrt.f32 %v1587_v57  ;;  %v807_v14 = vadd.f32 1.0, %v959_v17  ;;  %v1619_v43 = vadd.f32 1e-05, %v392_v7  ;;  %v1621_v59 = vpop.eup %960 }
 0x1bc   :  { %v650_v27 = vmul.f32 %v1388_v9, %v627_v20  ;;  %v544_v1 = vmul.f32 %v955_v36, %v543_v21  ;;  %v492_v29 = vmul.f32 0.5, %v491_v24  ;;  %vm496_vm11 = vweird.f32 %v1589_v41 }
 0x1bd   :  { %v761_v38 = vadd.f32 %v741_v23, %v1577_v35  ;;  %v827_v63 = vmul.f32 0.5, %v807_v14  ;;  %v450_v31 = vmul.f32 %v1621_v59, %v1581_v6  ;;  %vm455_vm12 = vweird.f32 %v1581_v6  ;;  %vm497_vm13 = vmor %vm495_vm10, %vm496_vm11 }
 0x1be   :  { %v1624_v44 = vadd.f32 %v1394_v16, %v650_v27  ;;  %v548_v39 = vsel %vm547_vm9, %v955_v36, %v544_v1  ;;  %v493_v50 = vsub.f32 1.5, %v492_v29  ;;  %966 = vrsqrt.f32 %v1619_v43 }
 0x1bf   :  { %v781_v33 = vmul.f32 0.7978846, %v761_v38  ;;  %v631_v49 = vmul.f32 %v548_v39, %v1299_v22  ;;  %v847_v54 = vmul.f32 %v827_v63, %v1522_v45  ;;  %v1635_v36 = vadd.f32 1e-05, %v388_v34 }
 0x1c0   :  { %v963_v52 = vpop.eup %962  ;;  %v693_v13 = vmul.f32 %v1624_v44, %v1624_v44  ;;  %v494_v58 = vmul.f32 %v1589_v41, %v493_v50  ;;  %v451_v60 = vmul.f32 %v1621_v59, %v450_v31  ;;  %v396_v42 = vmul.f32 %v372_v46, %v1224_v28 }
 0x1c1   :  { %v1637_v55 = vpop.eup %964  ;;  %v811_v22 = vadd.f32 1.0, %v963_v52  ;;  %968 = vtanh.f32 %v781_v33  ;;  %v654_v5 = vmul.f32 %v1388_v9, %v631_v49  ;;  %867 = vst.msk [vmem:[%s1869_s5 + $0x10] sm:$0xff] %vm190_vm2, %v847_v54  ;;  %vm456_vm14 = vweird.f32 %v1621_v59 }
 0x1c2   :  { %v713_v45 = vmul.f32 %v693_v13, %v1624_v44  ;;  %v560_v51 = vmul.f32 %v1637_v55, %v1587_v57  ;;  %v498_v12 = vsel %vm497_vm13, %v1589_v41, %v494_v58  ;;  %vm565_vm15 = vweird.f32 %v1587_v57  ;;  %vm457_vm4 = vmor %vm455_vm12, %vm456_vm14 }
 0x1c3   :  { %v831_v62 = vmul.f32 0.5, %v811_v22  ;;  %v1655_v2 = vadd.f32 %v1394_v16, %v654_v5  ;;  %v626_v47 = vmul.f32 %v498_v12, %v1296_v30  ;;  %v452_v53 = vmul.f32 0.5, %v451_v60 }
 0x1c4   :  { %v733_v37 = vmul.f32 0.044715, %v713_v45  ;;  %v561_v56 = vmul.f32 %v1637_v55, %v560_v51  ;;  %vm566_vm0 = vweird.f32 %v1637_v55  ;;  %970 = vrsqrt.f32 %v1635_v36  ;;  %v1667_v41 = vpop.eup %966 }
 0x1c5   :  { %v851_v40 = vmul.f32 %v831_v62, %v1543_v19  ;;  %v697_v3 = vmul.f32 %v1655_v2, %v1655_v2  ;;  %v649_v18 = vmul.f32 %v1388_v9, %v626_v47  ;;  %v453_v25 = vsub.f32 1.5, %v452_v53  ;;  %vm567_vm5 = vmor %vm565_vm15, %vm566_vm0 }
 0x1c6   :  { %v753_v15 = vadd.f32 %v733_v37, %v1624_v44  ;;  %v562_v30 = vmul.f32 0.5, %v561_v56  ;;  %v550_v20 = vmul.f32 %v1667_v41, %v1619_v43  ;;  %vm555_vm1 = vweird.f32 %v1619_v43 }
 0x1c7   :  { %v969_v48 = vpop.eup %968  ;;  %871 = vst.msk [vmem:[%s1869_s5 + $0x30] sm:$0xff] %vm190_vm2, %v851_v40  ;;  %v717_v19 = vmul.f32 %v697_v3, %v1655_v2  ;;  %v1679_v21 = vadd.f32 1e-05, %v396_v42  ;;  %v1682_v24 = vadd.f32 %v1394_v16, %v649_v18  ;;  %v454_v7 = vmul.f32 %v1621_v59, %v453_v25 }
 0x1c8   :  { %v821_v17 = vadd.f32 1.0, %v969_v48  ;;  %v773_v23 = vmul.f32 0.7978846, %v753_v15  ;;  %v563_v27 = vsub.f32 1.5, %v562_v30  ;;  %v551_v1 = vmul.f32 %v1667_v41, %v550_v20 }
 0x1c9   :  { %v737_v14 = vmul.f32 0.044715, %v717_v19  ;;  %972 = vrsqrt.f32 %v1679_v21  ;;  %v692_v38 = vmul.f32 %v1682_v24, %v1682_v24  ;;  %v458_v29 = vsel %vm457_vm4, %v1621_v59, %v454_v7 }
 0x1ca   :  { %v841_v34 = vmul.f32 0.5, %v821_v17  ;;  %974 = vtanh.f32 %v773_v23  ;;  %v1694_v63 = vpop.eup %970  ;;  %v622_v33 = vmul.f32 %v458_v29, %v1312_v26  ;;  %v564_v6 = vmul.f32 %v1637_v55, %v563_v27  ;;  %v333_v26 = vpop.xlane.xlu0 %332 }
 0x1cb   :  { %v757_v39 = vadd.f32 %v737_v14, %v1655_v2  ;;  %v552_v49 = vmul.f32 0.5, %v551_v1  ;;  %v712_v31 = vmul.f32 %v692_v38, %v1682_v24  ;;  %vm556_vm6 = vweird.f32 %v1667_v41  ;;  %v375_v23 = vpop.xlane.xlu2 %374 }
 0x1cc   :  { %v861_v50 = vmul.f32 %v841_v34, %v1577_v35  ;;  %v510_v59 = vmul.f32 %v1694_v63, %v1635_v36  ;;  %vm515_vm7 = vweird.f32 %v1635_v36  ;;  %v645_v52 = vmul.f32 %v1388_v9, %v622_v33  ;;  %vm557_vm9 = vmor %vm555_vm1, %vm556_vm6 }
 0x1cd   :  { %v777_v46 = vmul.f32 0.7978846, %v757_v39  ;;  %v568_v35 = vsel %vm567_vm5, %v1637_v55, %v564_v6  ;;  %v553_v54 = vsub.f32 1.5, %v552_v49  ;;  %v732_v57 = vmul.f32 0.044715, %v712_v31 }
 0x1ce   :  { %881 = vst.msk [vmem:[%s1869_s5 + $0x80] sm:$0xff] %vm190_vm2, %v861_v50  ;;  %v633_v13 = vmul.f32 %v568_v35, %v1323_v32  ;;  %v511_v22 = vmul.f32 %v1694_v63, %v510_v59  ;;  %vm516_vm8 = vweird.f32 %v1694_v63  ;;  %v1721_v58 = vadd.f32 %v1394_v16, %v645_v52 }
 0x1cf   :  { %v1718_v5 = vpop.eup %972  ;;  %976 = vtanh.f32 %v777_v46  ;;  %v554_v55 = vmul.f32 %v1667_v41, %v553_v54  ;;  %v383_v45 = vmul.f32 %v333_v26, %v1224_v28  ;;  %v752_v51 = vadd.f32 %v732_v57, %v1682_v24  ;;  %vm517_vm11 = vmor %vm515_vm7, %vm516_vm8 }
 0x1d0   :  { %v975_v60 = vpop.eup %974  ;;  %v656_v42 = vmul.f32 %v1388_v9, %v633_v13  ;;  %v512_v32 = vmul.f32 0.5, %v511_v22  ;;  %v590_v62 = vmul.f32 %v1718_v5, %v1679_v21  ;;  %v688_v37 = vmul.f32 %v1721_v58, %v1721_v58 }
 0x1d1   :  { %v813_v12 = vadd.f32 1.0, %v975_v60  ;;  %v558_v47 = vsel %vm557_vm9, %v1667_v41, %v554_v55  ;;  %vm595_vm10 = vweird.f32 %v1679_v21  ;;  %v772_v53 = vmul.f32 0.7978846, %v752_v51 }
 0x1d2   :  { %v1738_v56 = vadd.f32 %v1394_v16, %v656_v42  ;;  %v632_v40 = vmul.f32 %v558_v47, %v1326_v61  ;;  %v513_v43 = vsub.f32 1.5, %v512_v32  ;;  %v708_v15 = vmul.f32 %v688_v37, %v1721_v58  ;;  %v378_v34 = vpop.xlane.xlu0 %377 }
 0x1d3   :  { %v833_v3 = vmul.f32 0.5, %v813_v12  ;;  %v591_v18 = vmul.f32 %v1718_v5, %v590_v62  ;;  %v1743_v25 = vadd.f32 1e-05, %v383_v45  ;;  %978 = vtanh.f32 %v772_v53 }
 0x1d4   :  { %v699_v41 = vmul.f32 %v1738_v56, %v1738_v56  ;;  %v655_v30 = vmul.f32 %v1388_v9, %v632_v40  ;;  %v514_v48 = vmul.f32 %v1694_v63, %v513_v43  ;;  %v728_v61 = vmul.f32 0.044715, %v708_v15 }
 0x1d5   :  { %v977_v19 = vpop.eup %976  ;;  %v853_v20 = vmul.f32 %v833_v3, %v1624_v44  ;;  %v592_v17 = vmul.f32 0.5, %v591_v18  ;;  %980 = vrsqrt.f32 %v1743_v25  ;;  %vm596_vm12 = vweird.f32 %v1718_v5 }
 0x1d6   :  { %v817_v7 = vadd.f32 1.0, %v977_v19  ;;  %v719_v14 = vmul.f32 %v699_v41, %v1738_v56  ;;  %v1757_v27 = vadd.f32 %v1394_v16, %v655_v30  ;;  %v518_v1 = vsel %vm517_vm11, %v1694_v63, %v514_v48  ;;  %vm597_vm13 = vmor %vm595_vm10, %vm596_vm12 }
 0x1d7   :  { %873 = vst.msk [vmem:[%s1869_s5 + $0x40] sm:$0xff] %vm190_vm2, %v853_v20  ;;  %v748_v44 = vadd.f32 %v728_v61, %v1721_v58  ;;  %v628_v36 = vmul.f32 %v518_v1, %v1330_v0  ;;  %v593_v38 = vsub.f32 1.5, %v592_v17  ;;  %v397_v63 = vmul.f32 %v375_v23, %v1224_v28 }
 0x1d8   :  { %v837_v29 = vmul.f32 0.5, %v817_v7  ;;  %v739_v39 = vmul.f32 0.044715, %v719_v14  ;;  %v698_v33 = vmul.f32 %v1757_v27, %v1757_v27  ;;  %v398_v31 = vmul.f32 %v378_v34, %v1224_v28 }
 0x1d9   :  { %v768_v6 = vmul.f32 0.7978846, %v748_v44  ;;  %v651_v49 = vmul.f32 %v1388_v9, %v628_v36  ;;  %v594_v50 = vmul.f32 %v1718_v5, %v593_v38  ;;  %v979_v59 = vpop.eup %978  ;;  %v1778_v52 = vadd.f32 1e-05, %v397_v63 }
 0x1da   :  { %v857_v0 = vmul.f32 %v837_v29, %v1655_v2  ;;  %v759_v26 = vadd.f32 %v739_v39, %v1738_v56  ;;  %v718_v46 = vmul.f32 %v698_v33, %v1757_v27  ;;  %v812_v54 = vadd.f32 1.0, %v979_v59 }
 0x1db   :  { %v981_v35 = vpop.eup %980  ;;  %982 = vtanh.f32 %v768_v6  ;;  %v1781_v57 = vadd.f32 %v1394_v16, %v651_v49  ;;  %v598_v28 = vsel %vm597_vm13, %v1718_v5, %v594_v50  ;;  %v1797_v62 = vadd.f32 1e-05, %v398_v31 }
 0x1dc   :  { %877 = vst.msk [vmem:[%s1869_s5 + $0x60] sm:$0xff] %vm190_vm2, %v857_v0  ;;  %v779_v2 = vmul.f32 0.7978846, %v759_v26  ;;  %v738_v13 = vmul.f32 0.044715, %v718_v46  ;;  %v636_v21 = vmul.f32 %v598_v28, %v1339_v11  ;;  %v460_v22 = vmul.f32 %v981_v35, %v1743_v25 }
 0x1dd   :  { %v832_v55 = vmul.f32 0.5, %v812_v54  ;;  %v694_v45 = vmul.f32 %v1781_v57, %v1781_v57  ;;  %984 = vrsqrt.f32 %v1778_v52  ;;  %vm466_vm14 = vweird.f32 %v981_v35 }
 0x1de   :  { %986 = vtanh.f32 %v779_v2  ;;  %v758_v5 = vadd.f32 %v738_v13, %v1757_v27  ;;  %v659_v60 = vmul.f32 %v1388_v9, %v636_v21  ;;  %v461_v51 = vmul.f32 %v981_v35, %v460_v22 }
 0x1df   :  { %v852_v42 = vmul.f32 %v832_v55, %v1682_v24  ;;  %v714_v32 = vmul.f32 %v694_v45, %v1781_v57  ;;  %988 = vrsqrt.f32 %v1797_v62  ;;  %vm465_vm15 = vweird.f32 %v1743_v25 }
 0x1e0   :  { %v778_v11 = vmul.f32 0.7978846, %v758_v5  ;;  %v1800_v12 = vadd.f32 %v1394_v16, %v659_v60  ;;  %v462_v37 = vmul.f32 0.5, %v461_v51  ;;  %vm467_vm0 = vmor %vm465_vm15, %vm466_vm14  ;;  %vm605_vm4 = vweird.f32 %v1778_v52 }
 0x1e1   :  { %v983_v47 = vpop.eup %982  ;;  %872 = vst.msk [vmem:[%s1869_s5 + $0x38] sm:$0xff] %vm190_vm2, %v852_v42  ;;  %v734_v53 = vmul.f32 0.044715, %v714_v32  ;;  %vm615_vm7 = vweird.f32 %v1797_v62 }
 0x1e2   :  { %v808_v24 = vadd.f32 1.0, %v983_v47  ;;  %990 = vtanh.f32 %v778_v11  ;;  %v702_v40 = vmul.f32 %v1800_v12, %v1800_v12  ;;  %v463_v43 = vsub.f32 1.5, %v462_v37 }
 0x1e3   :  { %v985_v3 = vpop.eup %984  ;;  %v754_v15 = vadd.f32 %v734_v53, %v1781_v57 }
 0x1e4   :  { %v987_v18 = vpop.eup %986  ;;  %v828_v41 = vmul.f32 0.5, %v808_v24  ;;  %v722_v30 = vmul.f32 %v702_v40, %v1800_v12  ;;  %v464_v48 = vmul.f32 %v981_v35, %v463_v43  ;;  %v600_v19 = vmul.f32 %v985_v3, %v1778_v52 }
 0x1e5   :  { %v819_v20 = vadd.f32 1.0, %v987_v18  ;;  %v774_v61 = vmul.f32 0.7978846, %v754_v15  ;;  %v989_v1 = vpop.eup %988  ;;  %vm606_vm1 = vweird.f32 %v985_v3 }
 0x1e6   :  { %v848_v17 = vmul.f32 %v828_v41, %v1721_v58  ;;  %v742_v23 = vmul.f32 0.044715, %v722_v30  ;;  %v468_v7 = vsel %vm467_vm0, %v981_v35, %v464_v48  ;;  %v601_v14 = vmul.f32 %v985_v3, %v600_v19  ;;  %vm607_vm5 = vmor %vm605_vm4, %vm606_vm1 }
 0x1e7   :  { %v839_v34 = vmul.f32 0.5, %v819_v20  ;;  %992 = vtanh.f32 %v774_v61  ;;  %v623_v25 = vmul.f32 %v468_v7, %v1342_v10  ;;  %v610_v29 = vmul.f32 %v989_v1, %v1797_v62 }
 0x1e8   :  { %v991_v44 = vpop.eup %990  ;;  %868 = vst.msk [vmem:[%s1869_s5 + $0x18] sm:$0xff] %vm190_vm2, %v848_v17  ;;  %v762_v36 = vadd.f32 %v742_v23, %v1800_v12  ;;  %v602_v38 = vmul.f32 0.5, %v601_v14  ;;  %vm616_vm6 = vweird.f32 %v989_v1 }
 0x1e9   :  { %v859_v58 = vmul.f32 %v839_v34, %v1738_v56  ;;  %v818_v39 = vadd.f32 1.0, %v991_v44  ;;  %v646_v33 = vmul.f32 %v1388_v9, %v623_v25  ;;  %v611_v10 = vmul.f32 %v989_v1, %v610_v29  ;;  %vm617_vm8 = vmor %vm615_vm7, %vm616_vm6 }
 0x1ea   :  { %v782_v63 = vmul.f32 0.7978846, %v762_v36  ;;  %v603_v6 = vsub.f32 1.5, %v602_v38 }
 0x1eb   :  { %879 = vst.msk [vmem:[%s1869_s5 + $0x70] sm:$0xff] %vm190_vm2, %v859_v58  ;;  %v838_v49 = vmul.f32 0.5, %v818_v39  ;;  %v669_v50 = vadd.f32 %v1394_v16, %v646_v33  ;;  %v612_v56 = vmul.f32 0.5, %v611_v10 }
 0x1ec   :  { %994 = vtanh.f32 %v782_v63  ;;  %v604_v31 = vmul.f32 %v985_v3, %v603_v6 }
 0x1ed   :  { %v993_v59 = vpop.eup %992  ;;  %v858_v0 = vmul.f32 %v838_v49, %v1757_v27  ;;  %v689_v26 = vmul.f32 %v669_v50, %v669_v50  ;;  %v613_v54 = vsub.f32 1.5, %v612_v56 }
 0x1ee   :  { %v814_v46 = vadd.f32 1.0, %v993_v59  ;;  %v608_v35 = vsel %vm607_vm5, %v985_v3, %v604_v31 }
 0x1ef   :  { %878 = vst.msk [vmem:[%s1869_s5 + $0x68] sm:$0xff] %vm190_vm2, %v858_v0  ;;  %v709_v28 = vmul.f32 %v689_v26, %v669_v50  ;;  %v637_v2 = vmul.f32 %v608_v35, %v1347_v8  ;;  %v614_v52 = vmul.f32 %v989_v1, %v613_v54 }
 0x1f0   :  { %v834_v13 = vmul.f32 0.5, %v814_v46 }
 0x1f1   :  { %v729_v21 = vmul.f32 0.044715, %v709_v28  ;;  %v660_v27 = vmul.f32 %v1388_v9, %v637_v2  ;;  %v618_v45 = vsel %vm617_vm8, %v989_v1, %v614_v52 }
 0x1f2   :  { %v995_v22 = vpop.eup %994  ;;  %v854_v55 = vmul.f32 %v834_v13, %v1781_v57  ;;  %v638_v42 = vmul.f32 %v618_v45, %v1358_v4 }
 0x1f3   :  { %v822_v5 = vadd.f32 1.0, %v995_v22  ;;  %v749_v60 = vadd.f32 %v729_v21, %v669_v50  ;;  %v683_v51 = vadd.f32 %v1394_v16, %v660_v27 }
 0x1f4   :  { %874 = vst.msk [vmem:[%s1869_s5 + $0x48] sm:$0xff] %vm190_vm2, %v854_v55  ;;  %v661_v11 = vmul.f32 %v1388_v9, %v638_v42 }
 0x1f5   :  { %v842_v8 = vmul.f32 0.5, %v822_v5  ;;  %v769_v32 = vmul.f32 0.7978846, %v749_v60  ;;  %v703_v62 = vmul.f32 %v683_v51, %v683_v51 }
 0x1f6   :  { %v684_v47 = vadd.f32 %v1394_v16, %v661_v11 }
 0x1f7   :  { %v862_v37 = vmul.f32 %v842_v8, %v1800_v12  ;;  %996 = vtanh.f32 %v769_v32  ;;  %v723_v57 = vmul.f32 %v703_v62, %v683_v51 }
 0x1f8   :  { %v704_v53 = vmul.f32 %v684_v47, %v684_v47 }
 0x1f9   :  { %882 = vst.msk [vmem:[%s1869_s5 + $0x88] sm:$0xff] %vm190_vm2, %v862_v37  ;;  %v743_v4 = vmul.f32 0.044715, %v723_v57 }
 0x1fa   :  { %v724_v40 = vmul.f32 %v704_v53, %v684_v47 }
 0x1fb   :  { %v763_v24 = vadd.f32 %v743_v4, %v683_v51 }
 0x1fc   :  { %v744_v15 = vmul.f32 0.044715, %v724_v40 }
 0x1fd   :  { %v997_v43 = vpop.eup %996  ;;  %v783_v3 = vmul.f32 0.7978846, %v763_v24 }
 0x1fe   :  { %v809_v18 = vadd.f32 1.0, %v997_v43  ;;  %v764_v9 = vadd.f32 %v744_v15, %v684_v47 }
 0x1ff   :  { %998 = vtanh.f32 %v783_v3 }
 0x200   :  { %v829_v12 = vmul.f32 0.5, %v809_v18  ;;  %v784_v41 = vmul.f32 0.7978846, %v764_v9 }
 0x202   :  { %v849_v30 = vmul.f32 %v829_v12, %v669_v50  ;;  %1000 = vtanh.f32 %v784_v41 }
 0x204   :  { %869 = vst.msk [vmem:[%s1869_s5 + $0x20] sm:$0xff] %vm190_vm2, %v849_v30 }
 0x205   :  { %v999_v16 = vpop.eup %998 }
 0x206   :  { %v823_v48 = vadd.f32 1.0, %v999_v16 }
 0x208   :  { %v843_v19 = vmul.f32 0.5, %v823_v48  ;;  %v1001_v20 = vpop.eup %1000 }
 0x209   :  { %v824_v17 = vadd.f32 1.0, %v1001_v20 }
 0x20a   :  { %v863_v61 = vmul.f32 %v843_v19, %v683_v51 }
 0x20b   :  { %v844_v23 = vmul.f32 0.5, %v824_v17 }
 0x20c   :  { %883 = vst.msk [vmem:[%s1869_s5 + $0x90] sm:$0xff] %vm190_vm2, %v863_v61 }
 0x20d   :  { %v864_v7 = vmul.f32 %v844_v23, %v684_v47 }
 0x20f   :  { %884 = vst.msk [vmem:[%s1869_s5 + $0x98] sm:$0x3f] %vm248_vm3, %v864_v7 }

// kernel: wav2vec2_forward.5
= control target key start
LH: loop header
LB: loop body
LE: loop exit
PB: predicated region body
PF: predicated region fallthrough
CT: control target
= control target key end

     0   :  { %vm46_vm0 = vcmask 785408   ;;  %vm126_vm1 = vcmask 261120   ;;  %vm154_vm2 = vcmask 259072   ;;  %v577_v53 = vmov 32.0   ;;  %s982_s1 = inlined_call_operand.vmem [shape: f32[96,32], index: 1, kind: input, shape index: {}]   ;;  %s983_s2 = inlined_call_operand.vmem [shape: f32[1,32], index: 2, kind: input, shape index: {}]   ;;  %s984_s0 = inlined_call_operand.vmem [shape: f32[78,96], index: 0, kind: input, shape index: {}]   ;;  %s985_s3 = inlined_call_operand.vmem [shape: f32[1,32], index: 3, kind: input, shape index: {}]   ;;  %s986_s4 = inlined_call_operand.vmem [shape: f32[1,32], index: 4, kind: input, shape index: {}]   ;;  %s987_s5 = inlined_call_operand.vmem [shape: f32[78,32], index: 5, kind: output, shape index: {}]  }
   0x1   :  { %v41_v0 = vld [vmem:[%s982_s1 + $0x58] sm:$0xff]  ;;  %v40_v1 = vld [vmem:[%s982_s1 + $0x50] sm:$0xff]  ;;  %v39_v2 = vld [vmem:[%s982_s1 + $0x48] sm:$0xff]  ;;  %535 = vrcp.f32 %v577_v53 }
   0x2   :  { %81 = vmatpush.msra.mxu0 %v41_v0  ;;  %495 = vmatpush.msra.mxu1 %v41_v0  ;;  %v38_v3 = vld [vmem:[%s982_s1 + $0x40] sm:$0xff]  ;;  %v37_v4 = vld [vmem:[%s982_s1 + $0x38] sm:$0xff]  ;;  %v36_v5 = vld [vmem:[%s982_s1 + $0x30] sm:$0xff] }
   0x3   :  { %496 = vmatpush.msra.mxu2 %v41_v0  ;;  %497 = vmatpush.msra.mxu3 %v41_v0  ;;  %v35_v6 = vld [vmem:[%s982_s1 + $0x28] sm:$0xff]  ;;  %v34_v7 = vld [vmem:[%s982_s1 + $0x20] sm:$0xff]  ;;  %v33_v8 = vld [vmem:[%s982_s1 + $0x18] sm:$0xff] }
   0x4   :  { %82 = vmatpush.msra.mxu0 %v40_v1  ;;  %498 = vmatpush.msra.mxu1 %v40_v1  ;;  %v32_v9 = vld [vmem:[%s982_s1 + $0x10] sm:$0xff]  ;;  %v31_v10 = vld [vmem:[%s982_s1 + $0x8] sm:$0xff]  ;;  %v30_v11 = vld [vmem:[%s982_s1] sm:$0xff] }
   0x5   :  { %499 = vmatpush.msra.mxu2 %v40_v1  ;;  %500 = vmatpush.msra.mxu3 %v40_v1  ;;  %v20_v12 = vld [vmem:[%s984_s0] sm:$0xff]  ;;  %v22_v13 = vld [vmem:[%s984_s0 + $0x10] sm:$0xff]  ;;  %v27_v15 = vld [vmem:[%s984_s0 + $0x38] sm:$0xff] }
   0x6   :  { %83 = vmatpush.msra.mxu0 %v39_v2  ;;  %501 = vmatpush.msra.mxu1 %v39_v2  ;;  %v24_v14 = vld [vmem:[%s984_s0 + $0x20] sm:$0xff]  ;;  %v21_v16 = vld [vmem:[%s984_s0 + $0x8] sm:$0xff]  ;;  %v23_v17 = vld [vmem:[%s984_s0 + $0x18] sm:$0xff] }
   0x7   :  { %502 = vmatpush.msra.mxu2 %v39_v2  ;;  %503 = vmatpush.msra.mxu3 %v39_v2  ;;  %v25_v18 = vld [vmem:[%s984_s0 + $0x28] sm:$0xff]  ;;  %v28_v19 = vld [vmem:[%s984_s0 + $0x40] sm:$0xff]  ;;  %v26_v20 = vld [vmem:[%s984_s0 + $0x30] sm:$0xff]  ;;  %v536_v54 = vpop.eup %535 }
   0x8   :  { %84 = vmatpush.msra.mxu0 %v38_v3  ;;  %504 = vmatpush.msra.mxu1 %v38_v3  ;;  %v29_v21 = vld [vmem:[%s984_s0 + $0x48] sm:$0x3f]  ;;  %v532_v22 = vld [vmem:[%s983_s2] ss:$0 sm:$0xff]  ;;  %v159_v55 = vmul.f32 32.0, %v536_v54  ;;  %vm163_vm3 = vweird.f32 %v536_v54 }
   0x9   :  { %505 = vmatpush.msra.mxu2 %v38_v3  ;;  %506 = vmatpush.msra.mxu3 %v38_v3 }
   0xa   :  { %85 = vmatpush.msra.mxu0 %v37_v4  ;;  %507 = vmatpush.msra.mxu1 %v37_v4  ;;  %v160_v56 = vsub.f32 1.0, %v159_v55 }
   0xb   :  { %508 = vmatpush.msra.mxu2 %v37_v4  ;;  %509 = vmatpush.msra.mxu3 %v37_v4 }
   0xc   :  { %86 = vmatpush.msra.mxu0 %v36_v5  ;;  %510 = vmatpush.msra.mxu1 %v36_v5  ;;  %v161_v57 = vmul.f32 %v536_v54, %v160_v56 }
   0xd   :  { %511 = vmatpush.msra.mxu2 %v36_v5  ;;  %512 = vmatpush.msra.mxu3 %v36_v5 }
   0xe   :  { %87 = vmatpush.msra.mxu0 %v35_v6  ;;  %513 = vmatpush.msra.mxu1 %v35_v6  ;;  %v162_v58 = vadd.f32 %v536_v54, %v161_v57 }
   0xf   :  { %514 = vmatpush.msra.mxu2 %v35_v6  ;;  %515 = vmatpush.msra.mxu3 %v35_v6 }
  0x10   :  { %88 = vmatpush.msra.mxu0 %v34_v7  ;;  %516 = vmatpush.msra.mxu1 %v34_v7  ;;  %v709_v59 = vsel %vm163_vm3, %v536_v54, %v162_v58 }
  0x11   :  { %517 = vmatpush.msra.mxu2 %v34_v7  ;;  %518 = vmatpush.msra.mxu3 %v34_v7 }
  0x12   :  { %89 = vmatpush.msra.mxu0 %v33_v8  ;;  %519 = vmatpush.msra.mxu1 %v33_v8 }
  0x13   :  { %520 = vmatpush.msra.mxu2 %v33_v8  ;;  %521 = vmatpush.msra.mxu3 %v33_v8 }
  0x14   :  { %90 = vmatpush.msra.mxu0 %v32_v9  ;;  %522 = vmatpush.msra.mxu1 %v32_v9 }
  0x15   :  { %523 = vmatpush.msra.mxu2 %v32_v9  ;;  %524 = vmatpush.msra.mxu3 %v32_v9 }
  0x16   :  { %91 = vmatpush.msra.mxu0 %v31_v10  ;;  %525 = vmatpush.msra.mxu1 %v31_v10 }
  0x17   :  { %526 = vmatpush.msra.mxu2 %v31_v10  ;;  %527 = vmatpush.msra.mxu3 %v31_v10 }
  0x18   :  { %92 = vmatpush.msra.mxu0 %v30_v11  ;;  %528 = vmatpush.msra.mxu1 %v30_v11 }
  0x19   :  { %529 = vmatpush.msra.mxu2 %v30_v11  ;;  %485 = vmatmul.msk.f32.vlgmr.msra.gmra.mxu0 %vm46_vm0, %v20_v12 }
  0x1a   :  { %487 = vmatmul.msk.f32.vlgmr.msra.gmra.mxu1 %vm46_vm0, %v22_v13  ;;  %489 = vmatmul.msk.f32.vlgmr.msra.gmra.mxu2 %vm46_vm0, %v24_v14 }
  0x1b   :  { %530 = vmatpush.msra.mxu3 %v30_v11 }
  0x1c   :  { %492 = vmatmul.msk.f32.vlgmr.msra.gmra.mxu3 %vm46_vm0, %v27_v15 }
  0x21   :  { %486 = vmatmul.msk.f32.gmra.mxu0 %vm46_vm0, %v21_v16 }
  0x22   :  { %488 = vmatmul.msk.f32.gmra.mxu1 %vm46_vm0, %v23_v17  ;;  %490 = vmatmul.msk.f32.gmra.mxu2 %vm46_vm0, %v25_v18 }
  0x24   :  { %493 = vmatmul.msk.f32.gmra.mxu3 %vm46_vm0, %v28_v19 }
  0x2a   :  { %491 = vmatmul.msk.f32.gmra.mxu2 %vm46_vm0, %v26_v20 }
  0x2c   :  { %494 = vmatmul.msk.f32.gmra.mxu3 %vm46_vm0, %v29_v21 }
  0x96   :  { %v94_v23 = vpop.f32.mrf.mxu0 }
  0x97   :  { %v95_v24 = vadd.f32 %v532_v22, %v94_v23  ;;  %v100_v25 = vpop.f32.mrf.mxu1 }
  0x98   :  { %v101_v26 = vadd.f32 %v532_v22, %v100_v25 }
  0x99   :  { %v127_v27 = vsel %vm126_vm1, %v95_v24, 0.0 }
  0x9a   :  { %v133_v28 = vsel %vm126_vm1, %v101_v26, 0.0  ;;  %128 = vadd.xlane.f32.xlu0 %v127_v27 }
  0x9b   :  { %134 = vadd.xlane.f32.xlu1 %v133_v28 }
  0x9d   :  { %v106_v29 = vpop.f32.mrf.mxu2 }
  0x9e   :  { %v107_v30 = vadd.f32 %v532_v22, %v106_v29  ;;  %v97_v31 = vpop.f32.mrf.mxu0 }
  0x9f   :  { %v98_v32 = vadd.f32 %v532_v22, %v97_v31  ;;  %v103_v33 = vpop.f32.mrf.mxu1  ;;  %v115_v34 = vpop.f32.mrf.mxu3 }
  0xa0   :  { %v104_v35 = vadd.f32 %v532_v22, %v103_v33  ;;  %v139_v36 = vsel %vm126_vm1, %v107_v30, 0.0  ;;  %v692_v41 = vadd.f32 %v532_v22, %v115_v34 }
  0xa1   :  { %140 = vadd.xlane.f32.xlu2 %v139_v36  ;;  %v130_v37 = vsel %vm126_vm1, %v98_v32, 0.0 }
  0xa2   :  { %v136_v38 = vsel %vm126_vm1, %v104_v35, 0.0  ;;  %131 = vadd.xlane.f32.xlu0 %v130_v37  ;;  %v148_v44 = vsel %vm126_vm1, %v692_v41, 0.0 }
  0xa3   :  { %137 = vadd.xlane.f32.xlu1 %v136_v38 }
  0xa5   :  { %v109_v39 = vpop.f32.mrf.mxu2 }
  0xa6   :  { %v110_v40 = vadd.f32 %v532_v22, %v109_v39 }
  0xa7   :  { %v118_v42 = vpop.f32.mrf.mxu3 }
  0xa8   :  { %v142_v43 = vsel %vm126_vm1, %v110_v40, 0.0  ;;  %v697_v45 = vadd.f32 %v532_v22, %v118_v42 }
  0xa9   :  { %143 = vadd.xlane.f32.xlu2 %v142_v43 }
  0xaa   :  { %v151_v48 = vsel %vm126_vm1, %v697_v45, 0.0 }
  0xab   :  { %149 = vadd.xlane.f32.xlu1 %v148_v44 }
  0xad   :  { %v112_v46 = vpop.f32.mrf.mxu2 }
  0xae   :  { %v699_v47 = vadd.f32 %v532_v22, %v112_v46 }
  0xaf   :  { %v121_v49 = vpop.f32.mrf.mxu3 }
  0xb0   :  { %v145_v50 = vsel %vm126_vm1, %v699_v47, 0.0  ;;  %v705_v51 = vadd.f32 %v532_v22, %v121_v49 }
  0xb1   :  { %152 = vadd.xlane.f32.xlu2 %v151_v48  ;;  %146 = vadd.xlane.f32.xlu0 %v145_v50 }
  0xb2   :  { %v155_v52 = vsel %vm154_vm2, %v705_v51, 0.0 }
  0xb9   :  { %156 = vadd.xlane.f32.xlu0 %v155_v52 }
 0x10d   :  { %v129_v60 = vpop.xlane.xlu0 %128 }
 0x10e   :  { %v135_v61 = vpop.xlane.xlu1 %134  ;;  %v165_v62 = vmul.f32 %v709_v59, %v129_v60 }
 0x10f   :  { %v167_v63 = vmul.f32 %v709_v59, %v135_v61 }
 0x110   :  { %v713_v0 = vsub.f32 %v95_v24, %v165_v62 }
 0x111   :  { %v715_v1 = vsub.f32 %v101_v26, %v167_v63 }
 0x112   :  { %v185_v2 = vmul.f32 %v713_v0, %v713_v0 }
 0x113   :  { %v187_v3 = vmul.f32 %v715_v1, %v715_v1 }
 0x114   :  { %v141_v4 = vpop.xlane.xlu2 %140  ;;  %v195_v5 = vsel %vm126_vm1, %v185_v2, 0.0 }
 0x115   :  { %v169_v6 = vmul.f32 %v709_v59, %v141_v4  ;;  %v201_v7 = vsel %vm126_vm1, %v187_v3, 0.0  ;;  %196 = vadd.xlane.f32.xlu1 %v195_v5  ;;  %v132_v8 = vpop.xlane.xlu0 %131 }
 0x116   :  { %v138_v9 = vpop.xlane.xlu1 %137  ;;  %202 = vadd.xlane.f32.xlu0 %v201_v7  ;;  %v166_v12 = vmul.f32 %v709_v59, %v132_v8 }
 0x117   :  { %v724_v10 = vsub.f32 %v107_v30, %v169_v6  ;;  %v168_v11 = vmul.f32 %v709_v59, %v138_v9 }
 0x118   :  { %v732_v15 = vsub.f32 %v98_v32, %v166_v12 }
 0x119   :  { %v728_v13 = vsub.f32 %v104_v35, %v168_v11  ;;  %v189_v14 = vmul.f32 %v724_v10, %v724_v10 }
 0x11a   :  { %v186_v24 = vmul.f32 %v732_v15, %v732_v15 }
 0x11b   :  { %v207_v16 = vsel %vm126_vm1, %v189_v14, 0.0  ;;  %v188_v17 = vmul.f32 %v728_v13, %v728_v13 }
 0x11c   :  { %208 = vadd.xlane.f32.xlu2 %v207_v16  ;;  %v144_v18 = vpop.xlane.xlu2 %143  ;;  %v198_v28 = vsel %vm126_vm1, %v186_v24, 0.0 }
 0x11d   :  { %v170_v19 = vmul.f32 %v709_v59, %v144_v18  ;;  %v204_v20 = vsel %vm126_vm1, %v188_v17, 0.0 }
 0x11e   :  { %v150_v21 = vpop.xlane.xlu1 %149  ;;  %205 = vadd.xlane.f32.xlu1 %v204_v20  ;;  %v796_v20 = vld [vmem:[%s985_s3] ss:$0 sm:$0xff] }
 0x11f   :  { %v739_v22 = vsub.f32 %v110_v40, %v170_v19  ;;  %v172_v23 = vmul.f32 %v709_v59, %v150_v21 }
 0x121   :  { %v190_v25 = vmul.f32 %v739_v22, %v739_v22  ;;  %v747_v26 = vsub.f32 %v692_v41, %v172_v23 }
 0x123   :  { %v210_v27 = vsel %vm126_vm1, %v190_v25, 0.0  ;;  %v192_v35 = vmul.f32 %v747_v26, %v747_v26 }
 0x124   :  { %v153_v29 = vpop.xlane.xlu2 %152  ;;  %211 = vadd.xlane.f32.xlu0 %v210_v27  ;;  %199 = vadd.xlane.f32.xlu2 %v198_v28  ;;  %v147_v30 = vpop.xlane.xlu0 %146  ;;  %v803_v27 = vld [vmem:[%s986_s4] ss:$0 sm:$0xff] }
 0x125   :  { %v173_v31 = vmul.f32 %v709_v59, %v153_v29  ;;  %v171_v32 = vmul.f32 %v709_v59, %v147_v30  ;;  %v216_v39 = vsel %vm126_vm1, %v192_v35, 0.0 }
 0x127   :  { %v754_v33 = vsub.f32 %v697_v45, %v173_v31  ;;  %v757_v34 = vsub.f32 %v699_v47, %v171_v32 }
 0x129   :  { %v193_v36 = vmul.f32 %v754_v33, %v754_v33  ;;  %v191_v37 = vmul.f32 %v757_v34, %v757_v34 }
 0x12b   :  { %v219_v38 = vsel %vm126_vm1, %v193_v36, 0.0  ;;  %v213_v40 = vsel %vm126_vm1, %v191_v37, 0.0 }
 0x12c   :  { %220 = vadd.xlane.f32.xlu0 %v219_v38  ;;  %217 = vadd.xlane.f32.xlu2 %v216_v39  ;;  %v157_v41 = vpop.xlane.xlu0 %156 }
 0x12d   :  { %214 = vadd.xlane.f32.xlu1 %v213_v40  ;;  %v174_v42 = vmul.f32 %v709_v59, %v157_v41 }
 0x12f   :  { %v770_v43 = vsub.f32 %v705_v51, %v174_v42 }
 0x131   :  { %v194_v44 = vmul.f32 %v770_v43, %v770_v43 }
 0x133   :  { %v222_v45 = vsel %vm154_vm2, %v194_v44, 0.0 }
 0x135   :  { %223 = vadd.xlane.f32.xlu1 %v222_v45 }
 0x188   :  { %v197_v46 = vpop.xlane.xlu1 %196 }
 0x189   :  { %v225_v47 = vmul.f32 %v197_v46, %v709_v59  ;;  %v203_v48 = vpop.xlane.xlu0 %202 }
 0x18a   :  { %v227_v49 = vmul.f32 %v203_v48, %v709_v59 }
 0x18b   :  { %v235_v50 = vadd.f32 1e-05, %v225_v47 }
 0x18c   :  { %v237_v52 = vadd.f32 1e-05, %v227_v49 }
 0x18d   :  { %537 = vrsqrt.f32 %v235_v50  ;;  %vm251_vm6 = vweird.f32 %v235_v50 }
 0x18e   :  { %539 = vrsqrt.f32 %v237_v52  ;;  %vm271_vm8 = vweird.f32 %v237_v52 }
 0x18f   :  { %v209_v53 = vpop.xlane.xlu2 %208 }
 0x190   :  { %v229_v51 = vmul.f32 %v209_v53, %v709_v59 }
 0x191   :  { %v206_v54 = vpop.xlane.xlu1 %205 }
 0x192   :  { %v778_v55 = vadd.f32 1e-05, %v229_v51  ;;  %v228_v56 = vmul.f32 %v206_v54, %v709_v59 }
 0x193   :  { %v538_v57 = vpop.eup %537 }
 0x194   :  { %v540_v58 = vpop.eup %539  ;;  %v246_v60 = vmul.f32 %v538_v57, %v235_v50  ;;  %541 = vrsqrt.f32 %v778_v55  ;;  %v782_v62 = vadd.f32 1e-05, %v228_v56  ;;  %vm252_vm4 = vweird.f32 %v538_v57 }
 0x195   :  { %v266_v61 = vmul.f32 %v540_v58, %v237_v52  ;;  %vm272_vm5 = vweird.f32 %v540_v58  ;;  %vm253_vm7 = vmor %vm251_vm6, %vm252_vm4  ;;  %vm291_vm10 = vweird.f32 %v778_v55 }
 0x196   :  { %v247_v63 = vmul.f32 %v538_v57, %v246_v60  ;;  %543 = vrsqrt.f32 %v782_v62  ;;  %vm273_vm9 = vmor %vm271_vm8, %vm272_vm5  ;;  %vm281_vm12 = vweird.f32 %v782_v62 }
 0x197   :  { %v267_v2 = vmul.f32 %v540_v58, %v266_v61  ;;  %v200_v3 = vpop.xlane.xlu2 %199  ;;  %v212_v4 = vpop.xlane.xlu0 %211 }
 0x198   :  { %v248_v5 = vmul.f32 0.5, %v247_v63  ;;  %v226_v6 = vmul.f32 %v200_v3, %v709_v59  ;;  %v230_v7 = vmul.f32 %v212_v4, %v709_v59 }
 0x199   :  { %v268_v8 = vmul.f32 0.5, %v267_v2 }
 0x19a   :  { %v542_v9 = vpop.eup %541  ;;  %v249_v11 = vsub.f32 1.5, %v248_v5  ;;  %v787_v12 = vadd.f32 1e-05, %v226_v6  ;;  %v789_v14 = vadd.f32 1e-05, %v230_v7 }
 0x19b   :  { %v269_v16 = vsub.f32 1.5, %v268_v8  ;;  %v286_v17 = vmul.f32 %v542_v9, %v778_v55  ;;  %vm292_vm11 = vweird.f32 %v542_v9 }
 0x19c   :  { %v250_v18 = vmul.f32 %v538_v57, %v249_v11  ;;  %545 = vrsqrt.f32 %v787_v12  ;;  %v544_v19 = vpop.eup %543  ;;  %vm261_vm14 = vweird.f32 %v787_v12  ;;  %vm293_vm15 = vmor %vm291_vm10, %vm292_vm11  ;;  %vm301_vm0 = vweird.f32 %v789_v14 }
 0x19d   :  { %v270_v21 = vmul.f32 %v540_v58, %v269_v16  ;;  %v287_v23 = vmul.f32 %v542_v9, %v286_v17  ;;  %547 = vrsqrt.f32 %v789_v14  ;;  %v276_v25 = vmul.f32 %v544_v19, %v782_v62 }
 0x19e   :  { %v254_v24 = vsel %vm253_vm7, %v538_v57, %v250_v18  ;;  %vm282_vm13 = vweird.f32 %v544_v19 }
 0x19f   :  { %v345_v28 = vmul.f32 %v254_v24, %v713_v0  ;;  %v274_v29 = vsel %vm273_vm9, %v540_v58, %v270_v21  ;;  %v288_v30 = vmul.f32 0.5, %v287_v23  ;;  %v218_v31 = vpop.xlane.xlu2 %217  ;;  %v221_v32 = vpop.xlane.xlu0 %220  ;;  %v277_v36 = vmul.f32 %v544_v19, %v276_v25  ;;  %vm283_vm3 = vmor %vm281_vm12, %vm282_vm13 }
 0x1a0   :  { %v347_v35 = vmul.f32 %v274_v29, %v715_v1  ;;  %v232_v37 = vmul.f32 %v218_v31, %v709_v59  ;;  %v215_v38 = vpop.xlane.xlu1 %214  ;;  %v233_v39 = vmul.f32 %v221_v32, %v709_v59 }
 0x1a1   :  { %v358_v40 = vmul.f32 %v796_v20, %v345_v28  ;;  %v289_v41 = vsub.f32 1.5, %v288_v30  ;;  %v278_v44 = vmul.f32 0.5, %v277_v36  ;;  %v231_v49 = vmul.f32 %v215_v38, %v709_v59 }
 0x1a2   :  { %v546_v0 = vpop.eup %545  ;;  %v360_v42 = vmul.f32 %v796_v20, %v347_v35  ;;  %v813_v45 = vadd.f32 1e-05, %v232_v37  ;;  %v828_v51 = vadd.f32 1e-05, %v233_v39 }
 0x1a3   :  { %v548_v1 = vpop.eup %547  ;;  %v816_v46 = vadd.f32 %v803_v27, %v358_v40  ;;  %v290_v47 = vmul.f32 %v542_v9, %v289_v41  ;;  %v256_v48 = vmul.f32 %v546_v0, %v787_v12  ;;  %v279_v52 = vsub.f32 1.5, %v278_v44 }
 0x1a4   :  { %v822_v50 = vadd.f32 %v803_v27, %v360_v42  ;;  %v296_v53 = vmul.f32 %v548_v1, %v789_v14  ;;  %549 = vrsqrt.f32 %v813_v45  ;;  %vm262_vm4 = vweird.f32 %v546_v0 }
 0x1a5   :  { %v381_v54 = vmul.f32 %v816_v46, %v816_v46  ;;  %v294_v56 = vsel %vm293_vm15, %v542_v9, %v290_v47  ;;  %v257_v57 = vmul.f32 %v546_v0, %v256_v48  ;;  %v280_v60 = vmul.f32 %v544_v19, %v279_v52  ;;  %vm263_vm6 = vmor %vm261_vm14, %vm262_vm4 }
 0x1a6   :  { %v383_v58 = vmul.f32 %v822_v50, %v822_v50  ;;  %v349_v55 = vmul.f32 %v294_v56, %v724_v10  ;;  %v297_v61 = vmul.f32 %v548_v1, %v296_v53  ;;  %v840_v3 = vadd.f32 1e-05, %v231_v49 }
 0x1a7   :  { %v391_v63 = vmul.f32 %v381_v54, %v816_v46  ;;  %v258_v2 = vmul.f32 0.5, %v257_v57  ;;  %v284_v6 = vsel %vm283_vm3, %v544_v19, %v280_v60  ;;  %vm302_vm5 = vweird.f32 %v548_v1 }
 0x1a8   :  { %v393_v4 = vmul.f32 %v383_v58, %v822_v50  ;;  %v362_v5 = vmul.f32 %v796_v20, %v349_v55  ;;  %v298_v7 = vmul.f32 0.5, %v297_v61  ;;  %v348_v10 = vmul.f32 %v284_v6, %v728_v13  ;;  %vm303_vm7 = vmor %vm301_vm0, %vm302_vm5 }
 0x1a9   :  { %v401_v8 = vmul.f32 0.044715, %v391_v63  ;;  %v259_v9 = vsub.f32 1.5, %v258_v2  ;;  %551 = vrsqrt.f32 %v840_v3  ;;  %vm321_vm8 = vweird.f32 %v813_v45 }
 0x1aa   :  { %v403_v11 = vmul.f32 0.044715, %v393_v4  ;;  %v847_v62 = vadd.f32 %v803_v27, %v362_v5  ;;  %v299_v16 = vsub.f32 1.5, %v298_v7  ;;  %v849_v17 = vpop.eup %549  ;;  %v361_v21 = vmul.f32 %v796_v20, %v348_v10 }
 0x1ab   :  { %v411_v18 = vadd.f32 %v401_v8, %v816_v46  ;;  %v260_v19 = vmul.f32 %v546_v0, %v259_v9  ;;  %553 = vrsqrt.f32 %v828_v51  ;;  %v316_v25 = vmul.f32 %v849_v17, %v813_v45 }
 0x1ac   :  { %v413_v13 = vadd.f32 %v403_v11, %v822_v50  ;;  %v385_v23 = vmul.f32 %v847_v62, %v847_v62  ;;  %v300_v24 = vmul.f32 %v548_v1, %v299_v16  ;;  %v863_v29 = vadd.f32 %v803_v27, %v361_v21 }
 0x1ad   :  { %v421_v28 = vmul.f32 0.7978846, %v411_v18  ;;  %v264_v30 = vsel %vm263_vm6, %v546_v0, %v260_v19  ;;  %v317_v39 = vmul.f32 %v849_v17, %v316_v25  ;;  %vm311_vm9 = vweird.f32 %v840_v3 }
 0x1ae   :  { %v423_v31 = vmul.f32 0.7978846, %v413_v13  ;;  %v395_v32 = vmul.f32 %v385_v23, %v847_v62  ;;  %v346_v12 = vmul.f32 %v264_v30, %v732_v15  ;;  %v304_v35 = vsel %vm303_vm7, %v548_v1, %v300_v24  ;;  %v224_v23 = vpop.xlane.xlu1 %223 }
 0x1af   :  { %v552_v36 = vpop.eup %551  ;;  %555 = vtanh.f32 %v421_v28  ;;  %v384_v37 = vmul.f32 %v863_v29, %v863_v29  ;;  %v350_v38 = vmul.f32 %v304_v35, %v739_v22  ;;  %v318_v44 = vmul.f32 0.5, %v317_v39 }
 0x1b0   :  { %557 = vtanh.f32 %v423_v31  ;;  %v405_v14 = vmul.f32 0.044715, %v395_v32  ;;  %v359_v40 = vmul.f32 %v796_v20, %v346_v12  ;;  %v306_v41 = vmul.f32 %v552_v36, %v840_v3 }
 0x1b1   :  { %v877_v0 = vpop.eup %553  ;;  %v394_v15 = vmul.f32 %v384_v37, %v863_v29  ;;  %v363_v42 = vmul.f32 %v796_v20, %v350_v38  ;;  %vm322_vm10 = vweird.f32 %v849_v17  ;;  %v319_v53 = vsub.f32 1.5, %v318_v44 }
 0x1b2   :  { %v415_v22 = vadd.f32 %v405_v14, %v847_v62  ;;  %v884_v1 = vadd.f32 %v803_v27, %v359_v40  ;;  %v307_v47 = vmul.f32 %v552_v36, %v306_v41  ;;  %v326_v48 = vmul.f32 %v877_v0, %v828_v51  ;;  %vm323_vm13 = vmor %vm321_vm8, %vm322_vm10 }
 0x1b3   :  { %v404_v49 = vmul.f32 0.044715, %v394_v15  ;;  %v889_v52 = vadd.f32 %v803_v27, %v363_v42  ;;  %vm312_vm11 = vweird.f32 %v552_v36  ;;  %v320_v63 = vmul.f32 %v849_v17, %v319_v53 }
 0x1b4   :  { %v425_v54 = vmul.f32 0.7978846, %v415_v22  ;;  %v382_v56 = vmul.f32 %v884_v1, %v884_v1  ;;  %v308_v57 = vmul.f32 0.5, %v307_v47  ;;  %v327_v58 = vmul.f32 %v877_v0, %v326_v48  ;;  %vm313_vm14 = vmor %vm311_vm9, %vm312_vm11 }
 0x1b5   :  { %v556_v55 = vpop.eup %555  ;;  %v414_v60 = vadd.f32 %v404_v49, %v863_v29  ;;  %v386_v61 = vmul.f32 %v889_v52, %v889_v52  ;;  %vm332_vm12 = vweird.f32 %v877_v0  ;;  %v324_v9 = vsel %vm323_vm13, %v849_v17, %v320_v63 }
 0x1b6   :  { %v558_v2 = vpop.eup %557  ;;  %v441_v4 = vadd.f32 1.0, %v556_v55  ;;  %559 = vtanh.f32 %v425_v54  ;;  %v392_v5 = vmul.f32 %v382_v56, %v884_v1  ;;  %v309_v6 = vsub.f32 1.5, %v308_v57 }
 0x1b7   :  { %v443_v7 = vadd.f32 1.0, %v558_v2  ;;  %v424_v8 = vmul.f32 0.7978846, %v414_v60  ;;  %v396_v10 = vmul.f32 %v386_v61, %v889_v52  ;;  %v352_v18 = vmul.f32 %v324_v9, %v747_v26 }
 0x1b8   :  { %v451_v11 = vmul.f32 0.5, %v441_v4  ;;  %v402_v16 = vmul.f32 0.044715, %v392_v5  ;;  %v310_v21 = vmul.f32 %v552_v36, %v309_v6  ;;  %v328_v45 = vmul.f32 0.5, %v327_v58 }
 0x1b9   :  { %v453_v19 = vmul.f32 0.5, %v443_v7  ;;  %561 = vtanh.f32 %v424_v8  ;;  %v406_v13 = vmul.f32 0.044715, %v396_v10  ;;  %v365_v17 = vmul.f32 %v796_v20, %v352_v18 }
 0x1ba   :  { %v461_v24 = vmul.f32 %v451_v11, %v816_v46  ;;  %v412_v25 = vadd.f32 %v402_v16, %v884_v1  ;;  %v314_v28 = vsel %vm313_vm14, %v552_v36, %v310_v21  ;;  %v329_v32 = vsub.f32 1.5, %v328_v45 }
 0x1bb   :  { %v463_v30 = vmul.f32 %v453_v19, %v822_v50  ;;  %v416_v26 = vadd.f32 %v406_v13, %v889_v52  ;;  %v351_v31 = vmul.f32 %v314_v28, %v757_v34  ;;  %v921_v46 = vadd.f32 %v803_v27, %v365_v17 }
 0x1bc   :  { %v560_v12 = vpop.eup %559  ;;  %471 = vst.msk [vmem:[%s987_s5] sm:$0xff] %vm126_vm1, %v461_v24  ;;  %v422_v3 = vmul.f32 0.7978846, %v412_v25  ;;  %vm331_vm15 = vweird.f32 %v828_v51  ;;  %v234_v35 = vmul.f32 %v224_v23, %v709_v59  ;;  %v330_v37 = vmul.f32 %v877_v0, %v329_v32 }
 0x1bd   :  { %473 = vst.msk [vmem:[%s987_s5 + $0x10] sm:$0xff] %vm126_vm1, %v463_v30  ;;  %v445_v34 = vadd.f32 1.0, %v560_v12  ;;  %v426_v50 = vmul.f32 0.7978846, %v416_v26  ;;  %v364_v36 = vmul.f32 %v796_v20, %v351_v31  ;;  %v388_v38 = vmul.f32 %v921_v46, %v921_v46  ;;  %vm333_vm0 = vmor %vm331_vm15, %vm332_vm12 }
 0x1be   :  { %563 = vtanh.f32 %v422_v3  ;;  %v244_v51 = vadd.f32 1e-05, %v234_v35  ;;  %v334_v40 = vsel %vm333_vm0, %v877_v0, %v330_v37 }
 0x1bf   :  { %v562_v59 = vpop.eup %561  ;;  %v455_v39 = vmul.f32 0.5, %v445_v34  ;;  %565 = vtanh.f32 %v426_v50  ;;  %v377_v14 = vadd.f32 %v803_v27, %v364_v36  ;;  %v398_v15 = vmul.f32 %v388_v38, %v921_v46 }
 0x1c0   :  { %v444_v41 = vadd.f32 1.0, %v562_v59  ;;  %v353_v42 = vmul.f32 %v334_v40, %v754_v33  ;;  %567 = vrsqrt.f32 %v244_v51  ;;  %vm341_vm4 = vweird.f32 %v244_v51 }
 0x1c1   :  { %v465_v44 = vmul.f32 %v455_v39, %v847_v62  ;;  %v387_v22 = vmul.f32 %v377_v14, %v377_v14  ;;  %v408_v48 = vmul.f32 0.044715, %v398_v15 }
 0x1c2   :  { %v454_v47 = vmul.f32 0.5, %v444_v41  ;;  %v366_v49 = vmul.f32 %v796_v20, %v353_v42 }
 0x1c3   :  { %475 = vst.msk [vmem:[%s987_s5 + $0x20] sm:$0xff] %vm126_vm1, %v465_v44  ;;  %v397_v53 = vmul.f32 %v387_v22, %v377_v14  ;;  %v418_v56 = vadd.f32 %v408_v48, %v921_v46 }
 0x1c4   :  { %v564_v0 = vpop.eup %563  ;;  %v464_v54 = vmul.f32 %v454_v47, %v863_v29  ;;  %v379_v33 = vadd.f32 %v803_v27, %v366_v49 }
 0x1c5   :  { %v566_v57 = vpop.eup %565  ;;  %v442_v62 = vadd.f32 1.0, %v564_v0  ;;  %v407_v58 = vmul.f32 0.044715, %v397_v53  ;;  %v428_v61 = vmul.f32 0.7978846, %v418_v56 }
 0x1c6   :  { %v568_v55 = vpop.eup %567  ;;  %474 = vst.msk [vmem:[%s987_s5 + $0x18] sm:$0xff] %vm126_vm1, %v464_v54  ;;  %v446_v60 = vadd.f32 1.0, %v566_v57  ;;  %v389_v63 = vmul.f32 %v379_v33, %v379_v33 }
 0x1c7   :  { %v452_v2 = vmul.f32 0.5, %v442_v62  ;;  %v417_v4 = vadd.f32 %v407_v58, %v377_v14  ;;  %v336_v5 = vmul.f32 %v568_v55, %v244_v51  ;;  %569 = vtanh.f32 %v428_v61 }
 0x1c8   :  { %v456_v29 = vmul.f32 0.5, %v446_v60  ;;  %v399_v6 = vmul.f32 %v389_v63, %v379_v33  ;;  %vm342_vm3 = vweird.f32 %v568_v55 }
 0x1c9   :  { %v462_v7 = vmul.f32 %v452_v2, %v884_v1  ;;  %v427_v8 = vmul.f32 0.7978846, %v417_v4  ;;  %v337_v10 = vmul.f32 %v568_v55, %v336_v5  ;;  %vm343_vm5 = vmor %vm341_vm4, %vm342_vm3 }
 0x1ca   :  { %v466_v9 = vmul.f32 %v456_v29, %v889_v52  ;;  %v409_v11 = vmul.f32 0.044715, %v399_v6 }
 0x1cb   :  { %472 = vst.msk [vmem:[%s987_s5 + $0x8] sm:$0xff] %vm126_vm1, %v462_v7  ;;  %571 = vtanh.f32 %v427_v8  ;;  %v338_v16 = vmul.f32 0.5, %v337_v10 }
 0x1cc   :  { %476 = vst.msk [vmem:[%s987_s5 + $0x28] sm:$0xff] %vm126_vm1, %v466_v9  ;;  %v419_v18 = vadd.f32 %v409_v11, %v379_v33 }
 0x1cd   :  { %v339_v21 = vsub.f32 1.5, %v338_v16  ;;  %v570_v1 = vpop.eup %569 }
 0x1ce   :  { %v429_v19 = vmul.f32 0.7978846, %v419_v18  ;;  %v448_v13 = vadd.f32 1.0, %v570_v1 }
 0x1cf   :  { %v340_v52 = vmul.f32 %v568_v55, %v339_v21 }
 0x1d0   :  { %573 = vtanh.f32 %v429_v19  ;;  %v458_v23 = vmul.f32 0.5, %v448_v13 }
 0x1d1   :  { %v572_v45 = vpop.eup %571  ;;  %v344_v24 = vsel %vm343_vm5, %v568_v55, %v340_v52 }
 0x1d2   :  { %v447_v25 = vadd.f32 1.0, %v572_v45  ;;  %v354_v17 = vmul.f32 %v344_v24, %v770_v43  ;;  %v468_v28 = vmul.f32 %v458_v23, %v921_v46 }
 0x1d4   :  { %v457_v30 = vmul.f32 0.5, %v447_v25  ;;  %v367_v26 = vmul.f32 %v796_v20, %v354_v17  ;;  %478 = vst.msk [vmem:[%s987_s5 + $0x38] sm:$0xff] %vm126_vm1, %v468_v28 }
 0x1d6   :  { %v574_v31 = vpop.eup %573  ;;  %v467_v32 = vmul.f32 %v457_v30, %v377_v14  ;;  %v380_v12 = vadd.f32 %v803_v27, %v367_v26 }
 0x1d7   :  { %v449_v3 = vadd.f32 1.0, %v574_v31 }
 0x1d8   :  { %477 = vst.msk [vmem:[%s987_s5 + $0x30] sm:$0xff] %vm126_vm1, %v467_v32  ;;  %v390_v43 = vmul.f32 %v380_v12, %v380_v12 }
 0x1d9   :  { %v459_v46 = vmul.f32 0.5, %v449_v3 }
 0x1da   :  { %v400_v35 = vmul.f32 %v390_v43, %v380_v12 }
 0x1db   :  { %v469_v34 = vmul.f32 %v459_v46, %v379_v33 }
 0x1dc   :  { %v410_v20 = vmul.f32 0.044715, %v400_v35 }
 0x1dd   :  { %479 = vst.msk [vmem:[%s987_s5 + $0x40] sm:$0xff] %vm126_vm1, %v469_v34 }
 0x1de   :  { %v420_v50 = vadd.f32 %v410_v20, %v380_v12 }
 0x1e0   :  { %v430_v36 = vmul.f32 0.7978846, %v420_v50 }
 0x1e2   :  { %575 = vtanh.f32 %v430_v36 }
 0x1e8   :  { %v576_v27 = vpop.eup %575 }
 0x1e9   :  { %v450_v37 = vadd.f32 1.0, %v576_v27 }
 0x1eb   :  { %v460_v38 = vmul.f32 0.5, %v450_v37 }
 0x1ed   :  { %v470_v51 = vmul.f32 %v460_v38, %v380_v12 }
 0x1ef   :  { %480 = vst.msk [vmem:[%s987_s5 + $0x48] sm:$0x3f] %vm154_vm2, %v470_v51 }

// kernel: wav2vec2_forward.6
= control target key start
LH: loop header
LB: loop body
LE: loop exit
PB: predicated region body
PF: predicated region fallthrough
CT: control target
= control target key end

     0   :  { %vm53_vm0 = vcmask 523264   ;;  %vm91_vm1 = vcmask 261120   ;;  %vm98_vm2 = vcmask 256000   ;;  %v790_v33 = vmov 32.0   ;;  %s1255_s1 = inlined_call_operand.vmem [shape: f32[64,32], index: 1, kind: input, shape index: {}]   ;;  %s1256_s2 = inlined_call_operand.vmem [shape: f32[1,32], index: 2, kind: input, shape index: {}]   ;;  %s1257_s0 = inlined_call_operand.vmem [shape: f32[2,19,64], index: 0, kind: input, shape index: {}]   ;;  %s1258_s3 = inlined_call_operand.vmem [shape: f32[1,32], index: 3, kind: input, shape index: {}]   ;;  %s1259_s4 = inlined_call_operand.vmem [shape: f32[1,32], index: 4, kind: input, shape index: {}]   ;;  %s1260_s5 = inlined_call_operand.vmem [shape: f32[1,32], index: 5, kind: input, shape index: {}]   ;;  %s1261_s6 = inlined_call_operand.vmem [shape: f32[1,32], index: 6, kind: input, shape index: {}]   ;;  %s1262_s8 = inlined_call_operand.vmem [shape: f32[1,64], index: 8, kind: input, shape index: {}]   ;;  %s1263_s7 = inlined_call_operand.vmem [shape: f32[32,64], index: 7, kind: input, shape index: {}]   ;;  %s1264_s9 = inlined_call_operand.vmem [shape: f32[512,64], index: 9, kind: input, shape index: {}]   ;;  %s1265_s10 = inlined_call_operand.vmem [shape: f32[1,64], index: 10, kind: input, shape index: {}]   ;;  %s1266_s11 = inlined_call_operand.vmem [shape: f32[2,64], index: 11, kind: output, shape index: {}]  }
   0x1   :  { %v48_v0 = vld [vmem:[%s1255_s1 + $0x38] sm:$0xff]  ;;  %v47_v1 = vld [vmem:[%s1255_s1 + $0x30] sm:$0xff]  ;;  %v46_v2 = vld [vmem:[%s1255_s1 + $0x28] sm:$0xff]  ;;  %758 = vrcp.f32 %v790_v33 }
   0x2   :  { %71 = vmatpush.msra.mxu0 %v48_v0  ;;  %245 = vmatpush.msra.mxu1 %v48_v0  ;;  %v45_v3 = vld [vmem:[%s1255_s1 + $0x20] sm:$0xff]  ;;  %v44_v4 = vld [vmem:[%s1255_s1 + $0x18] sm:$0xff]  ;;  %v43_v5 = vld [vmem:[%s1255_s1 + $0x10] sm:$0xff] }
   0x3   :  { %v42_v6 = vld [vmem:[%s1255_s1 + $0x8] sm:$0xff]  ;;  %v41_v7 = vld [vmem:[%s1255_s1] sm:$0xff]  ;;  %v733_v9 = vld [vmem:[%s1257_s0 + $0x18] sm:$0xff] }
   0x4   :  { %72 = vmatpush.msra.mxu0 %v47_v1  ;;  %246 = vmatpush.msra.mxu1 %v47_v1  ;;  %v38_v8 = vld [vmem:[%s1257_s0] sm:$0xff]  ;;  %v39_v10 = vld [vmem:[%s1257_s0 + $0x8] sm:$0xff]  ;;  %v40_v12 = vld [vmem:[%s1257_s0 + $0x10] sm:$0x7] }
   0x5   :  { %v734_v11 = vld [vmem:[%s1257_s0 + $0x20] sm:$0xff]  ;;  %v735_v13 = vld [vmem:[%s1257_s0 + $0x28] sm:$0x7] }
   0x6   :  { %73 = vmatpush.msra.mxu0 %v46_v2  ;;  %247 = vmatpush.msra.mxu1 %v46_v2  ;;  %v751_v14 = vld [vmem:[%s1256_s2] ss:$0 sm:$0xff] }
   0x7   :  { %v759_v34 = vpop.eup %758 }
   0x8   :  { %74 = vmatpush.msra.mxu0 %v45_v3  ;;  %248 = vmatpush.msra.mxu1 %v45_v3  ;;  %v103_v35 = vmul.f32 32.0, %v759_v34  ;;  %vm107_vm3 = vweird.f32 %v759_v34 }
   0xa   :  { %75 = vmatpush.msra.mxu0 %v44_v4  ;;  %249 = vmatpush.msra.mxu1 %v44_v4  ;;  %v104_v36 = vsub.f32 1.0, %v103_v35  ;;  %v958_v35 = vld [vmem:[%s1258_s3] ss:$0 sm:$0xff] }
   0xc   :  { %76 = vmatpush.msra.mxu0 %v43_v5  ;;  %250 = vmatpush.msra.mxu1 %v43_v5  ;;  %v105_v37 = vmul.f32 %v759_v34, %v104_v36 }
   0xe   :  { %77 = vmatpush.msra.mxu0 %v42_v6  ;;  %251 = vmatpush.msra.mxu1 %v42_v6  ;;  %v106_v38 = vadd.f32 %v759_v34, %v105_v37 }
  0x10   :  { %78 = vmatpush.msra.mxu0 %v41_v7  ;;  %252 = vmatpush.msra.mxu1 %v41_v7  ;;  %v910_v39 = vsel %vm107_vm3, %v759_v34, %v106_v38 }
  0x11   :  { %730 = vmatmul.msk.f32.vlgmr.msra.gmra.mxu0 %vm53_vm0, %v38_v8  ;;  %736 = vmatmul.msk.f32.vlgmr.msra.gmra.mxu1 %vm53_vm0, %v733_v9 }
  0x19   :  { %731 = vmatmul.msk.f32.gmra.mxu0 %vm53_vm0, %v39_v10  ;;  %737 = vmatmul.msk.f32.gmra.mxu1 %vm53_vm0, %v734_v11 }
  0x21   :  { %732 = vmatmul.msk.f32.gmra.mxu0 %vm53_vm0, %v40_v12  ;;  %738 = vmatmul.msk.f32.gmra.mxu1 %vm53_vm0, %v735_v13 }
  0x8e   :  { %v80_v15 = vpop.f32.mrf.mxu0  ;;  %v254_v16 = vpop.f32.mrf.mxu1 }
  0x8f   :  { %v81_v17 = vadd.f32 %v751_v14, %v80_v15  ;;  %v255_v18 = vadd.f32 %v751_v14, %v254_v16 }
  0x91   :  { %v263_v19 = vsel %vm91_vm1, %v255_v18, 0.0  ;;  %v92_v20 = vsel %vm91_vm1, %v81_v17, 0.0 }
  0x92   :  { %264 = vadd.xlane.f32.xlu1 %v263_v19  ;;  %93 = vadd.xlane.f32.xlu0 %v92_v20 }
  0x96   :  { %v83_v21 = vpop.f32.mrf.mxu0  ;;  %v257_v22 = vpop.f32.mrf.mxu1 }
  0x97   :  { %v84_v23 = vadd.f32 %v751_v14, %v83_v21  ;;  %v258_v24 = vadd.f32 %v751_v14, %v257_v22 }
  0x99   :  { %v266_v25 = vsel %vm91_vm1, %v258_v24, 0.0  ;;  %v95_v26 = vsel %vm91_vm1, %v84_v23, 0.0 }
  0x9a   :  { %267 = vadd.xlane.f32.xlu1 %v266_v25  ;;  %96 = vadd.xlane.f32.xlu0 %v95_v26 }
  0x9e   :  { %v86_v27 = vpop.f32.mrf.mxu0  ;;  %v260_v29 = vpop.f32.mrf.mxu1 }
  0x9f   :  { %v87_v28 = vadd.f32 %v751_v14, %v86_v27  ;;  %v261_v31 = vadd.f32 %v751_v14, %v260_v29 }
  0xa1   :  { %v99_v30 = vsel %vm98_vm2, %v87_v28, 0.0  ;;  %v269_v32 = vsel %vm98_vm2, %v261_v31, 0.0 }
  0xa2   :  { %100 = vadd.xlane.f32.xlu2 %v99_v30 }
  0xaa   :  { %270 = vadd.xlane.f32.xlu2 %v269_v32 }
 0x105   :  { %v265_v40 = vpop.xlane.xlu1 %264  ;;  %v94_v41 = vpop.xlane.xlu0 %93 }
 0x106   :  { %v272_v42 = vmul.f32 %v265_v40, %v910_v39  ;;  %v109_v43 = vmul.f32 %v910_v39, %v94_v41 }
 0x108   :  { %v914_v44 = vsub.f32 %v255_v18, %v272_v42  ;;  %v916_v45 = vsub.f32 %v81_v17, %v109_v43 }
 0x10a   :  { %v278_v46 = vmul.f32 %v914_v44, %v914_v44  ;;  %v115_v47 = vmul.f32 %v916_v45, %v916_v45 }
 0x10c   :  { %v281_v48 = vsel %vm91_vm1, %v278_v46, 0.0  ;;  %v118_v49 = vsel %vm91_vm1, %v115_v47, 0.0  ;;  %v965_v46 = vld [vmem:[%s1259_s4] ss:$0 sm:$0xff] }
 0x10d   :  { %v268_v50 = vpop.xlane.xlu1 %267  ;;  %282 = vadd.xlane.f32.xlu2 %v281_v48  ;;  %119 = vadd.xlane.f32.xlu0 %v118_v49  ;;  %v97_v51 = vpop.xlane.xlu0 %96 }
 0x10e   :  { %v273_v52 = vmul.f32 %v268_v50, %v910_v39  ;;  %v110_v53 = vmul.f32 %v910_v39, %v97_v51 }
 0x110   :  { %v926_v54 = vsub.f32 %v258_v24, %v273_v52  ;;  %v928_v55 = vsub.f32 %v84_v23, %v110_v53 }
 0x112   :  { %v279_v56 = vmul.f32 %v926_v54, %v926_v54  ;;  %v116_v57 = vmul.f32 %v928_v55, %v928_v55 }
 0x114   :  { %v284_v58 = vsel %vm91_vm1, %v279_v56, 0.0  ;;  %v121_v59 = vsel %vm91_vm1, %v116_v57, 0.0 }
 0x115   :  { %v101_v60 = vpop.xlane.xlu2 %100  ;;  %285 = vadd.xlane.f32.xlu0 %v284_v58  ;;  %122 = vadd.xlane.f32.xlu1 %v121_v59 }
 0x116   :  { %v111_v61 = vmul.f32 %v910_v39, %v101_v60 }
 0x118   :  { %v937_v62 = vsub.f32 %v87_v28, %v111_v61 }
 0x11a   :  { %v117_v63 = vmul.f32 %v937_v62, %v937_v62 }
 0x11c   :  { %v124_v0 = vsel %vm98_vm2, %v117_v63, 0.0 }
 0x11d   :  { %v271_v1 = vpop.xlane.xlu2 %270  ;;  %125 = vadd.xlane.f32.xlu1 %v124_v0 }
 0x11e   :  { %v274_v2 = vmul.f32 %v271_v1, %v910_v39 }
 0x120   :  { %v943_v3 = vsub.f32 %v261_v31, %v274_v2 }
 0x122   :  { %v280_v4 = vmul.f32 %v943_v3, %v943_v3 }
 0x124   :  { %v287_v5 = vsel %vm98_vm2, %v280_v4, 0.0 }
 0x125   :  { %288 = vadd.xlane.f32.xlu2 %v287_v5 }
 0x180   :  { %v283_v6 = vpop.xlane.xlu2 %282  ;;  %v120_v7 = vpop.xlane.xlu0 %119 }
 0x181   :  { %v290_v8 = vmul.f32 %v283_v6, %v910_v39  ;;  %v127_v9 = vmul.f32 %v120_v7, %v910_v39 }
 0x183   :  { %v293_v10 = vadd.f32 1e-05, %v290_v8  ;;  %v130_v11 = vadd.f32 1e-05, %v127_v9 }
 0x185   :  { %760 = vrsqrt.f32 %v293_v10  ;;  %vm302_vm6 = vweird.f32 %v293_v10  ;;  %vm139_vm8 = vweird.f32 %v130_v11 }
 0x186   :  { %762 = vrsqrt.f32 %v130_v11 }
 0x188   :  { %v123_v12 = vpop.xlane.xlu1 %122  ;;  %v286_v13 = vpop.xlane.xlu0 %285 }
 0x189   :  { %v128_v14 = vmul.f32 %v123_v12, %v910_v39  ;;  %v291_v15 = vmul.f32 %v286_v13, %v910_v39 }
 0x18b   :  { %v761_v16 = vpop.eup %760  ;;  %v131_v17 = vadd.f32 1e-05, %v128_v14  ;;  %v294_v18 = vadd.f32 1e-05, %v291_v15 }
 0x18c   :  { %v763_v19 = vpop.eup %762  ;;  %v297_v20 = vmul.f32 %v761_v16, %v293_v10  ;;  %vm303_vm4 = vweird.f32 %v761_v16 }
 0x18d   :  { %v134_v21 = vmul.f32 %v763_v19, %v130_v11  ;;  %764 = vrsqrt.f32 %v131_v17  ;;  %vm140_vm5 = vweird.f32 %v763_v19  ;;  %vm304_vm7 = vmor %vm302_vm6, %vm303_vm4  ;;  %vm149_vm12 = vweird.f32 %v131_v17 }
 0x18e   :  { %v298_v22 = vmul.f32 %v761_v16, %v297_v20  ;;  %766 = vrsqrt.f32 %v294_v18  ;;  %vm141_vm9 = vmor %vm139_vm8, %vm140_vm5  ;;  %vm312_vm14 = vweird.f32 %v294_v18 }
 0x18f   :  { %v135_v23 = vmul.f32 %v763_v19, %v134_v21 }
 0x190   :  { %v299_v24 = vmul.f32 0.5, %v298_v22  ;;  %v126_v25 = vpop.xlane.xlu1 %125 }
 0x191   :  { %v136_v26 = vmul.f32 0.5, %v135_v23  ;;  %v129_v27 = vmul.f32 %v126_v25, %v910_v39 }
 0x192   :  { %v300_v28 = vsub.f32 1.5, %v299_v24 }
 0x193   :  { %v765_v29 = vpop.eup %764  ;;  %v137_v30 = vsub.f32 1.5, %v136_v26  ;;  %v953_v31 = vadd.f32 1e-05, %v129_v27 }
 0x194   :  { %v767_v32 = vpop.eup %766  ;;  %v301_v33 = vmul.f32 %v761_v16, %v300_v28  ;;  %v144_v34 = vmul.f32 %v765_v29, %v131_v17  ;;  %vm150_vm10 = vweird.f32 %v765_v29 }
 0x195   :  { %v138_v36 = vmul.f32 %v763_v19, %v137_v30  ;;  %v307_v37 = vmul.f32 %v767_v32, %v294_v18  ;;  %768 = vrsqrt.f32 %v953_v31  ;;  %vm313_vm11 = vweird.f32 %v767_v32  ;;  %vm151_vm13 = vmor %vm149_vm12, %vm150_vm10 }
 0x196   :  { %v305_v38 = vsel %vm304_vm7, %v761_v16, %v301_v33  ;;  %v145_v40 = vmul.f32 %v765_v29, %v144_v34  ;;  %vm314_vm15 = vmor %vm312_vm14, %vm313_vm11  ;;  %vm159_vm4 = vweird.f32 %v953_v31  ;;  %vm374_vm10 = vcmask 1040384  }
 0x197   :  { %v326_v41 = vmul.f32 %v305_v38, %v914_v44  ;;  %v142_v42 = vsel %vm141_vm9, %v763_v19, %v138_v36  ;;  %v308_v43 = vmul.f32 %v767_v32, %v307_v37  ;;  %vm378_vm11 = vcmask 254976  }
 0x198   :  { %v163_v47 = vmul.f32 %v142_v42, %v916_v45  ;;  %v146_v48 = vmul.f32 0.5, %v145_v40  ;;  %v289_v49 = vpop.xlane.xlu2 %288  ;;  %vm445_vm14 = vcmask 1045504  }
 0x199   :  { %v329_v50 = vmul.f32 %v958_v35, %v326_v41  ;;  %v309_v51 = vmul.f32 0.5, %v308_v43  ;;  %v292_v52 = vmul.f32 %v289_v49, %v910_v39 }
 0x19a   :  { %v169_v53 = vmul.f32 %v958_v35, %v163_v47  ;;  %v147_v56 = vsub.f32 1.5, %v146_v48 }
 0x19b   :  { %v769_v44 = vpop.eup %768  ;;  %v310_v57 = vsub.f32 1.5, %v309_v51  ;;  %v295_v58 = vadd.f32 1e-05, %v292_v52  ;;  %v976_v61 = vadd.f32 %v965_v46, %v329_v50 }
 0x19c   :  { %v972_v59 = vadd.f32 %v965_v46, %v169_v53  ;;  %v148_v60 = vmul.f32 %v765_v29, %v147_v56  ;;  %v154_v45 = vmul.f32 %v769_v44, %v953_v31  ;;  %vm160_vm3 = vweird.f32 %v769_v44 }
 0x19d   :  { %v311_v63 = vmul.f32 %v767_v32, %v310_v57  ;;  %770 = vrsqrt.f32 %v295_v58  ;;  %v335_v9 = vmul.f32 %v976_v61, %v976_v61  ;;  %vm161_vm5 = vmor %vm159_vm4, %vm160_vm3  ;;  %vm322_vm7 = vweird.f32 %v295_v58 }
 0x19e   :  { %v178_v0 = vmul.f32 %v972_v59, %v972_v59  ;;  %v152_v1 = vsel %vm151_vm13, %v765_v29, %v148_v60  ;;  %v155_v2 = vmul.f32 %v769_v44, %v154_v45 }
 0x19f   :  { %v164_v4 = vmul.f32 %v152_v1, %v928_v55  ;;  %v315_v5 = vsel %vm314_vm15, %v767_v32, %v311_v63  ;;  %v338_v17 = vmul.f32 %v335_v9, %v976_v61  ;;  %v791_v9 = vmov 19.0  }
 0x1a0   :  { %v181_v6 = vmul.f32 %v178_v0, %v972_v59  ;;  %v327_v7 = vmul.f32 %v315_v5, %v926_v54  ;;  %v156_v8 = vmul.f32 0.5, %v155_v2  ;;  %vm653_vm15 = vcmask 1041408  }
 0x1a1   :  { %v170_v10 = vmul.f32 %v958_v35, %v164_v4  ;;  %v341_v27 = vmul.f32 0.044715, %v338_v17 }
 0x1a2   :  { %v184_v11 = vmul.f32 0.044715, %v181_v6  ;;  %v330_v12 = vmul.f32 %v958_v35, %v327_v7  ;;  %v157_v13 = vsub.f32 1.5, %v156_v8 }
 0x1a3   :  { %v771_v14 = vpop.eup %770  ;;  %v176_v15 = vadd.f32 %v965_v46, %v170_v10 }
 0x1a4   :  { %v989_v55 = vadd.f32 %v965_v46, %v330_v12  ;;  %v158_v16 = vmul.f32 %v769_v44, %v157_v13  ;;  %v317_v54 = vmul.f32 %v771_v14, %v295_v58  ;;  %v187_v18 = vadd.f32 %v184_v11, %v972_v59 }
 0x1a5   :  { %v179_v19 = vmul.f32 %v176_v15, %v176_v15  ;;  %vm323_vm6 = vweird.f32 %v771_v14 }
 0x1a6   :  { %v336_v20 = vmul.f32 %v989_v55, %v989_v55  ;;  %v162_v21 = vsel %vm161_vm5, %v769_v44, %v158_v16  ;;  %v318_v22 = vmul.f32 %v771_v14, %v317_v54  ;;  %v190_v28 = vmul.f32 0.7978846, %v187_v18  ;;  %vm324_vm8 = vmor %vm322_vm7, %vm323_vm6 }
 0x1a7   :  { %v182_v23 = vmul.f32 %v179_v19, %v176_v15  ;;  %v165_v24 = vmul.f32 %v162_v21, %v937_v62  ;;  %v344_v62 = vadd.f32 %v341_v27, %v976_v61 }
 0x1a8   :  { %v339_v25 = vmul.f32 %v336_v20, %v989_v55  ;;  %v319_v26 = vmul.f32 0.5, %v318_v22  ;;  %772 = vtanh.f32 %v190_v28 }
 0x1a9   :  { %v185_v29 = vmul.f32 0.044715, %v182_v23  ;;  %v171_v30 = vmul.f32 %v958_v35, %v165_v24  ;;  %v347_v48 = vmul.f32 0.7978846, %v344_v62 }
 0x1aa   :  { %v342_v31 = vmul.f32 0.044715, %v339_v25  ;;  %v320_v32 = vsub.f32 1.5, %v319_v26 }
 0x1ab   :  { %v188_v33 = vadd.f32 %v185_v29, %v176_v15  ;;  %v177_v34 = vadd.f32 %v965_v46, %v171_v30 }
 0x1ac   :  { %v345_v36 = vadd.f32 %v342_v31, %v989_v55  ;;  %v321_v37 = vmul.f32 %v771_v14, %v320_v32 }
 0x1ad   :  { %v191_v38 = vmul.f32 0.7978846, %v188_v33  ;;  %v180_v40 = vmul.f32 %v177_v34, %v177_v34 }
 0x1ae   :  { %v325_v41 = vsel %vm324_vm8, %v771_v14, %v321_v37  ;;  %v348_v42 = vmul.f32 0.7978846, %v345_v36  ;;  %v773_v51 = vpop.eup %772 }
 0x1af   :  { %774 = vtanh.f32 %v191_v38  ;;  %v183_v43 = vmul.f32 %v180_v40, %v177_v34  ;;  %v328_v47 = vmul.f32 %v325_v41, %v943_v3  ;;  %v196_v58 = vadd.f32 1.0, %v773_v51 }
 0x1b0   :  { %776 = vtanh.f32 %v348_v42 }
 0x1b1   :  { %v186_v49 = vmul.f32 0.044715, %v183_v43  ;;  %v331_v50 = vmul.f32 %v958_v35, %v328_v47  ;;  %778 = vtanh.f32 %v347_v48  ;;  %v199_v1 = vmul.f32 0.5, %v196_v58 }
 0x1b3   :  { %v189_v52 = vadd.f32 %v186_v49, %v177_v34  ;;  %v334_v53 = vadd.f32 %v965_v46, %v331_v50  ;;  %v202_v46 = vmul.f32 %v199_v1, %v972_v59  ;;  %v458_v1 = vld [vmem:[%s1264_s9 + $0x30] sm:$0xff] }
 0x1b5   :  { %v775_v56 = vpop.eup %774  ;;  %v337_v44 = vmul.f32 %v334_v53, %v334_v53  ;;  %v192_v57 = vmul.f32 0.7978846, %v189_v52  ;;  %v205_v16 = vsel %vm91_vm1, %v202_v46, 0.0 }
 0x1b6   :  { %v197_v60 = vadd.f32 1.0, %v775_v56  ;;  %v777_v0 = vpop.eup %776 }
 0x1b7   :  { %v340_v45 = vmul.f32 %v337_v44, %v334_v53  ;;  %780 = vtanh.f32 %v192_v57  ;;  %v779_v2 = vpop.eup %778  ;;  %v354_v5 = vadd.f32 1.0, %v777_v0  ;;  %v409_v0 = vld [vmem:[%s1263_s7] sm:$0xff] }
 0x1b8   :  { %v200_v63 = vmul.f32 0.5, %v197_v60  ;;  %782 = vrcp.f32 %v791_v9  ;;  %v353_v10 = vadd.f32 1.0, %v779_v2  ;;  %v412_v60 = vld [vmem:[%s1263_s7 + $0x18] sm:$0xff]  ;;  %v456_v9 = vld [vmem:[%s1264_s9 + $0x20] sm:$0xff] }
 0x1b9   :  { %v343_v3 = vmul.f32 0.044715, %v340_v45  ;;  %v357_v13 = vmul.f32 0.5, %v354_v5  ;;  %v411_v45 = vld [vmem:[%s1263_s7 + $0x10] sm:$0xff]  ;;  %432 = vmatpush.msra.mxu2 %v412_v60  ;;  %v491_v2 = vld [vmem:[%s1264_s9 + $0x78] sm:$0xff]  ;;  %v580_v60 = vld [vmem:[%s1264_s9 + $0x100] sm:$0xff] }
 0x1ba   :  { %v203_v35 = vmul.f32 %v200_v63, %v176_v15  ;;  %v356_v54 = vmul.f32 0.5, %v353_v10  ;;  %v410_v63 = vld [vmem:[%s1263_s7 + $0x8] sm:$0xff]  ;;  %v490_v5 = vld [vmem:[%s1264_s9 + $0x70] sm:$0xff] }
 0x1bb   :  { %v346_v4 = vadd.f32 %v343_v3, %v334_v53  ;;  %v360_v19 = vmul.f32 %v357_v13, %v989_v55  ;;  %433 = vmatpush.msra.mxu2 %v411_v45  ;;  %v459_v3 = vld [vmem:[%s1264_s9 + $0x38] sm:$0xff]  ;;  %v553_v10 = vld [vmem:[%s1264_s9 + $0xe8] sm:$0xff]  ;;  %v616_v45 = vld [vmem:[%s1264_s9 + $0x160] sm:$0xff] }
 0x1bc   :  { %v206_v12 = vsel %vm91_vm1, %v203_v35, 0.0  ;;  %v359_v22 = vmul.f32 %v356_v54, %v976_v61  ;;  %471 = vmatpush.msra.mxu3 %v459_v3  ;;  %v555_v35 = vld [vmem:[%s1264_s9 + $0xf8] sm:$0xff]  ;;  %v586_v54 = vld [vmem:[%s1264_s9 + $0x130] sm:$0xff] }
 0x1bd   :  { %v781_v6 = vpop.eup %780  ;;  %v349_v7 = vmul.f32 0.7978846, %v346_v4  ;;  %v207_v17 = vadd.f32 %v206_v12, %v205_v16  ;;  %v363_v26 = vsel %vm91_vm1, %v360_v19, 0.0  ;;  %434 = vmatpush.msra.mxu2 %v410_v63  ;;  %v457_v4 = vld [vmem:[%s1264_s9 + $0x28] sm:$0xff]  ;;  %567 = vmatpush.msrb.mxu0 %v555_v35  ;;  %v587_v12 = vld [vmem:[%s1264_s9 + $0x138] sm:$0xff]  ;;  %v486_v19 = vld [vmem:[%s1264_s9 + $0x50] sm:$0xff] }
 0x1be   :  { %v198_v8 = vadd.f32 1.0, %v781_v6  ;;  %v783_v15 = vpop.eup %782  ;;  %v362_v29 = vsel %vm91_vm1, %v359_v22, 0.0  ;;  %472 = vmatpush.msra.mxu3 %v458_v1  ;;  %v455_v13 = vld [vmem:[%s1264_s9 + $0x18] sm:$0xff]  ;;  %599 = vmatpush.msrb.mxu1 %v587_v12  ;;  %v452_v22 = vld [vmem:[%s1264_s9] sm:$0xff]  ;;  %v614_v1 = vld [vmem:[%s1264_s9 + $0x150] sm:$0xff] }
 0x1bf   :  { %784 = vtanh.f32 %v349_v7  ;;  %v217_v24 = vmul.f32 19.0, %v783_v15  ;;  %v364_v31 = vadd.f32 %v363_v26, %v362_v29  ;;  %vm221_vm9 = vweird.f32 %v783_v15  ;;  %435 = vmatpush.msra.mxu2 %v409_v0  ;;  %v554_v7 = vld [vmem:[%s1264_s9 + $0xf0] sm:$0xff]  ;;  %v487_v16 = vld [vmem:[%s1264_s9 + $0x58] sm:$0xff]  ;;  %v521_v29 = vld [vmem:[%s1264_s9 + $0xa8] sm:$0xff] }
 0x1c0   :  { %v201_v11 = vmul.f32 0.5, %v198_v8  ;;  %v489_v8 = vld [vmem:[%s1264_s9 + $0x68] sm:$0xff]  ;;  %473 = vmatpush.msra.mxu3 %v457_v4  ;;  %568 = vmatpush.msrb.mxu0 %v554_v7  ;;  %v684_v63 = vld [vmem:[%s1264_s9 + $0x1e0] sm:$0xff]  ;;  %v615_v0 = vld [vmem:[%s1264_s9 + $0x158] sm:$0xff] }
 0x1c1   :  { %v218_v32 = vsub.f32 1.0, %v217_v24  ;;  %503 = vmatpush.msrb.mxu2 %v491_v2  ;;  %600 = vmatpush.msrb.mxu1 %v586_v54  ;;  %v523_v24 = vld [vmem:[%s1264_s9 + $0xb8] sm:$0xff]  ;;  %v682_v2 = vld [vmem:[%s1264_s9 + $0x1d0] sm:$0xff]  ;;  %v613_v4 = vld [vmem:[%s1264_s9 + $0x148] sm:$0xff] }
 0x1c2   :  { %v204_v14 = vmul.f32 %v201_v11, %v177_v34  ;;  %v488_v11 = vld [vmem:[%s1264_s9 + $0x60] sm:$0xff]  ;;  %474 = vmatpush.msra.mxu3 %v456_v9  ;;  %569 = vmatpush.msrb.mxu0 %v553_v10  ;;  %v683_v3 = vld [vmem:[%s1264_s9 + $0x1d8] sm:$0xff]  ;;  %v681_v35 = vld [vmem:[%s1264_s9 + $0x1c8] sm:$0xff] }
 0x1c3   :  { %v219_v37 = vmul.f32 %v783_v15, %v218_v32  ;;  %504 = vmatpush.msrb.mxu2 %v490_v5  ;;  %v612_v5 = vld [vmem:[%s1264_s9 + $0x140] sm:$0xff]  ;;  %v649_v54 = vld [vmem:[%s1264_s9 + $0x1a8] sm:$0xff] }
 0x1c4   :  { %v208_v18 = vsel %vm98_vm2, %v204_v14, 0.0  ;;  %v552_v14 = vld [vmem:[%s1264_s9 + $0xe0] sm:$0xff]  ;;  %475 = vmatpush.msra.mxu3 %v455_v13 }
 0x1c5   :  { %v785_v20 = vpop.eup %784  ;;  %v209_v59 = vadd.f32 %v208_v18, %v207_v17  ;;  %v220_v40 = vadd.f32 %v783_v15, %v219_v37  ;;  %505 = vmatpush.msrb.mxu2 %v489_v8  ;;  %v454_v17 = vld [vmem:[%s1264_s9 + $0x10] sm:$0xff]  ;;  %v585_v18 = vld [vmem:[%s1264_s9 + $0x128] sm:$0xff]  ;;  %570 = vmatpush.msrb.mxu0 %v552_v14  ;;  %v755_v37 = vld [vmem:[%s1261_s6] ss:$0 sm:$0xff] }
 0x1c6   :  { %v355_v21 = vadd.f32 1.0, %v785_v20  ;;  %v453_v20 = vld [vmem:[%s1264_s9 + $0x8] sm:$0xff]  ;;  %601 = vmatpush.msrb.mxu1 %v585_v18  ;;  %476 = vmatpush.msra.mxu3 %v454_v17  ;;  %v756_v7 = vld [vmem:[%s1262_s8] ss:$0 sm:$0xff]  ;;  %v792_v18 = vmov 0.0  }
 0x1c7   :  { %v210_v23 = vrot.slane %v209_v59, 4  ;;  %v222_v47 = vsel %vm221_vm9, %v783_v15, %v220_v40  ;;  %506 = vmatpush.msrb.mxu2 %v488_v11  ;;  %v551_v15 = vld [vmem:[%s1264_s9 + $0xd8] sm:$0xff]  ;;  %v484_v40 = vld [vmem:[%s1264_s9 + $0x40] sm:$0xff] }
 0x1c8   :  { %v358_v25 = vmul.f32 0.5, %v355_v21  ;;  %571 = vmatpush.msrb.mxu0 %v551_v15  ;;  %v485_v21 = vld [vmem:[%s1264_s9 + $0x48] sm:$0xff]  ;;  %477 = vmatpush.msra.mxu3 %v453_v20  ;;  %v651_v11 = vld [vmem:[%s1264_s9 + $0x1b8] sm:$0xff]  ;;  %v648_v17 = vld [vmem:[%s1264_s9 + $0x1a0] sm:$0xff] }
 0x1c9   :  { %v211_v27 = vadd.f32 %v210_v23, %v209_v59  ;;  %507 = vmatpush.msrb.mxu2 %v487_v16  ;;  %v550_v59 = vld [vmem:[%s1264_s9 + $0xd0] sm:$0xff]  ;;  %v549_v23 = vld [vmem:[%s1264_s9 + $0xc8] sm:$0xff] }
 0x1ca   :  { %v361_v28 = vmul.f32 %v358_v25, %v334_v53  ;;  %572 = vmatpush.msrb.mxu0 %v550_v59  ;;  %478 = vmatpush.msra.mxu3 %v452_v22  ;;  %v650_v16 = vld [vmem:[%s1264_s9 + $0x1b0] sm:$0xff]  ;;  %v647_v59 = vld [vmem:[%s1264_s9 + $0x198] sm:$0xff] }
 0x1cb   :  { %v212_v30 = vrot.slane %v211_v27, 2  ;;  %508 = vmatpush.msrb.mxu2 %v486_v19  ;;  %v689_v19 = vrot.slane %v792_v18, 7  ;;  %v646_v22 = vld [vmem:[%s1264_s9 + $0x190] sm:$0xff] }
 0x1cc   :  { %v365_v33 = vsel %vm98_vm2, %v361_v28, 0.0  ;;  %573 = vmatpush.msrb.mxu0 %v549_v23  ;;  %535 = vmatpush.msrb.mxu3 %v523_v24  ;;  %v645_v24 = vld [vmem:[%s1264_s9 + $0x188] sm:$0xff] }
 0x1cd   :  { %v366_v55 = vadd.f32 %v365_v33, %v364_v31  ;;  %v213_v34 = vadd.f32 %v212_v30, %v211_v27  ;;  %509 = vmatpush.msrb.mxu2 %v485_v21  ;;  %v522_v27 = vld [vmem:[%s1264_s9 + $0xb0] sm:$0xff]  ;;  %v520_v31 = vld [vmem:[%s1264_s9 + $0xa0] sm:$0xff] }
 0x1ce   :  { %536 = vmatpush.msrb.mxu3 %v522_v27  ;;  %v644_v27 = vld [vmem:[%s1264_s9 + $0x180] sm:$0xff] }
 0x1cf   :  { %v367_v36 = vrot.slane %v366_v55, 4  ;;  %v214_v61 = vrot.slane %v213_v34, 1  ;;  %510 = vmatpush.msrb.mxu2 %v484_v40 }
 0x1d0   :  { %537 = vmatpush.msrb.mxu3 %v521_v29  ;;  %v757_v29 = vld [vmem:[%s1265_s10] ss:$0 sm:$0xff] }
 0x1d1   :  { %v368_v62 = vadd.f32 %v367_v36, %v366_v55  ;;  %v215_v42 = vadd.f32 %v214_v61, %v213_v34  ;;  %v754_v55 = vld [vmem:[%s1260_s5] ss:$0 sm:$0xff] }
 0x1d2   :  { %538 = vmatpush.msrb.mxu3 %v520_v31 }
 0x1d3   :  { %v369_v38 = vrot.slane %v368_v62, 2  ;;  %v223_v49 = vmul.f32 %v222_v47, %v215_v42  ;;  %v548_v42 = vld [vmem:[%s1264_s9 + $0xc0] sm:$0xff] }
 0x1d4   :  { %574 = vmatpush.msrb.mxu0 %v548_v42 }
 0x1d5   :  { %v370_v41 = vadd.f32 %v369_v38, %v368_v62  ;;  %v584_v38 = vld [vmem:[%s1264_s9 + $0x120] sm:$0xff] }
 0x1d6   :  { %602 = vmatpush.msrb.mxu1 %v584_v38 }
 0x1d7   :  { %v371_v43 = vrot.slane %v370_v41, 1 }
 0x1d9   :  { %v372_v48 = vadd.f32 %v371_v43, %v370_v41  ;;  %v519_v41 = vld [vmem:[%s1264_s9 + $0x98] sm:$0xff] }
 0x1da   :  { %539 = vmatpush.msrb.mxu3 %v519_v41  ;;  %v583_v43 = vld [vmem:[%s1264_s9 + $0x118] sm:$0xff] }
 0x1db   :  { %v373_v50 = vmul.f32 %v372_v48, %v222_v47  ;;  %v619_v47 = vld [vmem:[%s1264_s9 + $0x178] sm:$0xff]  ;;  %603 = vmatpush.msrb.mxu1 %v583_v43 }
 0x1dc   :  { %v687_v48 = vld [vmem:[%s1264_s9 + $0x1f8] sm:$0xff] }
 0x1dd   :  { %v375_v51 = vsel %vm374_vm10, %v223_v49, %v373_v50  ;;  %v518_v49 = vld [vmem:[%s1264_s9 + $0x90] sm:$0xff]  ;;  %701 = vmatpush.msra.mxu0 %v687_v48 }
 0x1de   :  { %v379_v52 = vsel %vm378_vm11, %v375_v51, 0.0  ;;  %v582_v50 = vld [vmem:[%s1264_s9 + $0x110] sm:$0xff]  ;;  %540 = vmatpush.msrb.mxu3 %v518_v49 }
 0x1df   :  { %380 = vadd.xlane.f32.xlu0 %v379_v52  ;;  %v686_v52 = vld [vmem:[%s1264_s9 + $0x1f0] sm:$0xff]  ;;  %604 = vmatpush.msrb.mxu1 %v582_v50 }
 0x1e0   :  { %702 = vmatpush.msra.mxu0 %v686_v52 }
 0x252   :  { %v381_v53 = vpop.xlane.xlu0 %380 }
 0x253   :  { %v382_v56 = vmul.f32 %v381_v53, %v910_v39  ;;  %v517_v53 = vld [vmem:[%s1264_s9 + $0x88] sm:$0xff] }
 0x254   :  { %541 = vmatpush.msrb.mxu3 %v517_v53 }
 0x255   :  { %v1016_v44 = vsub.f32 %v375_v51, %v382_v56  ;;  %v618_v51 = vld [vmem:[%s1264_s9 + $0x170] sm:$0xff]  ;;  %v581_v56 = vld [vmem:[%s1264_s9 + $0x108] sm:$0xff] }
 0x256   :  { %605 = vmatpush.msrb.mxu1 %v581_v56 }
 0x257   :  { %v384_v57 = vmul.f32 %v1016_v44, %v1016_v44 }
 0x258   :  { %606 = vmatpush.msrb.mxu1 %v580_v60 }
 0x259   :  { %v385_v58 = vsel %vm378_vm11, %v384_v57, 0.0  ;;  %v685_v57 = vld [vmem:[%s1264_s9 + $0x1e8] sm:$0xff] }
 0x25a   :  { %386 = vadd.xlane.f32.xlu1 %v385_v58  ;;  %v516_v58 = vld [vmem:[%s1264_s9 + $0x80] sm:$0xff]  ;;  %703 = vmatpush.msra.mxu0 %v685_v57 }
 0x25b   :  { %542 = vmatpush.msrb.mxu3 %v516_v58 }
 0x25c   :  { %704 = vmatpush.msra.mxu0 %v684_v63 }
 0x25e   :  { %705 = vmatpush.msra.mxu0 %v683_v3 }
 0x260   :  { %706 = vmatpush.msra.mxu0 %v682_v2 }
 0x262   :  { %707 = vmatpush.msra.mxu0 %v681_v35 }
 0x2cd   :  { %v387_v6 = vpop.xlane.xlu1 %386 }
 0x2ce   :  { %v388_v46 = vmul.f32 %v387_v6, %v910_v39  ;;  %v680_v6 = vld [vmem:[%s1264_s9 + $0x1c0] sm:$0xff] }
 0x2cf   :  { %708 = vmatpush.msra.mxu0 %v680_v6 }
 0x2d0   :  { %v389_v39 = vadd.f32 1e-05, %v388_v46 }
 0x2d2   :  { %786 = vrsqrt.f32 %v389_v39  ;;  %vm396_vm12 = vweird.f32 %v389_v39 }
 0x2d8   :  { %v787_v25 = vpop.eup %786 }
 0x2d9   :  { %v391_v26 = vmul.f32 %v787_v25, %v389_v39  ;;  %vm397_vm2 = vweird.f32 %v787_v25 }
 0x2da   :  { %vm398_vm13 = vmor %vm396_vm12, %vm397_vm2 }
 0x2db   :  { %v392_v28 = vmul.f32 %v787_v25, %v391_v26  ;;  %v655_v26 = vrot.slane %v792_v18, 6 }
 0x2dd   :  { %v393_v30 = vmul.f32 0.5, %v392_v28 }
 0x2df   :  { %v394_v32 = vsub.f32 1.5, %v393_v30 }
 0x2e1   :  { %v395_v33 = vmul.f32 %v787_v25, %v394_v32 }
 0x2e3   :  { %v399_v34 = vsel %vm398_vm13, %v787_v25, %v395_v33 }
 0x2e4   :  { %v400_v36 = vmul.f32 %v399_v34, %v1016_v44  ;;  %v617_v44 = vld [vmem:[%s1264_s9 + $0x168] sm:$0xff] }
 0x2e6   :  { %v404_v62 = vmul.f32 %v754_v55, %v400_v36 }
 0x2e8   :  { %v408_v61 = vadd.f32 %v755_v37, %v404_v62 }
 0x2ea   :  { %739 = vmatmul.msk.f32.vlgmr.msra.gmra.mxu2 %vm91_vm1, %v408_v61  ;;  %vm443_vm1 = vcmask 1043456  }
 0x2eb   :  { %631 = vmatpush.msra.mxu2 %v619_v47 }
 0x2ed   :  { %632 = vmatpush.msra.mxu2 %v618_v51 }
 0x2ef   :  { %633 = vmatpush.msra.mxu2 %v617_v44 }
 0x2f1   :  { %634 = vmatpush.msra.mxu2 %v616_v45 }
 0x2f3   :  { %635 = vmatpush.msra.mxu2 %v615_v0 }
 0x2f5   :  { %636 = vmatpush.msra.mxu2 %v614_v1 }
 0x2f7   :  { %637 = vmatpush.msra.mxu2 %v613_v4 }
 0x2f9   :  { %638 = vmatpush.msra.mxu2 %v612_v5 }
 0x36d   :  { %v437_v8 = vpop.f32.mrf.mxu2 }
 0x36e   :  { %v1212_v46 = vadd.f32 %v756_v7, %v437_v8 }
 0x370   :  { %v441_v9 = vrot.slane %v1212_v46, 4 }
 0x372   :  { %v444_v10 = vsel %vm443_vm1, 0.0, %v441_v9 }
 0x373   :  { %v446_v12 = vsel %vm445_vm14, %v444_v10, 0.0 }
 0x374   :  { %740 = vmatmul.msk.f32.vlgmr.msra.gmra.mxu3 %vm53_vm0, %v446_v12  ;;  %v492_v39 = vrot.slane %v446_v12, 1  ;;  %v556_v13 = vrot.slane %v446_v12, 3  ;;  %v588_v14 = vrot.slane %v446_v12, 4  ;;  %v688_v15 = vrot.slane %v446_v12, 7 }
 0x375   :  { %667 = vmatpush.msra.mxu3 %v651_v11  ;;  %v524_v20 = vrot.slane %v446_v12, 2  ;;  %v620_v21 = vrot.slane %v446_v12, 5  ;;  %v654_v25 = vrot.slane %v446_v12, 6 }
 0x376   :  { %741 = vmatmul.msk.f32.vlgmr.msrb.gmra.mxu2 %vm53_vm0, %v492_v39  ;;  %743 = vmatmul.msk.f32.vlgmr.msrb.gmra.mxu0 %vm53_vm0, %v556_v13  ;;  %v690_v23 = vsel %vm374_vm10, %v688_v15, %v689_v19 }
 0x377   :  { %744 = vmatmul.msk.f32.vlgmr.msrb.gmra.mxu1 %vm53_vm0, %v588_v14  ;;  %668 = vmatpush.msra.mxu3 %v650_v16  ;;  %v656_v28 = vsel %vm653_vm15, %v654_v25, %v655_v26 }
 0x379   :  { %669 = vmatpush.msra.mxu3 %v649_v54 }
 0x37b   :  { %670 = vmatpush.msra.mxu3 %v648_v17 }
 0x37c   :  { %742 = vmatmul.msk.f32.vlgmr.msrb.gmra.mxu3 %vm53_vm0, %v524_v20 }
 0x37d   :  { %671 = vmatpush.msra.mxu3 %v647_v59 }
 0x37e   :  { %745 = vmatmul.msk.f32.vlgmr.msra.gmra.mxu2 %vm53_vm0, %v620_v21  ;;  %747 = vmatmul.msk.f32.vlgmr.msra.gmra.mxu0 %vm53_vm0, %v690_v23 }
 0x37f   :  { %672 = vmatpush.msra.mxu3 %v646_v22 }
 0x381   :  { %673 = vmatpush.msra.mxu3 %v645_v24 }
 0x383   :  { %674 = vmatpush.msra.mxu3 %v644_v27 }
 0x384   :  { %746 = vmatmul.msk.f32.vlgmr.msra.gmra.mxu3 %vm53_vm0, %v656_v28  ;;  %vm724_vm0 = vcmask 517120  }
 0x3f3   :  { %v576_v55 = vpop.f32.mrf.mxu0 }
 0x3f4   :  { %v608_v62 = vpop.f32.mrf.mxu1 }
 0x3f7   :  { %v480_v30 = vpop.f32.mrf.mxu3 }
 0x3f8   :  { %v483_v31 = vadd.f32 %v757_v29, %v480_v30 }
 0x3f9   :  { %v512_v32 = vpop.f32.mrf.mxu2 }
 0x3fa   :  { %v515_v33 = vadd.f32 %v512_v32, %v483_v31 }
 0x3fb   :  { %v710_v43 = vpop.f32.mrf.mxu0 }
 0x3ff   :  { %v544_v34 = vpop.f32.mrf.mxu3 }
 0x400   :  { %v547_v36 = vadd.f32 %v544_v34, %v515_v33 }
 0x401   :  { %v640_v38 = vpop.f32.mrf.mxu2 }
 0x402   :  { %v579_v37 = vadd.f32 %v576_v55, %v547_v36 }
 0x404   :  { %v611_v61 = vadd.f32 %v608_v62, %v579_v37 }
 0x406   :  { %v643_v40 = vadd.f32 %v640_v38, %v611_v61 }
 0x407   :  { %v676_v41 = vpop.f32.mrf.mxu3 }
 0x408   :  { %v679_v42 = vadd.f32 %v676_v41, %v643_v40 }
 0x40a   :  { %v713_v47 = vadd.f32 %v710_v43, %v679_v42 }
 0x40c   :  { %v714_v48 = vmul.f32 %v713_v47, %v713_v47 }
 0x40e   :  { %v715_v49 = vmul.f32 %v714_v48, %v713_v47 }
 0x410   :  { %v716_v50 = vmul.f32 0.044715, %v715_v49 }
 0x412   :  { %v717_v51 = vadd.f32 %v716_v50, %v713_v47 }
 0x414   :  { %v718_v52 = vmul.f32 0.7978846, %v717_v51 }
 0x416   :  { %788 = vtanh.f32 %v718_v52 }
 0x41c   :  { %v789_v53 = vpop.eup %788 }
 0x41d   :  { %v720_v56 = vadd.f32 1.0, %v789_v53 }
 0x41f   :  { %v721_v44 = vmul.f32 0.5, %v720_v56 }
 0x421   :  { %v722_v57 = vmul.f32 %v721_v44, %v713_v47 }
 0x423   :  { %v723_v58 = vadd.f32 %v722_v57, %v1212_v46 }
 0x425   :  { %725 = vst.msk [vmem:[%s1266_s11] sm:$0x3] %vm724_vm0, %v723_v58 }

// kernel: wav2vec2_forward.7
= control target key start
LH: loop header
LB: loop body
LE: loop exit
PB: predicated region body
PF: predicated region fallthrough
CT: control target
= control target key end

     0   :  { %s1532_s0 = inlined_call_operand.vmem [shape: f32[2,64], index: 0, kind: input, shape index: {}]   ;;  %s1533_s1 = inlined_call_operand.vmem [shape: f32[64,64], index: 1, kind: input, shape index: {}]   ;;  %s1534_s2 = inlined_call_operand.vmem [shape: f32[5,4,64], index: 2, kind: input, shape index: {}]   ;;  %s1535_s3 = inlined_call_operand.vmem [shape: f32[5,64,192], index: 3, kind: input, shape index: {}]   ;;  %s1536_s4 = inlined_call_operand.vmem [shape: f32[5,1,192], index: 4, kind: input, shape index: {}]   ;;  %s1537_s5 = inlined_call_operand.vmem [shape: f32[5,64,64], index: 5, kind: input, shape index: {}]   ;;  %s1538_s6 = inlined_call_operand.vmem [shape: f32[5,1,64], index: 6, kind: input, shape index: {}]   ;;  %s1539_s7 = inlined_call_operand.vmem [shape: f32[5,64,256], index: 7, kind: input, shape index: {}]   ;;  %s1540_s8 = inlined_call_operand.vmem [shape: f32[5,1,256], index: 8, kind: input, shape index: {}]   ;;  %s1541_s9 = inlined_call_operand.vmem [shape: f32[5,256,64], index: 9, kind: input, shape index: {}]   ;;  %s1542_s10 = inlined_call_operand.vmem [shape: f32[5,1,64], index: 10, kind: input, shape index: {}]   ;;  %s1543_s11 = inlined_call_operand.vmem [shape: f32[2,64], index: 11, kind: input, shape index: {}]   ;;  %s1544_s12 = inlined_call_operand.hbm [shape: f32[2,64], index: 12, kind: output, shape index: {}]  }
   0x1   :  { %1547 = sst [smem:[#allocation7_spill]] %s1534_s2 }
   0x2   :  { %1548 = sst [smem:[#allocation8_spill]] %s1535_s3 }
   0x3   :  { %1549 = sst [smem:[#allocation9_spill]] %s1536_s4 }
   0x4   :  { %1550 = sst [smem:[#allocation10_spill]] %s1543_s11 }
   0x5   :  { %1551 = sst [smem:[#allocation11_spill]] %s1544_s12 }
   0x6   :  { %17 = vsyncpa [#allocation4], 0  ;;  %s1303_s21 = smov 0  }
   0x7 LB: > { %1552 = sst [smem:[#allocation6_spill]] %s1233_s21  ;;  %s1309_s22 = sadd.s32 4294967295, %s1233_s21   ;;  %s1233_s21 = sphi %s1303_s21, %s23_s21  }
   0x8   : > { %p1127_p0 = scmp.ge.s32.totalorder %s1233_s21, 1  ;;  %p431_p1 = scmp.lt.s32.totalorder %s1233_s21, 6 }
   0xa   : > { %p432_p2 = pnand %p1127_p0, %p431_p1 }
   0xb   : > { %p501_p3 = scmp.lt.s32.totalorder (!%p432_p2), %s1309_s22, 4  ;;  %s1553_s2 = sld [smem:[#allocation7_spill]] (!%p432_p2) }
   0xc   : > { %435 = sbr.rel (%p432_p2) target bundleno = 1689 (0x699), region = 68  ;;  %s1554_s3 = sld [smem:[#allocation8_spill]] (!%p432_p2) }
   0xd   : > { %s1555_s4 = sld [smem:[#allocation9_spill]] (!%p432_p2)  ;;  %p1139_p4 = scmp.ne.s32.totalorder (!%p432_p2), %s1309_s22, 0 }
  0x11   : > { %s1315_s23 = scalar_select %p501_p3, %s1309_s22, 4 }
  0x13   : > { %s1128_s24 = sshll.u32 %s1315_s23, 2  ;;  %s1152_s25 = sshll.u32 %s1315_s23, 7 }
  0x14   : > { %s1322_s28 = scalar_lea.vmem %s1553_s2, %s1128_s24  ;;  %s1327_s13 = scalar_lea.vmem %s1554_s3, %s1152_s25 }
  0x15   : > { %s1131_s14 = sshll.u32 %s1315_s23, 1  ;;  %s1153_s15 = sshll.u32 %s1315_s23, 6 }
  0x16   : > { %s1334_s18 = scalar_lea.vmem %s1555_s4, %s1131_s14  ;;  %s1339_s21 = scalar_lea.vmem %s1537_s5, %s1153_s15 }
  0x17   : > { %s521_s27 = scalar_lea.vmem %s1538_s6, %s1315_s23  ;;  %s1348_s30 = scalar_lea.vmem %s1539_s7, %s1152_s25 }
  0x18   : > { %s1353_s16 = scalar_lea.vmem %s1540_s8, %s1131_s14  ;;  %s1155_s17 = sshll.u32 %s1315_s23, 8 }
  0x19   : > { %s1359_s15 = scalar_lea.vmem %s1541_s9, %s1155_s17  ;;  %s538_s26 = scalar_lea.vmem %s1542_s10, %s1315_s23 }
  0x1a   : > { %542 = sbr.rel (%p1139_p4) target bundleno = 33 (0x21), region = 72 }
  0x1f   : > { %v543_v0 = vld [vmem:[%s1532_s0] sm:$0x3]  ;;  %vm544_vm0 = vcmask 517120  }
  0x20   : > { %545 = vst.msk [vmem:[#allocation2] sm:$0x3] %vm544_vm0, %v543_v0 }
  0x21 PF: > { %vm548_vm1 = vcmask 517120   ;;  %v1235_v3 = vmov 64.0   ;;  %v596_v15 = vld [vmem:[%s1327_s13 + $0x70] sm:$0xff]  ;;  %v594_v16 = vld [vmem:[%s1327_s13 + $0x60] sm:$0xff]  ;;  %v597_v23 = vld [vmem:[%s1327_s13 + $0x78] sm:$0xff]  ;;  %vm604_vm6 = vcmask 523264  }
  0x22   : > { %1175 = vrcp.f32 %v1235_v3  ;;  %616 = vmatpush.msra.mxu1 %v596_v15  ;;  %v592_v17 = vld [vmem:[%s1327_s13 + $0x50] sm:$0xff]  ;;  %v590_v18 = vld [vmem:[%s1327_s13 + $0x40] sm:$0xff]  ;;  %v595_v24 = vld [vmem:[%s1327_s13 + $0x68] sm:$0xff]  ;;  %s1236_s3 = smov 64   ;;  %p1147_p5 = scmp.ne.s32.totalorder %s1309_s22, 4 }
  0x23   : > { %v588_v19 = vld [vmem:[%s1327_s13 + $0x30] sm:$0xff]  ;;  %v586_v20 = vld [vmem:[%s1327_s13 + $0x20] sm:$0xff]  ;;  %v593_v25 = vld [vmem:[%s1327_s13 + $0x58] sm:$0xff] }
  0x24   : > { %617 = vmatpush.msra.mxu1 %v594_v16  ;;  %v584_v21 = vld [vmem:[%s1327_s13 + $0x10] sm:$0xff]  ;;  %v582_v22 = vld [vmem:[%s1327_s13] sm:$0xff]  ;;  %v591_v26 = vld [vmem:[%s1327_s13 + $0x48] sm:$0xff] }
  0x25   : > { %v589_v27 = vld [vmem:[%s1327_s13 + $0x38] sm:$0xff]  ;;  %v587_v28 = vld [vmem:[%s1327_s13 + $0x28] sm:$0xff]  ;;  %v1396_v39 = vld [vmem:[%s1322_s28] sm:$0xf] }
  0x26   : > { %618 = vmatpush.msra.mxu1 %v592_v17  ;;  %v585_v29 = vld [vmem:[%s1327_s13 + $0x18] sm:$0xff]  ;;  %v583_v32 = vld [vmem:[%s1327_s13 + $0x8] sm:$0xff]  ;;  %v578_v41 = vperm.slane %v1396_v39, 0  ;;  %v580_v44 = vperm.slane %v1396_v39, 1  ;;  %v654_v48 = vld [vmem:[%s1533_s1 + $0x30] sm:$0xff] }
  0x27   : > { %v1369_v1 = vld [vmem:[#allocation2] sm:$0x3]  ;;  %v655_v47 = vld [vmem:[%s1533_s1 + $0x38] sm:$0xff]  ;;  %v653_v49 = vld [vmem:[%s1533_s1 + $0x28] sm:$0xff] }
  0x28   : > { %v549_v2 = vsel %vm548_vm1, %v1369_v1, 0.0  ;;  %v1176_v4 = vpop.eup %1175  ;;  %619 = vmatpush.msra.mxu1 %v590_v18  ;;  %673 = vmatpush.msra.mxu2 %v655_v47  ;;  %v652_v50 = vld [vmem:[%s1533_s1 + $0x20] sm:$0xff]  ;;  %v651_v51 = vld [vmem:[%s1533_s1 + $0x18] sm:$0xff]  ;;  %v650_v52 = vld [vmem:[%s1533_s1 + $0x10] sm:$0xff] }
  0x29   : > { %550 = vadd.xlane.f32.xlu0 %v549_v2  ;;  %v553_v5 = vmul.f32 64.0, %v1176_v4  ;;  %vm557_vm2 = vweird.f32 %v1176_v4  ;;  %702 = vmatpush.msra.mxu3 %v655_v47  ;;  %v649_v53 = vld [vmem:[%s1533_s1 + $0x8] sm:$0xff]  ;;  %v598_v54 = vld [vmem:[%s1334_s18] sm:$0x3]  ;;  %v736_v2 = vld [vmem:[%s1339_s21 + $0x38] sm:$0xff] }
  0x2a   : > { %620 = vmatpush.msra.mxu1 %v588_v19  ;;  %674 = vmatpush.msra.mxu2 %v654_v48  ;;  %v600_v55 = vperm.slane %v598_v54, 0  ;;  %v648_v60 = vld [vmem:[%s1533_s1] sm:$0xff]  ;;  %v735_v3 = vld [vmem:[%s1339_s21 + $0x30] sm:$0xff]  ;;  %v601_v18 = vperm.slane %v598_v54, 1  ;;  %v794_v54 = vld [vmem:[%s1348_s30 + $0x18] sm:$0xff] }
  0x2b   : > { %v554_v6 = vsub.f32 1.0, %v553_v5  ;;  %703 = vmatpush.msra.mxu3 %v654_v48  ;;  %752 = vmatpush.msra.mxu0 %v736_v2  ;;  %v733_v5 = vld [vmem:[%s1339_s21 + $0x20] sm:$0xff]  ;;  %v800_v48 = vld [vmem:[%s1348_s30 + $0x48] sm:$0xff] }
  0x2c   : > { %621 = vmatpush.msra.mxu1 %v586_v20  ;;  %675 = vmatpush.msra.mxu2 %v653_v49  ;;  %v799_v47 = vld [vmem:[%s1348_s30 + $0x40] sm:$0xff] }
  0x2d   : > { %v555_v7 = vmul.f32 %v1176_v4, %v554_v6  ;;  %704 = vmatpush.msra.mxu3 %v653_v49  ;;  %753 = vmatpush.msra.mxu0 %v735_v3  ;;  %v732_v6 = vld [vmem:[%s1339_s21 + $0x18] sm:$0xff]  ;;  %v797_v49 = vld [vmem:[%s1348_s30 + $0x30] sm:$0xff] }
  0x2e   : > { %622 = vmatpush.msra.mxu1 %v584_v21  ;;  %676 = vmatpush.msra.mxu2 %v652_v50 }
  0x2f   : > { %v556_v8 = vadd.f32 %v1176_v4, %v555_v7  ;;  %705 = vmatpush.msra.mxu3 %v652_v50  ;;  %v731_v7 = vld [vmem:[%s1339_s21 + $0x10] sm:$0xff]  ;;  %v798_v50 = vld [vmem:[%s1348_s30 + $0x38] sm:$0xff] }
  0x30   : > { %623 = vmatpush.msra.mxu1 %v582_v22  ;;  %677 = vmatpush.msra.mxu2 %v651_v51 }
  0x31   : > { %v1373_v9 = vsel %vm557_vm2, %v1176_v4, %v556_v8  ;;  %706 = vmatpush.msra.mxu3 %v651_v51  ;;  %v734_v4 = vld [vmem:[%s1339_s21 + $0x28] sm:$0xff]  ;;  %v795_v51 = vld [vmem:[%s1348_s30 + $0x20] sm:$0xff] }
  0x32   : > { %636 = vmatpush.msrb.mxu1 %v597_v23  ;;  %678 = vmatpush.msra.mxu2 %v650_v52  ;;  %v730_v8 = vld [vmem:[%s1339_s21 + $0x8] sm:$0xff] }
  0x33   : > { %707 = vmatpush.msra.mxu3 %v650_v52  ;;  %754 = vmatpush.msra.mxu0 %v734_v4  ;;  %v796_v52 = vld [vmem:[%s1348_s30 + $0x28] sm:$0xff] }
  0x34   : > { %637 = vmatpush.msrb.mxu1 %v595_v24  ;;  %679 = vmatpush.msra.mxu2 %v649_v53 }
  0x35   : > { %708 = vmatpush.msra.mxu3 %v649_v53  ;;  %755 = vmatpush.msra.mxu0 %v733_v5  ;;  %v793_v53 = vld [vmem:[%s1348_s30 + $0x10] sm:$0xff] }
  0x36   : > { %638 = vmatpush.msrb.mxu1 %v593_v25  ;;  %680 = vmatpush.msra.mxu2 %v648_v60 }
  0x37   : > { %709 = vmatpush.msra.mxu3 %v648_v60  ;;  %756 = vmatpush.msra.mxu0 %v732_v6  ;;  %v787_v6 = vperm.slane %v1396_v39, 2 }
  0x38   : > { %639 = vmatpush.msrb.mxu1 %v591_v26 }
  0x39   : > { %757 = vmatpush.msra.mxu0 %v731_v7 }
  0x3a   : > { %640 = vmatpush.msrb.mxu1 %v589_v27 }
  0x3b   : > { %758 = vmatpush.msra.mxu0 %v730_v8 }
  0x3c   : > { %641 = vmatpush.msrb.mxu1 %v587_v28 }
  0x3e   : > { %642 = vmatpush.msrb.mxu1 %v585_v29 }
  0x40   : > { %643 = vmatpush.msrb.mxu1 %v583_v32 }
  0x9c   : > { %v551_v10 = vpop.xlane.xlu0 %550 }
  0x9d   : > { %v559_v11 = vmul.f32 %v1373_v9, %v551_v10  ;;  %v729_v10 = vld [vmem:[%s1339_s21] sm:$0xff] }
  0x9e   : > { %759 = vmatpush.msra.mxu0 %v729_v10  ;;  %v789_v10 = vperm.slane %v1396_v39, 3  ;;  %v884_v39 = vld [vmem:[%s1359_s15 + $0x50] sm:$0xff] }
  0x9f   : > { %v560_v12 = vsub.f32 %v1369_v1, %v559_v11 }
  0xa1   : > { %v561_v13 = vmul.f32 %v560_v12, %v560_v12 }
  0xa3   : > { %v562_v14 = vsel %vm548_vm1, %v561_v13, 0.0 }
  0xa4   : > { %563 = vadd.xlane.f32.xlu0 %v562_v14 }
 0x117   : > { %v564_v30 = vpop.xlane.xlu0 %563 }
 0x118   : > { %v565_v31 = vmul.f32 %v564_v30, %v1373_v9 }
 0x11a   : > { %v566_v33 = vadd.f32 1e-05, %v565_v31  ;;  %v1173_v31 = vld [vmem:[%s521_s27] ss:$0 sm:$0xff] }
 0x11c   : > { %1177 = vrsqrt.f32 %v566_v33  ;;  %vm573_vm4 = vweird.f32 %v566_v33 }
 0x122   : > { %v1178_v34 = vpop.eup %1177 }
 0x123   : > { %v568_v35 = vmul.f32 %v1178_v34, %v566_v33  ;;  %vm574_vm3 = vweird.f32 %v1178_v34 }
 0x124   : > { %vm575_vm5 = vmor %vm573_vm4, %vm574_vm3 }
 0x125   : > { %v569_v36 = vmul.f32 %v1178_v34, %v568_v35 }
 0x127   : > { %v570_v37 = vmul.f32 0.5, %v569_v36 }
 0x129   : > { %v571_v38 = vsub.f32 1.5, %v570_v37 }
 0x12b   : > { %v572_v40 = vmul.f32 %v1178_v34, %v571_v38 }
 0x12d   : > { %v576_v42 = vsel %vm575_vm5, %v1178_v34, %v572_v40 }
 0x12e   : > { %v577_v43 = vmul.f32 %v576_v42, %v560_v12  ;;  %v805_v42 = vld [vmem:[%s1348_s30 + $0x70] sm:$0xff] }
 0x130   : > { %v579_v45 = vmul.f32 %v578_v41, %v577_v43  ;;  %v803_v43 = vld [vmem:[%s1348_s30 + $0x60] sm:$0xff] }
 0x132   : > { %v581_v46 = vadd.f32 %v580_v44, %v579_v45  ;;  %v804_v44 = vld [vmem:[%s1348_s30 + $0x68] sm:$0xff]  ;;  %v801_v45 = vld [vmem:[%s1348_s30 + $0x50] sm:$0xff] }
 0x134   : > { %1140 = vmatmul.msk.f32.vlgmr.msra.gmra.mxu1 %vm604_vm6, %v581_v46 }
 0x135   : > { %824 = vmatpush.msra.mxu1 %v805_v42  ;;  %v891_v42 = vld [vmem:[%s1359_s15 + $0x88] sm:$0xff] }
 0x137   : > { %825 = vmatpush.msra.mxu1 %v803_v43 }
 0x139   : > { %826 = vmatpush.msra.mxu1 %v801_v45 }
 0x13b   : > { %827 = vmatpush.msra.mxu1 %v799_v47 }
 0x13c   : > { %1141 = vmatmul.msk.f32.vlgmr.msrb.gmra.mxu1 %vm604_vm6, %v581_v46  ;;  %v802_v46 = vld [vmem:[%s1348_s30 + $0x58] sm:$0xff] }
 0x13d   : > { %828 = vmatpush.msra.mxu1 %v797_v49 }
 0x13f   : > { %829 = vmatpush.msra.mxu1 %v795_v51 }
 0x141   : > { %830 = vmatpush.msra.mxu1 %v793_v53 }
 0x1b1   : > { %v625_v56 = vpop.f32.mrf.mxu1 }
 0x1b2   : > { %v626_v57 = vadd.f32 %v625_v56, %v600_v55  ;;  %v791_v55 = vld [vmem:[%s1348_s30] sm:$0xff]  ;;  %v792_v56 = vld [vmem:[%s1348_s30 + $0x8] sm:$0xff] }
 0x1b3   : > { %831 = vmatpush.msra.mxu1 %v791_v55 }
 0x1b4   : > { %v656_v58 = vperm.slane %v626_v57, 0  ;;  %v685_v59 = vperm.slane %v626_v57, 1 }
 0x1b6   : > { %658 = vrot.lane.b32.xlu1 %v656_v58, %s1236_s3  ;;  %v888_v58 = vld [vmem:[%s1359_s15 + $0x70] sm:$0xff] }
 0x1b9   : > { %v645_v19 = vpop.f32.mrf.mxu1 }
 0x1ba   : > { %v646_v20 = vadd.f32 %v645_v19, %v601_v18  ;;  %v883_v18 = vld [vmem:[%s1359_s15 + $0x48] sm:$0xff]  ;;  %v902_v19 = vld [vmem:[%s1359_s15 + $0xe0] sm:$0xff] }
 0x1bc   : > { %v722_v24 = vperm.slane %v646_v20, 0  ;;  %v724_v25 = vperm.slane %v646_v20, 1  ;;  %v882_v20 = vld [vmem:[%s1359_s15 + $0x40] sm:$0xff] }
 0x1be   : > { %687 = vrot.lane.b32.xlu1 %v685_v59, %s1236_s3  ;;  %v887_v59 = vld [vmem:[%s1359_s15 + $0x68] sm:$0xff] }
 0x228   : > { %v659_v61 = vpop.permute.xlu1 %658 }
 0x229   : > { %v661_v62 = vmul.f32 %v659_v61, %v626_v57 }
 0x22b   : > { %1142 = vmatmul.msk.f32.vlgmr.msra.gmra.mxu2 %vm604_vm6, %v661_v62 }
 0x230   : > { %v688_v63 = vpop.permute.xlu1 %687 }
 0x231   : > { %v690_v0 = vmul.f32 %v688_v63, %v626_v57  ;;  %v889_v57 = vld [vmem:[%s1359_s15 + $0x78] sm:$0xff] }
 0x232   : > { %910 = vmatpush.msrb.mxu3 %v889_v57 }
 0x233   : > { %1143 = vmatmul.msk.f32.vlgmr.msra.gmra.mxu3 %vm604_vm6, %v690_v0 }
 0x234   : > { %911 = vmatpush.msrb.mxu3 %v888_v58 }
 0x236   : > { %912 = vmatpush.msrb.mxu3 %v887_v59 }
 0x2ae   : > { %v682_v11 = vpop.f32.mrf.mxu2 }
 0x2b6   : > { %v711_v12 = vpop.f32.mrf.mxu3 }
 0x2b7   : > { %v714_v13 = vmax.f32 %v682_v11, %v711_v12 }
 0x2b9   : > { %v715_v14 = vsub.f32 %v682_v11, %v714_v13  ;;  %v718_v15 = vsub.f32 %v711_v12, %v714_v13  ;;  %v886_v13 = vld [vmem:[%s1359_s15 + $0x60] sm:$0xff] }
 0x2ba   : > { %913 = vmatpush.msrb.mxu3 %v886_v13 }
 0x2bb   : > { %v716_v16 = vmul.f32 1.442695, %v715_v14  ;;  %v719_v17 = vmul.f32 1.442695, %v718_v15  ;;  %v905_v14 = vld [vmem:[%s1359_s15 + $0xf8] sm:$0xff] }
 0x2bc   : > { %930 = vmatpush.msrb.mxu0 %v905_v14  ;;  %v885_v15 = vld [vmem:[%s1359_s15 + $0x58] sm:$0xff] }
 0x2bd   : > { %1179 = vpow2.f32 %v716_v16  ;;  %v904_v16 = vld [vmem:[%s1359_s15 + $0xf0] sm:$0xff]  ;;  %914 = vmatpush.msrb.mxu3 %v885_v15 }
 0x2be   : > { %1181 = vpow2.f32 %v719_v17  ;;  %931 = vmatpush.msrb.mxu0 %v904_v16  ;;  %v903_v17 = vld [vmem:[%s1359_s15 + $0xe8] sm:$0xff] }
 0x2bf   : > { %915 = vmatpush.msrb.mxu3 %v884_v39 }
 0x2c0   : > { %932 = vmatpush.msrb.mxu0 %v903_v17 }
 0x2c1   : > { %916 = vmatpush.msrb.mxu3 %v883_v18 }
 0x2c2   : > { %933 = vmatpush.msrb.mxu0 %v902_v19 }
 0x2c3   : > { %v1180_v21 = vpop.eup %1179  ;;  %917 = vmatpush.msrb.mxu3 %v882_v20 }
 0x2c4   : > { %v1182_v22 = vpop.eup %1181  ;;  %v723_v26 = vmul.f32 %v1180_v21, %v722_v24  ;;  %v880_v24 = vld [vmem:[%s1359_s15 + $0x30] sm:$0xff] }
 0x2c5   : > { %v721_v23 = vadd.f32 %v1182_v22, %v1180_v21  ;;  %v725_v27 = vmul.f32 %v1182_v22, %v724_v25  ;;  %v901_v21 = vld [vmem:[%s1359_s15 + $0xd8] sm:$0xff]  ;;  %v899_v25 = vld [vmem:[%s1359_s15 + $0xc8] sm:$0xff] }
 0x2c6   : > { %934 = vmatpush.msrb.mxu0 %v901_v21  ;;  %v881_v22 = vld [vmem:[%s1359_s15 + $0x38] sm:$0xff] }
 0x2c7   : > { %1183 = vrcp.f32 %v721_v23  ;;  %v726_v28 = vadd.f32 %v725_v27, %v723_v26  ;;  %v900_v23 = vld [vmem:[%s1359_s15 + $0xd0] sm:$0xff]  ;;  %918 = vmatpush.msrb.mxu3 %v881_v22  ;;  %v879_v26 = vld [vmem:[%s1359_s15 + $0x28] sm:$0xff]  ;;  %v898_v27 = vld [vmem:[%s1359_s15 + $0xc0] sm:$0xff] }
 0x2c8   : > { %935 = vmatpush.msrb.mxu0 %v900_v23 }
 0x2c9   : > { %919 = vmatpush.msrb.mxu3 %v880_v24 }
 0x2ca   : > { %936 = vmatpush.msrb.mxu0 %v899_v25 }
 0x2cb   : > { %920 = vmatpush.msrb.mxu3 %v879_v26 }
 0x2cc   : > { %937 = vmatpush.msrb.mxu0 %v898_v27 }
 0x2cd   : > { %v1184_v29 = vpop.eup %1183 }
 0x2ce   : > { %v728_v30 = vmul.f32 %v1184_v29, %v726_v28  ;;  %v878_v28 = vld [vmem:[%s1359_s15 + $0x20] sm:$0xff]  ;;  %v897_v29 = vld [vmem:[%s1359_s15 + $0xb8] sm:$0xff] }
 0x2cf   : > { %921 = vmatpush.msrb.mxu3 %v878_v28  ;;  %938 = vmatpush.msrb.mxu0 %v897_v29 }
 0x2d0   : > { %1144 = vmatmul.msk.f32.vlgmr.msra.gmra.mxu0 %vm604_vm6, %v728_v30  ;;  %v877_v30 = vld [vmem:[%s1359_s15 + $0x18] sm:$0xff] }
 0x2d1   : > { %922 = vmatpush.msrb.mxu3 %v877_v30 }
 0x34d   : > { %v761_v32 = vpop.f32.mrf.mxu0 }
 0x34e   : > { %v762_v33 = vadd.f32 %v1173_v31, %v761_v32  ;;  %v896_v31 = vld [vmem:[%s1359_s15 + $0xb0] sm:$0xff] }
 0x34f   : > { %v876_v32 = vld [vmem:[%s1359_s15 + $0x10] sm:$0xff]  ;;  %939 = vmatpush.msrb.mxu0 %v896_v31 }
 0x350   : > { %v1444_v34 = vadd.f32 %v762_v33, %v1369_v1  ;;  %v806_v1 = vld [vmem:[%s1348_s30 + $0x78] sm:$0xff]  ;;  %v895_v33 = vld [vmem:[%s1359_s15 + $0xa8] sm:$0xff]  ;;  %923 = vmatpush.msrb.mxu3 %v876_v32 }
 0x351   : > { %844 = vmatpush.msrb.mxu2 %v806_v1  ;;  %940 = vmatpush.msrb.mxu0 %v895_v33  ;;  %v890_v1 = vld [vmem:[%s1359_s15 + $0x80] sm:$0xff] }
 0x352   : > { %v765_v35 = vsel %vm548_vm1, %v1444_v34, 0.0 }
 0x353   : > { %766 = vadd.xlane.f32.xlu2 %v765_v35  ;;  %845 = vmatpush.msrb.mxu2 %v804_v44  ;;  %v875_v35 = vld [vmem:[%s1359_s15 + $0x8] sm:$0xff] }
 0x354   : > { %924 = vmatpush.msrb.mxu3 %v875_v35 }
 0x355   : > { %846 = vmatpush.msrb.mxu2 %v802_v46 }
 0x357   : > { %847 = vmatpush.msrb.mxu2 %v800_v48 }
 0x359   : > { %848 = vmatpush.msrb.mxu2 %v798_v50 }
 0x35b   : > { %849 = vmatpush.msrb.mxu2 %v796_v52 }
 0x35d   : > { %850 = vmatpush.msrb.mxu2 %v794_v54 }
 0x35f   : > { %851 = vmatpush.msrb.mxu2 %v792_v56 }
 0x3c6   : > { %v767_v36 = vpop.xlane.xlu2 %766 }
 0x3c7   : > { %v768_v37 = vmul.f32 %v767_v36, %v1373_v9  ;;  %v894_v36 = vld [vmem:[%s1359_s15 + $0xa0] sm:$0xff] }
 0x3c8   : > { %941 = vmatpush.msrb.mxu0 %v894_v36 }
 0x3c9   : > { %v769_v38 = vsub.f32 %v1444_v34, %v768_v37  ;;  %v874_v37 = vld [vmem:[%s1359_s15] sm:$0xff] }
 0x3ca   : > { %925 = vmatpush.msrb.mxu3 %v874_v37 }
 0x3cb   : > { %v770_v40 = vmul.f32 %v769_v38, %v769_v38 }
 0x3cd   : > { %v771_v41 = vsel %vm548_vm1, %v770_v40, 0.0  ;;  %v807_v40 = vld [vmem:[%s1353_s16] sm:$0x3] }
 0x3ce   : > { %772 = vadd.xlane.f32.xlu2 %v771_v41  ;;  %v892_v41 = vld [vmem:[%s1359_s15 + $0x90] sm:$0xff]  ;;  %v809_v43 = vperm.slane %v807_v40, 0  ;;  %v810_v47 = vperm.slane %v807_v40, 1 }
 0x441   : > { %v773_v60 = vpop.xlane.xlu2 %772 }
 0x442   : > { %v774_v61 = vmul.f32 %v773_v60, %v1373_v9 }
 0x444   : > { %v775_v62 = vadd.f32 1e-05, %v774_v61 }
 0x446   : > { %1185 = vrsqrt.f32 %v775_v62  ;;  %vm782_vm8 = vweird.f32 %v775_v62 }
 0x44c   : > { %v1186_v63 = vpop.eup %1185 }
 0x44d   : > { %v777_v0 = vmul.f32 %v1186_v63, %v775_v62  ;;  %vm783_vm7 = vweird.f32 %v1186_v63 }
 0x44e   : > { %vm784_vm9 = vmor %vm782_vm8, %vm783_vm7 }
 0x44f   : > { %v778_v2 = vmul.f32 %v1186_v63, %v777_v0 }
 0x451   : > { %v779_v3 = vmul.f32 0.5, %v778_v2 }
 0x453   : > { %v780_v4 = vsub.f32 1.5, %v779_v3 }
 0x455   : > { %v781_v5 = vmul.f32 %v1186_v63, %v780_v4  ;;  %v1174_v4 = vld [vmem:[%s538_s26] ss:$0 sm:$0xff] }
 0x457   : > { %v785_v7 = vsel %vm784_vm9, %v1186_v63, %v781_v5 }
 0x458   : > { %v786_v8 = vmul.f32 %v785_v7, %v769_v38  ;;  %v893_v38 = vld [vmem:[%s1359_s15 + $0x98] sm:$0xff]  ;;  %s1556_s15 = sld [smem:[#allocation10_spill]] (!%p1147_p5) }
 0x459   : > { %942 = vmatpush.msrb.mxu0 %v893_v38 }
 0x45a   : > { %v788_v11 = vmul.f32 %v787_v6, %v786_v8 }
 0x45b   : > { %943 = vmatpush.msrb.mxu0 %v892_v41 }
 0x45c   : > { %v790_v12 = vadd.f32 %v789_v10, %v788_v11 }
 0x45d   : > { %944 = vmatpush.msrb.mxu0 %v891_v42 }
 0x45e   : > { %1145 = vmatmul.msk.f32.vlgmr.msra.gmra.mxu1 %vm604_vm6, %v790_v12  ;;  %1146 = vmatmul.msk.f32.vlgmr.msrb.gmra.mxu2 %vm604_vm6, %v790_v12 }
 0x45f   : > { %945 = vmatpush.msrb.mxu0 %v890_v1 }
 0x4db   : > { %v833_v44 = vpop.f32.mrf.mxu1 }
 0x4dc   : > { %v834_v45 = vadd.f32 %v833_v44, %v809_v43 }
 0x4de   : > { %v856_v46 = vmul.f32 %v834_v45, %v834_v45 }
 0x4e0   : > { %v858_v48 = vmul.f32 %v856_v46, %v834_v45 }
 0x4e1   : > { %v853_v49 = vpop.f32.mrf.mxu2 }
 0x4e2   : > { %v860_v50 = vmul.f32 0.044715, %v858_v48  ;;  %v854_v51 = vadd.f32 %v853_v49, %v810_v47 }
 0x4e4   : > { %v862_v52 = vadd.f32 %v860_v50, %v834_v45  ;;  %v857_v53 = vmul.f32 %v854_v51, %v854_v51 }
 0x4e6   : > { %v859_v54 = vmul.f32 %v857_v53, %v854_v51  ;;  %v864_v55 = vmul.f32 0.7978846, %v862_v52 }
 0x4e8   : > { %v861_v56 = vmul.f32 0.044715, %v859_v54  ;;  %1187 = vtanh.f32 %v864_v55 }
 0x4ea   : > { %v863_v57 = vadd.f32 %v861_v56, %v854_v51 }
 0x4ec   : > { %v865_v58 = vmul.f32 0.7978846, %v863_v57 }
 0x4ee   : > { %v1188_v59 = vpop.eup %1187  ;;  %1189 = vtanh.f32 %v865_v58 }
 0x4ef   : > { %v868_v60 = vadd.f32 1.0, %v1188_v59 }
 0x4f1   : > { %v870_v61 = vmul.f32 0.5, %v868_v60 }
 0x4f3   : > { %v872_v62 = vmul.f32 %v870_v61, %v834_v45 }
 0x4f4   : > { %v1190_v63 = vpop.eup %1189 }
 0x4f5   : > { %926 = vmatmul.f32.vlgmr.msrb.gmra.mxu3 %v872_v62  ;;  %v869_v0 = vadd.f32 1.0, %v1190_v63 }
 0x4f7   : > { %v871_v2 = vmul.f32 0.5, %v869_v0 }
 0x4f9   : > { %v873_v3 = vmul.f32 %v871_v2, %v854_v51 }
 0x4fb   : > { %946 = vmatmul.f32.vlgmr.msrb.gmra.mxu0 %v873_v3 }
 0x578   : > { %v927_v5 = vpop.f32.mrf.mxu3  ;;  %v947_v7 = vpop.f32.mrf.mxu0 }
 0x579   : > { %v928_v6 = vadd.f32 %v1174_v4, %v927_v5 }
 0x57b   : > { %v948_v8 = vadd.f32 %v947_v7, %v928_v6 }
 0x57c   : > { %956 = sbr.rel (%p1147_p5) target bundleno = 1678 (0x68e), region = 76 }
 0x57d   : > { %v950_v10 = vadd.f32 %v948_v8, %v1444_v34 }
 0x57f   : > { %951 = vst.msk [vmem:[#allocation2] sm:$0x3] %vm548_vm1, %v950_v10 }
 0x580   : > { %952 = vst.msk [vmem:[#allocation3] sm:$0x3] %vm548_vm1, %v950_v10 }
 0x581   : > { %v959_v11 = vsel %vm548_vm1, %v950_v10, 0.0  ;;  %v1191_v24 = vld [vmem:[%s1556_s15] ss:$0 sm:$0xff] }
 0x582   : > { %960 = vadd.xlane.f32.xlu0 %v959_v11 }
 0x5f5   : > { %v961_v12 = vpop.xlane.xlu0 %960 }
 0x5f6   : > { %v962_v13 = vmul.f32 %v961_v12, %v1373_v9 }
 0x5f8   : > { %v963_v14 = vsub.f32 %v950_v10, %v962_v13 }
 0x5fa   : > { %v964_v15 = vmul.f32 %v963_v14, %v963_v14 }
 0x5fc   : > { %v965_v16 = vsel %vm548_vm1, %v964_v15, 0.0 }
 0x5fd   : > { %966 = vadd.xlane.f32.xlu0 %v965_v16 }
 0x670   : > { %v967_v39 = vpop.xlane.xlu0 %966 }
 0x671   : > { %v968_v34 = vmul.f32 %v967_v39, %v1373_v9  ;;  %v1192_v9 = vld [vmem:[%s1556_s15 + $0x1] ss:$0 sm:$0xff] }
 0x673   : > { %v969_v17 = vadd.f32 1e-05, %v968_v34 }
 0x675   : > { %1193 = vrsqrt.f32 %v969_v17  ;;  %vm976_vm11 = vweird.f32 %v969_v17 }
 0x67b   : > { %v1194_v18 = vpop.eup %1193 }
 0x67c   : > { %v971_v19 = vmul.f32 %v1194_v18, %v969_v17  ;;  %vm977_vm10 = vweird.f32 %v1194_v18 }
 0x67d   : > { %vm978_vm12 = vmor %vm976_vm11, %vm977_vm10 }
 0x67e   : > { %v972_v20 = vmul.f32 %v1194_v18, %v971_v19 }
 0x680   : > { %v973_v21 = vmul.f32 0.5, %v972_v20 }
 0x682   : > { %v974_v22 = vsub.f32 1.5, %v973_v21 }
 0x684   : > { %v975_v23 = vmul.f32 %v1194_v18, %v974_v22 }
 0x686   : > { %v979_v25 = vsel %vm978_vm12, %v1194_v18, %v975_v23 }
 0x687   : > { %v980_v26 = vmul.f32 %v979_v25, %v963_v14 }
 0x689   : > { %v982_v27 = vmul.f32 %v1191_v24, %v980_v26 }
 0x68b   : > { %v984_v28 = vadd.f32 %v1192_v9, %v982_v27 }
 0x68d   : > { %985 = vst.msk [vmem:[#allocation3] sm:$0x3] %vm548_vm1, %v984_v28 }
 0x68e PF: > { %p1160_p6 = scmp.eq.s32.totalorder %s1309_s22, 4  ;;  %s1237_s28 = smov [#allocation3]  }
 0x68f   : > { %s992_s13 = sshll.u32 %s1237_s28, 4  ;;  %s1557_s29 = sld [smem:[#allocation11_spill]]  ;;  %s993_s13 = int_to_ptr.vmem [resolvable:$true] %s992_s13 }
 0x695   : > { %s994_s17 = sshll.u32 %s1557_s29, 4  ;;  %s995_s17 = int_to_ptr.hbm [resolvable:$true] %s994_s17 }
 0x696   : > { %1157 = dma.vmem_to_hbm [thread:$0]  (%p1160_p6), %s993_s13, 32, %s995_s17, [#allocation4]  }
 0x697   : > { %1228 = dma.done.wait (%p1160_p6), [#allocation4], 32  }
 0x698   : > { %1230 = vsyncadd (%p1160_p6), [#allocation4], 4294967264 }
 0x699 PF: > { %s1558_s19 = sld [smem:[#allocation6_spill]] }
 0x69f   : > { %s23_s21 = sadd.s32 1, %s1558_s19  }
 0x6a0   : > { %p20_p7 = scmp.ge.s32.totalorder %s23_s21, 7  }
 0x6a2   :  { %22 = sbr.rel (!%p20_p7) target bundleno = 7 (0x7), region = 127 }
 0x6a7   :  { %1008 = vsyncpa [#allocation4], 1 }
 0x6a8   :  { %1010 = vsyncpa [#allocation4 + $0x1], 1 }

</bundles_post_ra>
